<compile_context>
chip_gen: v7x
topology: tpu7x:2x2x1
jax: 0.10.0
libtpu: 0.0.40
codegen_flags: <defaults>
</compile_context>

<pallas_src>
import functools

import jax
import jax.numpy as jnp
from jax.experimental import pallas as pl
from jax.experimental.pallas import tpu as pltpu

IN_FEATURES = 2352          # 3 * 28 * 28
K_PAD = 2432                # 19 * 128, zero-padded K for dense (8,128) tiling
HIDDEN = 512
LATENT_DIMS = 2             # torch.split(y, 2, dim=-1) -> (mu, log_var) requires latent_dims == 2
LANES = 128                 # lane width; mu/log_var/z are lane-padded to 128
TILE_B = 128                # batch tile (multiple of 8, MXU-friendly M)


def _round_up(x, m):
    return ((x + m - 1) // m) * m


def encoder_kernel(x_ref, w1_ref, b1_ref, w2mu_ref, w2lv_ref, b2mu_ref, b2lv_ref,
                   eps_ref, z_ref, kl_ref, *, batch, tile_b):
    # x_ref:   [tile_b, K_PAD]        w1_ref: [K_PAD, 512]    b1_ref: [1, 512]
    # w2*_ref: [512, 128] (zero-padded beyond lane 2)         b2*_ref: [1, 128]
    # eps_ref: [tile_b, 128] (zero beyond lane 2)
    # z_ref:   [tile_b, 128]          kl_ref: [1, 8, 128] per-tile partial KL
    i = pl.program_id(0)

    # linear1 + ReLU on the MXU (f32 accumulation).
    h = jnp.dot(x_ref[...], w1_ref[...], preferred_element_type=jnp.float32) + b1_ref[...]
    h = jnp.maximum(h, 0.0)

    # to_mean_logvar as two lane-dense [512,128] matmuls -> mu / log_var slabs.
    # Lanes >= LATENT_DIMS are exactly zero (zero-padded weights and biases).
    mu = jnp.dot(h, w2mu_ref[...], preferred_element_type=jnp.float32) + b2mu_ref[...]
    log_var = jnp.dot(h, w2lv_ref[...], preferred_element_type=jnp.float32) + b2lv_ref[...]

    # Row-validity mask: batch rows padded up to tile_b must not contribute to KL.
    row = jax.lax.broadcasted_iota(jnp.int32, (tile_b, LANES), 0) + i * tile_b
    valid = row < batch

    # KL partial sum for this tile. Padded lanes give 1 + 0 - 0 - exp(0) = 0 exactly.
    kl_terms = 1.0 + log_var - mu * mu - jnp.exp(log_var)
    kl_terms = jnp.where(valid, kl_terms, 0.0)
    partial = -0.5 * jnp.sum(kl_terms)
    kl_ref[...] = jnp.full(kl_ref.shape, partial, dtype=jnp.float32)

    # Reparametrization trick; eps is zero beyond lane LATENT_DIMS so extra lanes stay inert.
    z_ref[...] = mu + jnp.exp(log_var * 0.5) * eps_ref[...]


def continuous_encoder_forward(x_nchw, w1, b1, w2, b2, eps, *, tile_b=TILE_B, use_bf16=False):
    """x_nchw: [B, 3, 28, 28] f32; w1: [2352, 512]; b1: [512]; w2: [512, 4]; b2: [4];
    eps: [B, 2]. Returns (z [B, 2] f32, kl scalar f32)."""
    B = x_nchw.shape[0]
    xf = x_nchw.reshape(B, -1)               # torch.flatten(x, start_dim=1)
    assert xf.shape[1] == IN_FEATURES

    tile_b = min(tile_b, _round_up(B, 8))    # don't over-pad tiny demo batches
    num_tiles = pl.cdiv(B, tile_b)
    b_pad = num_tiles * tile_b

    # Zero-pad: batch rows to b_pad, K to K_PAD, eps lanes to 128. Zeros are inert.
    xf = jnp.pad(xf, ((0, b_pad - B), (0, K_PAD - IN_FEATURES)))
    eps_pad = jnp.pad(eps, ((0, b_pad - B), (0, LANES - LATENT_DIMS)))
    w1_pad = jnp.pad(w1, ((0, K_PAD - IN_FEATURES), (0, 0)))
    w2_mu = jnp.pad(w2[:, :LATENT_DIMS], ((0, 0), (0, LANES - LATENT_DIMS)))
    w2_lv = jnp.pad(w2[:, LATENT_DIMS:2 * LATENT_DIMS], ((0, 0), (0, LANES - LATENT_DIMS)))
    b2_mu = jnp.pad(b2[:LATENT_DIMS], (0, LANES - LATENT_DIMS)).reshape(1, LANES)
    b2_lv = jnp.pad(b2[LATENT_DIMS:2 * LATENT_DIMS], (0, LANES - LATENT_DIMS)).reshape(1, LANES)
    b1_2d = b1.reshape(1, HIDDEN)

    if use_bf16:  # halves W1 / x-tile bandwidth and speeds the MXU; accumulation stays f32
        xf = xf.astype(jnp.bfloat16)
        w1_pad = w1_pad.astype(jnp.bfloat16)

    kernel = functools.partial(encoder_kernel, batch=B, tile_b=tile_b)

    z_slab, kl_part = pl.pallas_call(
        kernel,
        out_shape=(
            jax.ShapeDtypeStruct((b_pad, LANES), jnp.float32),
            jax.ShapeDtypeStruct((num_tiles, 8, LANES), jnp.float32),
        ),
        grid=(num_tiles,),
        in_specs=[
            pl.BlockSpec((tile_b, K_PAD), lambda i: (i, 0)),      # x tile (pipelined)
            pl.BlockSpec((K_PAD, HIDDEN), lambda i: (0, 0)),      # W1 (pinned, VMEM-resident)
            pl.BlockSpec((1, HIDDEN), lambda i: (0, 0)),          # b1
            pl.BlockSpec((HIDDEN, LANES), lambda i: (0, 0)),      # W2_mu (padded)
            pl.BlockSpec((HIDDEN, LANES), lambda i: (0, 0)),      # W2_logvar (padded)
            pl.BlockSpec((1, LANES), lambda i: (0, 0)),           # b2_mu
            pl.BlockSpec((1, LANES), lambda i: (0, 0)),           # b2_logvar
            pl.BlockSpec((tile_b, LANES), lambda i: (i, 0)),      # eps tile (lane-padded)
        ],
        out_specs=(
            pl.BlockSpec((tile_b, LANES), lambda i: (i, 0)),      # z slab (lane-dense store)
            pl.BlockSpec((1, 8, LANES), lambda i: (i, 0, 0)),     # per-tile KL partial
        ),
        compiler_params=pltpu.CompilerParams(
            dimension_semantics=("parallel",),                    # megacore-shard batch tiles
            vmem_limit_bytes=32 * 1024 * 1024,
        ),
    )(xf, w1_pad, b1_2d, w2_mu, w2_lv, b2_mu, b2_lv, eps_pad)

    z = z_slab[:B, :LATENT_DIMS]
    kl = jnp.sum(kl_part[:, 0, 0])
    return z, kl


def init_params(key):
    """PyTorch-style uniform(-1/sqrt(fan_in), 1/sqrt(fan_in)) init.
    Weights stored already transposed ([in, out]) for the kernel's x @ W layout."""
    k1, k2, k3, k4 = jax.random.split(key, 4)
    bound1 = 1.0 / jnp.sqrt(IN_FEATURES)
    bound2 = 1.0 / jnp.sqrt(HIDDEN)
    w1 = jax.random.uniform(k1, (IN_FEATURES, HIDDEN), jnp.float32, -bound1, bound1)
    b1 = jax.random.uniform(k2, (HIDDEN,), jnp.float32, -bound1, bound1)
    w2 = jax.random.uniform(k3, (HIDDEN, 2 * LATENT_DIMS), jnp.float32, -bound2, bound2)
    b2 = jax.random.uniform(k4, (2 * LATENT_DIMS,), jnp.float32, -bound2, bound2)
    return w1, b1, w2, b2


def reference_forward(x_nchw, w1, b1, w2, b2, eps):
    xf = x_nchw.reshape(x_nchw.shape[0], -1)
    h = jax.nn.relu(xf @ w1 + b1)
    y = h @ w2 + b2
    mu, log_var = y[:, :LATENT_DIMS], y[:, LATENT_DIMS:]
    kl = -0.5 * jnp.sum(1.0 + log_var - mu**2 - jnp.exp(log_var))
    z = mu + jnp.exp(log_var / 2.0) * eps
    return z, kl


if __name__ == "__main__":
    key = jax.random.PRNGKey(0)
    k_x, k_p, k_eps = jax.random.split(key, 3)

    B = 2
    x = jax.random.normal(k_x, (B, 3, 28, 28), jnp.float32)   # NCHW, 3*28*28 = 2352
    w1, b1, w2, b2 = init_params(k_p)
    eps = jax.random.normal(k_eps, (B, LATENT_DIMS), jnp.float32)

    z, kl = continuous_encoder_forward(x, w1, b1, w2, b2, eps)
    z = jax.block_until_ready(z)
    kl = jax.block_until_ready(kl)

    z_ref, kl_ref = reference_forward(x, w1, b1, w2, b2, eps)
    assert jnp.allclose(z, z_ref, atol=1e-4, rtol=1e-4), "z mismatch vs reference"
    assert jnp.allclose(kl, kl_ref, atol=1e-3, rtol=1e-4), "kl mismatch vs reference"

    print("KERNEL_OK")
</pallas_src>

<mosaic_0001>
module attributes {stable_mosaic.version = 11 : i64} {
  func.func @encoder_kernel(%arg0: i32, %arg1: memref<8x2432xf32, #tpu.memory_space<vmem>>, %arg2: memref<2432x512xf32, #tpu.memory_space<vmem>>, %arg3: memref<1x512xf32, #tpu.memory_space<vmem>>, %arg4: memref<512x128xf32, #tpu.memory_space<vmem>>, %arg5: memref<512x128xf32, #tpu.memory_space<vmem>>, %arg6: memref<1x128xf32, #tpu.memory_space<vmem>>, %arg7: memref<1x128xf32, #tpu.memory_space<vmem>>, %arg8: memref<8x128xf32, #tpu.memory_space<vmem>>, %arg9: memref<8x128xf32, #tpu.memory_space<vmem>>, %arg10: memref<1x8x128xf32, #tpu.memory_space<vmem>>) attributes {dimension_semantics = [#tpu.dimension_semantics<parallel>], iteration_bounds = array<i64: 1>, scalar_prefetch = 0 : i64, scratch_operands = 0 : i64, tpu.core_type = #tpu.core_type<tc>, window_params = [{transform_indices = @transform_0, window_bounds = array<i64: 8, 2432>}, {pipeline_mode = #tpu.pipeline_mode<synchronous>, transform_indices = @transform_1, window_bounds = array<i64: 2432, 512>}, {pipeline_mode = #tpu.pipeline_mode<synchronous>, transform_indices = @transform_2, window_bounds = array<i64: 1, 512>}, {pipeline_mode = #tpu.pipeline_mode<synchronous>, transform_indices = @transform_3, window_bounds = array<i64: 512, 128>}, {pipeline_mode = #tpu.pipeline_mode<synchronous>, transform_indices = @transform_4, window_bounds = array<i64: 512, 128>}, {pipeline_mode = #tpu.pipeline_mode<synchronous>, transform_indices = @transform_5, window_bounds = array<i64: 1, 128>}, {pipeline_mode = #tpu.pipeline_mode<synchronous>, transform_indices = @transform_6, window_bounds = array<i64: 1, 128>}, {transform_indices = @transform_7, window_bounds = array<i64: 8, 128>}, {transform_indices = @transform_8, window_bounds = array<i64: 8, 128>}, {transform_indices = @transform_9, window_bounds = array<i64: 1, 8, 128>}]} {
    %c0 = arith.constant 0 : index
    %c0_0 = arith.constant 0 : index
    %0 = vector.load %arg1[%c0, %c0_0] : memref<8x2432xf32, #tpu.memory_space<vmem>>, vector<8x2432xf32>
    %c0_1 = arith.constant 0 : index
    %c0_2 = arith.constant 0 : index
    %1 = vector.load %arg2[%c0_1, %c0_2] : memref<2432x512xf32, #tpu.memory_space<vmem>>, vector<2432x512xf32>
    %cst = arith.constant dense<0.000000e+00> : vector<8x512xf32>
    %2 = tpu.matmul %0, %1, %cst {dimension_numbers = #tpu.dot_dimension_numbers<[1], [0], [0], [1], [0, 0, 1, 1], [], []>} : vector<8x2432xf32>, vector<2432x512xf32>, vector<8x512xf32> -> vector<8x512xf32>
    %c0_3 = arith.constant 0 : index
    %c0_4 = arith.constant 0 : index
    %3 = vector.load %arg3[%c0_3, %c0_4] : memref<1x512xf32, #tpu.memory_space<vmem>>, vector<1x512xf32>
    %4 = vector.broadcast %3 : vector<1x512xf32> to vector<8x512xf32>
    %5 = arith.addf %2, %4 : vector<8x512xf32>
    %cst_5 = arith.constant 0.000000e+00 : f32
    %6 = vector.broadcast %cst_5 : f32 to vector<8x512xf32>
    %7 = arith.maximumf %5, %6 : vector<8x512xf32>
    %c0_6 = arith.constant 0 : index
    %c0_7 = arith.constant 0 : index
    %8 = vector.load %arg4[%c0_6, %c0_7] : memref<512x128xf32, #tpu.memory_space<vmem>>, vector<512x128xf32>
    %cst_8 = arith.constant dense<0.000000e+00> : vector<8x128xf32>
    %9 = tpu.matmul %7, %8, %cst_8 {dimension_numbers = #tpu.dot_dimension_numbers<[1], [0], [0], [1], [0, 0, 1, 1], [], []>} : vector<8x512xf32>, vector<512x128xf32>, vector<8x128xf32> -> vector<8x128xf32>
    %c0_9 = arith.constant 0 : index
    %c0_10 = arith.constant 0 : index
    %10 = vector.load %arg6[%c0_9, %c0_10] : memref<1x128xf32, #tpu.memory_space<vmem>>, vector<1x128xf32>
    %11 = vector.broadcast %10 : vector<1x128xf32> to vector<8x128xf32>
    %12 = arith.addf %9, %11 : vector<8x128xf32>
    %c0_11 = arith.constant 0 : index
    %c0_12 = arith.constant 0 : index
    %13 = vector.load %arg5[%c0_11, %c0_12] : memref<512x128xf32, #tpu.memory_space<vmem>>, vector<512x128xf32>
    %cst_13 = arith.constant dense<0.000000e+00> : vector<8x128xf32>
    %14 = tpu.matmul %7, %13, %cst_13 {dimension_numbers = #tpu.dot_dimension_numbers<[1], [0], [0], [1], [0, 0, 1, 1], [], []>} : vector<8x512xf32>, vector<512x128xf32>, vector<8x128xf32> -> vector<8x128xf32>
    %c0_14 = arith.constant 0 : index
    %c0_15 = arith.constant 0 : index
    %15 = vector.load %arg7[%c0_14, %c0_15] : memref<1x128xf32, #tpu.memory_space<vmem>>, vector<1x128xf32>
    %16 = vector.broadcast %15 : vector<1x128xf32> to vector<8x128xf32>
    %17 = arith.addf %14, %16 : vector<8x128xf32>
    %18 = tpu.iota {dimensions = array<i32: 0>} : vector<8x128xi32>
    %c8_i32 = arith.constant 8 : i32
    %19 = arith.muli %arg0, %c8_i32 : i32
    %20 = vector.broadcast %19 : i32 to vector<8x128xi32>
    %21 = arith.addi %18, %20 : vector<8x128xi32>
    %c2_i32 = arith.constant 2 : i32
    %22 = vector.broadcast %c2_i32 : i32 to vector<8x128xi32>
    %23 = arith.cmpi slt, %21, %22 : vector<8x128xi32>
    %cst_16 = arith.constant 1.000000e+00 : f32
    %24 = vector.broadcast %cst_16 : f32 to vector<8x128xf32>
    %25 = arith.addf %24, %17 : vector<8x128xf32>
    %26 = arith.mulf %12, %12 : vector<8x128xf32>
    %27 = arith.subf %25, %26 : vector<8x128xf32>
    %28 = math.exp %17 : vector<8x128xf32>
    %29 = arith.subf %27, %28 : vector<8x128xf32>
    %cst_17 = arith.constant 0.000000e+00 : f32
    %30 = vector.broadcast %cst_17 : f32 to vector<8x128xf32>
    %31 = arith.select %23, %29, %30 : vector<8x128xi1>, vector<8x128xf32>
    %32 = vector.shape_cast %31 : vector<8x128xf32> to vector<1x8x128xf32>
    %cst_18 = arith.constant dense<0.000000e+00> : vector<1xf32>
    %33 = vector.multi_reduction <add>, %32, %cst_18 [1, 2] : vector<1x8x128xf32> to vector<1xf32>
    %34 = vector.shape_cast %33 : vector<1xf32> to vector<1x1x1xf32>
    %35 = vector.extract %34[0, 0, 0] : f32 from vector<1x1x1xf32>
    %cst_19 = arith.constant -5.000000e-01 : f32
    %36 = arith.mulf %cst_19, %35 : f32
    %37 = vector.broadcast %36 : f32 to vector<1x8x128xf32>
    %c0_20 = arith.constant 0 : index
    %c0_21 = arith.constant 0 : index
    %c0_22 = arith.constant 0 : index
    %38 = vector.load %arg10[%c0_20, %c0_21, %c0_22] : memref<1x8x128xf32, #tpu.memory_space<vmem>>, vector<1x8x128xf32>
    tpu.vector_store %arg10[%c0_20, %c0_21, %c0_22], %37 {strides = array<i32>} : memref<1x8x128xf32, #tpu.memory_space<vmem>>, vector<1x8x128xf32>,
    %cst_23 = arith.constant 5.000000e-01 : f32
    %39 = vector.broadcast %cst_23 : f32 to vector<8x128xf32>
    %40 = arith.mulf %17, %39 : vector<8x128xf32>
    %41 = math.exp %40 : vector<8x128xf32>
    %c0_24 = arith.constant 0 : index
    %c0_25 = arith.constant 0 : index
    %42 = vector.load %arg8[%c0_24, %c0_25] : memref<8x128xf32, #tpu.memory_space<vmem>>, vector<8x128xf32>
    %43 = arith.mulf %41, %42 : vector<8x128xf32>
    %44 = arith.addf %12, %43 : vector<8x128xf32>
    %c0_26 = arith.constant 0 : index
    %c0_27 = arith.constant 0 : index
    %45 = vector.load %arg9[%c0_26, %c0_27] : memref<8x128xf32, #tpu.memory_space<vmem>>, vector<8x128xf32>
    tpu.vector_store %arg9[%c0_26, %c0_27], %44 {strides = array<i32>} : memref<8x128xf32, #tpu.memory_space<vmem>>, vector<8x128xf32>,
    return
  }
  func.func @transform_0(%arg0: i32) -> (i32, i32) {
    %c0_i32 = arith.constant 0 : i32
    %c0_i32_0 = arith.constant 0 : i32
    return %arg0, %c0_i32 : i32, i32
  }
  func.func @transform_1(%arg0: i32) -> (i32, i32) {
    %c0_i32 = arith.constant 0 : i32
    %c0_i32_0 = arith.constant 0 : i32
    %c0_i32_1 = arith.constant 0 : i32
    return %c0_i32, %c0_i32_0 : i32, i32
  }
  func.func @transform_2(%arg0: i32) -> (i32, i32) {
    %c0_i32 = arith.constant 0 : i32
    %c0_i32_0 = arith.constant 0 : i32
    %c0_i32_1 = arith.constant 0 : i32
    return %c0_i32, %c0_i32_0 : i32, i32
  }
  func.func @transform_3(%arg0: i32) -> (i32, i32) {
    %c0_i32 = arith.constant 0 : i32
    %c0_i32_0 = arith.constant 0 : i32
    %c0_i32_1 = arith.constant 0 : i32
    return %c0_i32, %c0_i32_0 : i32, i32
  }
  func.func @transform_4(%arg0: i32) -> (i32, i32) {
    %c0_i32 = arith.constant 0 : i32
    %c0_i32_0 = arith.constant 0 : i32
    %c0_i32_1 = arith.constant 0 : i32
    return %c0_i32, %c0_i32_0 : i32, i32
  }
  func.func @transform_5(%arg0: i32) -> (i32, i32) {
    %c0_i32 = arith.constant 0 : i32
    %c0_i32_0 = arith.constant 0 : i32
    %c0_i32_1 = arith.constant 0 : i32
    return %c0_i32, %c0_i32_0 : i32, i32
  }
  func.func @transform_6(%arg0: i32) -> (i32, i32) {
    %c0_i32 = arith.constant 0 : i32
    %c0_i32_0 = arith.constant 0 : i32
    %c0_i32_1 = arith.constant 0 : i32
    return %c0_i32, %c0_i32_0 : i32, i32
  }
  func.func @transform_7(%arg0: i32) -> (i32, i32) {
    %c0_i32 = arith.constant 0 : i32
    %c0_i32_0 = arith.constant 0 : i32
    return %arg0, %c0_i32 : i32, i32
  }
  func.func @transform_8(%arg0: i32) -> (i32, i32) {
    %c0_i32 = arith.constant 0 : i32
    %c0_i32_0 = arith.constant 0 : i32
    return %arg0, %c0_i32 : i32, i32
  }
  func.func @transform_9(%arg0: i32) -> (i32, i32, i32) {
    %c0_i32 = arith.constant 0 : i32
    %c0_i32_0 = arith.constant 0 : i32
    %c0_i32_1 = arith.constant 0 : i32
    return %arg0, %c0_i32, %c0_i32_0 : i32, i32, i32
  }
}

</mosaic_0001>

<bundles_post_ra>
// kernel: tpu_custom_call.1
= control target key start
LH: loop header
LB: loop body
LE: loop exit
PB: predicated region body
PF: predicated region fallthrough
CT: control target
= control target key end

     0   :  { %15 = vsyncpa [#allocation3], 0  ;;  %s5300_s0 = inlined_call_operand.hbm [shape: f32[8,2432], index: 0, kind: input, shape index: {}]   ;;  %s5301_s1 = inlined_call_operand.hbm [shape: f32[2432,512], index: 1, kind: input, shape index: {}]   ;;  %s5302_s2 = inlined_call_operand.hbm [shape: f32[1,512], index: 2, kind: input, shape index: {}]   ;;  %s5303_s3 = inlined_call_operand.hbm [shape: f32[512,128], index: 3, kind: input, shape index: {}]   ;;  %s5304_s4 = inlined_call_operand.hbm [shape: f32[512,128], index: 4, kind: input, shape index: {}]   ;;  %s5305_s5 = inlined_call_operand.hbm [shape: f32[1,128], index: 5, kind: input, shape index: {}]   ;;  %s5306_s6 = inlined_call_operand.hbm [shape: f32[1,128], index: 6, kind: input, shape index: {}]   ;;  %s5307_s7 = inlined_call_operand.hbm [shape: f32[8,128], index: 7, kind: input, shape index: {}]   ;;  %s5308_s8 = inlined_call_operand.hbm [shape: f32[8,128], index: 8, kind: output, shape index: {0}]   ;;  %s5309_s9 = inlined_call_operand.hbm [shape: f32[1,8,128], index: 9, kind: output, shape index: {1}]  }
   0x1   :  { %16 = vsyncpa [#allocation6], 0 }
   0x2   :  { %17 = vsyncpa [#allocation9], 0 }
   0x3   :  { %18 = vsyncpa [#allocation12], 0 }
   0x4   :  { %19 = vsyncpa [#allocation15], 0 }
   0x5   :  { %20 = vsyncpa [#allocation4], 0 }
   0x6   :  { %21 = vsyncpa [#allocation18], 0  ;;  %s5081_s30 = smov [#allocation5]   ;;  %s4847_s13 = scalar_lea.hbm %s5301_s1, 155648 }
   0x7   :  { %s37_s10 = sshll.u32 %s5081_s30, 4  ;;  %p4848_p0 = scmp.ne.s32.totalorder %s5301_s1, %s4847_s13  ;;  %s38_s10 = int_to_ptr.vmem [resolvable:$true] %s37_s10 }
   0x8   :  { %p4851_p1 = scmp.lt.u32.totalorder %s4847_s13, %s5301_s1 }
   0xa   :  { %p4853_p2 = pnand %p4851_p1, %p4848_p0 }
   0xc   :  { %4856 = shalt.err (!%p4853_p2)
}
   0xd   :  { %s4857_s18 = scalar_lea.vmem %s38_s10, 155648  ;;  %p4862_p4 = scmp.lt.s32.totalorder %s38_s10, %s38_s10 }
   0xe   :  { %p4858_p3 = scmp.ne.s32.totalorder %s38_s10, %s4857_s18  ;;  %p4863_p5 = scmp.lt.s32.totalorder %s4857_s18, %s4857_s18 }
  0x10   :  { %p4864_p6 = por %p4863_p5, %p4862_p4 }
  0x12   :  { %p4865_p7 = pnand %p4864_p6, %p4858_p3 }
  0x14   :  { %4868 = shalt.err (!%p4865_p7)
}
  0x15   :  { %s5082_s19 = smov 512   ;;  %s5083_s20 = smov 32  }
  0x16   :  { %43 = dma.hbm_to_vmem [thread:$0]  %s5301_s1, 155648, %s38_s10, [#allocation6], %s5082_s19, %s5082_s19, %s5083_s20  }
  0x17   :  { %s5084_s23 = smov [#allocation8]   ;;  %s4869_s27 = scalar_lea.hbm %s5303_s3, 8192 }
  0x18   :  { %s59_s24 = sshll.u32 %s5084_s23, 4  ;;  %p4870_p8 = scmp.ne.s32.totalorder %s5303_s3, %s4869_s27  ;;  %s60_s24 = int_to_ptr.vmem [resolvable:$true] %s59_s24 }
  0x19   :  { %p4873_p9 = scmp.lt.u32.totalorder %s4869_s27, %s5303_s3 }
  0x1b   :  { %p4875_p10 = pnand %p4873_p9, %p4870_p8 }
  0x1d   :  { %4878 = shalt.err (!%p4875_p10)
}
  0x1e   :  { %s4879_s12 = scalar_lea.vmem %s60_s24, 8192  ;;  %p4884_p12 = scmp.lt.s32.totalorder %s60_s24, %s60_s24 }
  0x1f   :  { %p4880_p11 = scmp.ne.s32.totalorder %s60_s24, %s4879_s12  ;;  %p4885_p13 = scmp.lt.s32.totalorder %s4879_s12, %s4879_s12 }
  0x21   :  { %p4886_p0 = por %p4885_p13, %p4884_p12 }
  0x23   :  { %p4887_p1 = pnand %p4886_p0, %p4880_p11 }
  0x25   :  { %4890 = shalt.err (!%p4887_p1)
}
  0x26   :  { %s5085_s1 = smov 128   ;;  %s5086_s10 = smov 8  }
  0x27   :  { %65 = dma.hbm_to_vmem [thread:$0]  %s5303_s3, 8192, %s60_s24, [#allocation9], %s5085_s1, %s5085_s1, %s5086_s10  }
  0x28   :  { %s5087_s15 = smov [#allocation11]   ;;  %s5088_s17 = smov [#allocation2]  }
  0x29   :  { %s84_s16 = sshll.u32 %s5087_s15, 4  ;;  %s28_s18 = sshll.u32 %s5088_s17, 4  ;;  %s85_s16 = int_to_ptr.vmem [resolvable:$true] %s84_s16  ;;  %s29_s18 = int_to_ptr.vmem [resolvable:$true] %s28_s18 }
  0x2a   :  { %s4891_s21 = scalar_lea.hbm %s5305_s5, 16 }
  0x2b   :  { %p4892_p2 = scmp.ne.s32.totalorder %s5305_s5, %s4891_s21  ;;  %p4895_p3 = scmp.lt.u32.totalorder %s4891_s21, %s5305_s5 }
  0x2d   :  { %p4897_p4 = pnand %p4895_p3, %p4892_p2 }
  0x2f   :  { %4900 = shalt.err (!%p4897_p4)
}
  0x30   :  { %s4901_s3 = scalar_lea.vmem %s85_s16, 16  ;;  %s4905_s24 = scalar_lea.vmem %s85_s16, 32 }
  0x31   :  { %p4902_p5 = scmp.ne.s32.totalorder %s85_s16, %s4901_s3  ;;  %p4906_p6 = scmp.lt.s32.totalorder %s85_s16, %s85_s16 }
  0x32   :  { %p4907_p7 = scmp.lt.s32.totalorder %s4905_s24, %s4901_s3 }
  0x34   :  { %p4908_p8 = por %p4907_p7, %p4906_p6 }
  0x36   :  { %p4909_p9 = pnand %p4908_p8, %p4902_p5 }
  0x38   :  { %4912 = shalt.err (!%p4909_p9)
}
  0x39   :  { %87 = dma.hbm_to_vmem [thread:$0]  %s5305_s5, 16, %s85_s16, [#allocation12]  }
  0x3a   :  { %s4913_s11 = scalar_lea.hbm %s5300_s0, 2432 }
  0x3b   :  { %p4914_p10 = scmp.ne.s32.totalorder %s5300_s0, %s4913_s11  ;;  %p4917_p11 = scmp.lt.u32.totalorder %s4913_s11, %s5300_s0 }
  0x3d   :  { %p4919_p12 = pnand %p4917_p11, %p4914_p10 }
  0x3f   :  { %4922 = shalt.err (!%p4919_p12)
}
  0x40   :  { %s4923_s17 = scalar_lea.vmem %s29_s18, 2432  ;;  %p4928_p0 = scmp.lt.s32.totalorder %s29_s18, %s29_s18 }
  0x41   :  { %p4924_p13 = scmp.ne.s32.totalorder %s29_s18, %s4923_s17  ;;  %p4929_p1 = scmp.lt.s32.totalorder %s4923_s17, %s4923_s17 }
  0x43   :  { %p4930_p2 = por %p4929_p1, %p4928_p0 }
  0x45   :  { %p4931_p3 = pnand %p4930_p2, %p4924_p13 }
  0x47   :  { %4934 = shalt.err (!%p4931_p3)
}
  0x48   :  { %31 = dma.hbm_to_vmem [thread:$0]  %s5300_s0, 2432, %s29_s18, [#allocation3]  }
  0x49   :  { %s5089_s19 = smov [#allocation7]   ;;  %s5090_s21 = smov [#allocation10]  }
  0x4a   :  { %s50_s20 = sshll.u32 %s5089_s19, 4  ;;  %s71_s22 = sshll.u32 %s5090_s21, 4  ;;  %s51_s20 = int_to_ptr.vmem [resolvable:$true] %s50_s20  ;;  %s5197_s22 = int_to_ptr.vmem [resolvable:$true] %s71_s22 }
  0x4b   :  { %s4935_s26 = scalar_lea.hbm %s5302_s2, 64 }
  0x4c   :  { %p4936_p4 = scmp.ne.s32.totalorder %s5302_s2, %s4935_s26  ;;  %p4939_p5 = scmp.lt.u32.totalorder %s4935_s26, %s5302_s2 }
  0x4e   :  { %p4941_p6 = pnand %p4939_p5, %p4936_p4 }
  0x50   :  { %4944 = shalt.err (!%p4941_p6)
}
  0x51   :  { %s4945_s0 = scalar_lea.vmem %s51_s20, 64  ;;  %p4950_p8 = scmp.lt.s32.totalorder %s51_s20, %s51_s20 }
  0x52   :  { %p4946_p7 = scmp.ne.s32.totalorder %s51_s20, %s4945_s0  ;;  %p4951_p9 = scmp.lt.s32.totalorder %s4945_s0, %s4945_s0 }
  0x54   :  { %p4952_p10 = por %p4951_p9, %p4950_p8 }
  0x56   :  { %p4953_p11 = pnand %p4952_p10, %p4946_p7 }
  0x58   :  { %4956 = shalt.err (!%p4953_p11)
}
  0x59   :  { %53 = dma.hbm_to_vmem [thread:$0]  %s5302_s2, 64, %s51_s20, [#allocation6]  }
  0x5a   :  { %s4957_s12 = scalar_lea.hbm %s5304_s4, 8192 }
  0x5b   :  { %p4958_p12 = scmp.ne.s32.totalorder %s5304_s4, %s4957_s12  ;;  %p4961_p13 = scmp.lt.u32.totalorder %s4957_s12, %s5304_s4 }
  0x5d   :  { %p4963_p0 = pnand %p4961_p13, %p4958_p12 }
  0x5f   :  { %4966 = shalt.err (!%p4963_p0)
}
  0x60   :  { %s4967_s5 = scalar_lea.vmem %s5197_s22, 8192  ;;  %p4972_p2 = scmp.lt.s32.totalorder %s5197_s22, %s5197_s22 }
  0x61   :  { %p4968_p1 = scmp.ne.s32.totalorder %s5197_s22, %s4967_s5  ;;  %p4973_p3 = scmp.lt.s32.totalorder %s4967_s5, %s4967_s5 }
  0x63   :  { %p4974_p4 = por %p4973_p3, %p4972_p2 }
  0x65   :  { %p4975_p5 = pnand %p4974_p4, %p4968_p1 }
  0x67   :  { %4978 = shalt.err (!%p4975_p5)
}
  0x68   :  { %77 = dma.hbm_to_vmem [thread:$0]  %s5304_s4, 8192, %s5197_s22, [#allocation9], %s5085_s1, %s5085_s1, %s5086_s10  }
  0x69   :  { %s5091_s19 = smov [#allocation13]   ;;  %s5092_s21 = smov [#allocation14]  }
  0x6a   :  { %s94_s20 = sshll.u32 %s5091_s19, 4  ;;  %s104_s23 = sshll.u32 %s5092_s21, 4  ;;  %s95_s20 = int_to_ptr.vmem [resolvable:$true] %s94_s20  ;;  %s105_s23 = int_to_ptr.vmem [resolvable:$true] %s104_s23 }
  0x6b   :  { %s4979_s3 = scalar_lea.hbm %s5306_s6, 16 }
  0x6c   :  { %p4980_p6 = scmp.ne.s32.totalorder %s5306_s6, %s4979_s3  ;;  %p4983_p7 = scmp.lt.u32.totalorder %s4979_s3, %s5306_s6 }
  0x6e   :  { %p4985_p8 = pnand %p4983_p7, %p4980_p6 }
  0x70   :  { %4988 = shalt.err (!%p4985_p8)
}
  0x71   :  { %s4989_s4 = scalar_lea.vmem %s95_s20, 16  ;;  %s4993_s1 = scalar_lea.vmem %s95_s20, 32 }
  0x72   :  { %p4990_p9 = scmp.ne.s32.totalorder %s95_s20, %s4989_s4  ;;  %p4994_p10 = scmp.lt.s32.totalorder %s95_s20, %s95_s20 }
  0x73   :  { %p4995_p11 = scmp.lt.s32.totalorder %s4993_s1, %s4989_s4 }
  0x75   :  { %p4996_p12 = por %p4995_p11, %p4994_p10 }
  0x77   :  { %p4997_p13 = pnand %p4996_p12, %p4990_p9 }
  0x79   :  { %5000 = shalt.err (!%p4997_p13)
}
  0x7a   :  { %97 = dma.hbm_to_vmem [thread:$0]  %s5306_s6, 16, %s95_s20, [#allocation12]  }
  0x7b   :  { %s5001_s30 = scalar_lea.hbm %s5307_s7, 128 }
  0x7c   :  { %p5002_p0 = scmp.ne.s32.totalorder %s5307_s7, %s5001_s30  ;;  %p5005_p1 = scmp.lt.u32.totalorder %s5001_s30, %s5307_s7 }
  0x7e   :  { %p5007_p2 = pnand %p5005_p1, %p5002_p0 }
  0x80   :  { %5010 = shalt.err (!%p5007_p2)
}
  0x81   :  { %s5011_s15 = scalar_lea.vmem %s105_s23, 128  ;;  %p5016_p4 = scmp.lt.s32.totalorder %s105_s23, %s105_s23 }
  0x82   :  { %p5012_p3 = scmp.ne.s32.totalorder %s105_s23, %s5011_s15  ;;  %p5017_p5 = scmp.lt.s32.totalorder %s5011_s15, %s5011_s15 }
  0x84   :  { %p5018_p6 = por %p5017_p5, %p5016_p4 }
  0x86   :  { %p5019_p7 = pnand %p5018_p6, %p5012_p3 }
  0x88   :  { %5022 = shalt.err (!%p5019_p7)
}
  0x89   :  { %107 = dma.hbm_to_vmem [thread:$0]  %s5307_s7, 128, %s105_s23, [#allocation15]  }
  0x8a   :  { %5067 = dma.done.wait [#allocation3], 2432  }
  0x8b   :  { %5068 = vsyncadd [#allocation3], 4294964864 }
  0x8c   :  { %5069 = dma.done.wait [#allocation6], 155712  }
  0x8d   :  { %5070 = vsyncadd [#allocation6], 4294811584 }
  0x8e   :  { %5071 = dma.done.wait [#allocation9], 16384  }
  0x8f   :  { %5072 = vsyncadd [#allocation9], 4294950912 }
  0x90   :  { %5073 = dma.done.wait [#allocation12], 32  }
  0x91   :  { %5074 = vsyncadd [#allocation12], 4294967264 }
  0x92   :  { %5075 = dma.done.wait [#allocation15], 128  }
  0x93   :  { %5076 = vsyncadd [#allocation15], 4294967168  ;;  %v152_v0 = vld [vmem:[#allocation5 + $0x8] sm:$0xff]  ;;  %v154_v2 = vld [vmem:[#allocation5 + $0x18] sm:$0xff]  ;;  %s5094_s7 = smov [#allocation16]  }
  0x94   :  { %v156_v1 = vld [vmem:[#allocation5 + $0x28] sm:$0xff]  ;;  %v158_v4 = vld [vmem:[#allocation5 + $0x38] sm:$0xff]  ;;  %v151_v5 = vld [vmem:[#allocation5] sm:$0xff]  ;;  %s3273_s5 = sshll.u32 %s5094_s7, 4  ;;  %s3274_s5 = int_to_ptr.vmem [resolvable:$true] %s3273_s5 }
  0x95   :  { %v3442_v3 = vpack.c.bf16 %v156_v1, %v152_v0  ;;  %v155_v6 = vld [vmem:[#allocation5 + $0x20] sm:$0xff]  ;;  %v4050_v7 = vpack.c.bf16 %v158_v4, %v154_v2  ;;  %v153_v9 = vld [vmem:[#allocation5 + $0x10] sm:$0xff]  ;;  %v160_v11 = vld [vmem:[#allocation5 + $0x48] sm:$0xff]  ;;  %s5023_s2 = scalar_lea.vmem %s3274_s5, 128  ;;  %p5028_p9 = scmp.lt.s32.totalorder %s3274_s5, %s3274_s5 }
  0x96   :  { %v3444_v8 = vpack.c.bf16 %v155_v6, %v151_v5  ;;  %v157_v10 = vld [vmem:[#allocation5 + $0x30] sm:$0xff]  ;;  %v164_v13 = vld [vmem:[#allocation5 + $0x68] sm:$0xff]  ;;  %v162_v14 = vld [vmem:[#allocation5 + $0x58] sm:$0xff]  ;;  %p5024_p8 = scmp.ne.s32.totalorder %s3274_s5, %s5023_s2  ;;  %p5029_p10 = scmp.lt.s32.totalorder %s5023_s2, %s5023_s2 }
  0x97   :  { %3443 = vmatprep.subr.bf16.mxu0 %v3442_v3  ;;  %v4052_v12 = vpack.c.bf16 %v157_v10, %v153_v9  ;;  %v166_v15 = vld [vmem:[#allocation5 + $0x78] sm:$0xff]  ;;  %4051 = vmatprep.subr.bf16.mxu1 %v4050_v7  ;;  %v3446_v16 = vpack.c.bf16 %v164_v13, %v160_v11  ;;  %v159_v18 = vld [vmem:[#allocation5 + $0x40] sm:$0xff]  ;;  %v161_v20 = vld [vmem:[#allocation5 + $0x50] sm:$0xff] }
  0x98   :  { %3445 = vmatpush1.bf16.msra.mxu0 %v3444_v8  ;;  %v4054_v17 = vpack.c.bf16 %v166_v15, %v162_v14  ;;  %v163_v19 = vld [vmem:[#allocation5 + $0x60] sm:$0xff]  ;;  %v165_v22 = vld [vmem:[#allocation5 + $0x70] sm:$0xff]  ;;  %v168_v23 = vld [vmem:[#allocation5 + $0x88] sm:$0xff]  ;;  %p5030_p11 = por %p5029_p10, %p5028_p9 }
  0x99   :  { %4053 = vmatpush1.bf16.msra.mxu1 %v4052_v12  ;;  %v3448_v21 = vpack.c.bf16 %v163_v19, %v159_v18  ;;  %v172_v24 = vld [vmem:[#allocation5 + $0xa8] sm:$0xff]  ;;  %3447 = vmatprep.subr.bf16.mxu0 %v3446_v16  ;;  %v4056_v25 = vpack.c.bf16 %v165_v22, %v161_v20  ;;  %v170_v27 = vld [vmem:[#allocation5 + $0x98] sm:$0xff]  ;;  %v167_v29 = vld [vmem:[#allocation5 + $0x80] sm:$0xff] }
  0x9a   :  { %4055 = vmatprep.subr.bf16.mxu1 %v4054_v17  ;;  %v3450_v26 = vpack.c.bf16 %v172_v24, %v168_v23  ;;  %v174_v28 = vld [vmem:[#allocation5 + $0xb8] sm:$0xff]  ;;  %v171_v31 = vld [vmem:[#allocation5 + $0xa0] sm:$0xff]  ;;  %v169_v32 = vld [vmem:[#allocation5 + $0x90] sm:$0xff]  ;;  %p5031_p12 = pnand %p5030_p11, %p5024_p8 }
  0x9b   :  { %v4058_v30 = vpack.c.bf16 %v174_v28, %v170_v27  ;;  %v173_v33 = vld [vmem:[#allocation5 + $0xb0] sm:$0xff]  ;;  %v3452_v34 = vpack.c.bf16 %v171_v31, %v167_v29  ;;  %v176_v35 = vld [vmem:[#allocation5 + $0xc8] sm:$0xff]  ;;  %v178_v37 = vld [vmem:[#allocation5 + $0xd8] sm:$0xff] }
  0x9c   :  { %3449 = vmatpush1.bf16.msra.mxu0 %v3448_v21  ;;  %v180_v36 = vld [vmem:[#allocation5 + $0xe8] sm:$0xff]  ;;  %v4060_v38 = vpack.c.bf16 %v173_v33, %v169_v32  ;;  %v182_v40 = vld [vmem:[#allocation5 + $0xf8] sm:$0xff]  ;;  %v175_v41 = vld [vmem:[#allocation5 + $0xc0] sm:$0xff] }
  0x9d   :  { %4057 = vmatpush1.bf16.msra.mxu1 %v4056_v25  ;;  %3451 = vmatprep.subr.bf16.mxu0 %v3450_v26  ;;  %v3454_v39 = vpack.c.bf16 %v180_v36, %v176_v35  ;;  %v179_v42 = vld [vmem:[#allocation5 + $0xe0] sm:$0xff]  ;;  %v4062_v43 = vpack.c.bf16 %v182_v40, %v178_v37  ;;  %v177_v44 = vld [vmem:[#allocation5 + $0xd0] sm:$0xff]  ;;  %v184_v46 = vld [vmem:[#allocation5 + $0x108] sm:$0xff] }
  0x9e   :  { %4059 = vmatprep.subr.bf16.mxu1 %v4058_v30  ;;  %v181_v45 = vld [vmem:[#allocation5 + $0xf0] sm:$0xff]  ;;  %v188_v47 = vld [vmem:[#allocation5 + $0x128] sm:$0xff]  ;;  %v186_v48 = vld [vmem:[#allocation5 + $0x118] sm:$0xff]  ;;  %v3456_v50 = vpack.c.bf16 %v179_v42, %v175_v41 }
  0x9f   :  { %v190_v49 = vld [vmem:[#allocation5 + $0x138] sm:$0xff]  ;;  %v4064_v51 = vpack.c.bf16 %v181_v45, %v177_v44  ;;  %v3458_v52 = vpack.c.bf16 %v188_v47, %v184_v46  ;;  %v183_v53 = vld [vmem:[#allocation5 + $0x100] sm:$0xff]  ;;  %v185_v55 = vld [vmem:[#allocation5 + $0x110] sm:$0xff] }
  0xa0   :  { %3453 = vmatpush1.bf16.msra.mxu0 %v3452_v34  ;;  %v187_v54 = vld [vmem:[#allocation5 + $0x120] sm:$0xff]  ;;  %v4066_v56 = vpack.c.bf16 %v190_v49, %v186_v48  ;;  %v189_v57 = vld [vmem:[#allocation5 + $0x130] sm:$0xff]  ;;  %v192_v58 = vld [vmem:[#allocation5 + $0x148] sm:$0xff] }
  0xa1   :  { %4061 = vmatpush1.bf16.msra.mxu1 %v4060_v38  ;;  %3455 = vmatprep.subr.bf16.mxu0 %v3454_v39  ;;  %v196_v59 = vld [vmem:[#allocation5 + $0x168] sm:$0xff]  ;;  %v194_v60 = vld [vmem:[#allocation5 + $0x158] sm:$0xff]  ;;  %v3460_v62 = vpack.c.bf16 %v187_v54, %v183_v53  ;;  %v4068_v63 = vpack.c.bf16 %v189_v57, %v185_v55  ;;  %v191_v1 = vld [vmem:[#allocation5 + $0x140] sm:$0xff] }
  0xa2   :  { %4063 = vmatprep.subr.bf16.mxu1 %v4062_v43  ;;  %v198_v61 = vld [vmem:[#allocation5 + $0x178] sm:$0xff]  ;;  %v3462_v0 = vpack.c.bf16 %v196_v59, %v192_v58  ;;  %v195_v2 = vld [vmem:[#allocation5 + $0x160] sm:$0xff]  ;;  %v193_v3 = vld [vmem:[#allocation5 + $0x150] sm:$0xff] }
  0xa3   :  { %v4070_v4 = vpack.c.bf16 %v198_v61, %v194_v60  ;;  %v197_v5 = vld [vmem:[#allocation5 + $0x170] sm:$0xff]  ;;  %v200_v6 = vld [vmem:[#allocation5 + $0x188] sm:$0xff]  ;;  %v202_v8 = vld [vmem:[#allocation5 + $0x198] sm:$0xff]  ;;  %v3464_v10 = vpack.c.bf16 %v195_v2, %v191_v1 }
  0xa4   :  { %3457 = vmatpush1.bf16.msra.mxu0 %v3456_v50  ;;  %v204_v7 = vld [vmem:[#allocation5 + $0x1a8] sm:$0xff]  ;;  %v206_v9 = vld [vmem:[#allocation5 + $0x1b8] sm:$0xff]  ;;  %v4072_v11 = vpack.c.bf16 %v197_v5, %v193_v3  ;;  %v199_v13 = vld [vmem:[#allocation5 + $0x180] sm:$0xff] }
  0xa5   :  { %4065 = vmatpush1.bf16.msra.mxu1 %v4064_v51  ;;  %3459 = vmatprep.subr.bf16.mxu0 %v3458_v52  ;;  %v3466_v12 = vpack.c.bf16 %v204_v7, %v200_v6  ;;  %v203_v14 = vld [vmem:[#allocation5 + $0x1a0] sm:$0xff]  ;;  %v201_v15 = vld [vmem:[#allocation5 + $0x190] sm:$0xff]  ;;  %v4074_v16 = vpack.c.bf16 %v206_v9, %v202_v8  ;;  %v208_v18 = vld [vmem:[#allocation5 + $0x1c8] sm:$0xff] }
  0xa6   :  { %4067 = vmatprep.subr.bf16.mxu1 %v4066_v56  ;;  %v205_v17 = vld [vmem:[#allocation5 + $0x1b0] sm:$0xff]  ;;  %v212_v19 = vld [vmem:[#allocation5 + $0x1e8] sm:$0xff]  ;;  %v210_v20 = vld [vmem:[#allocation5 + $0x1d8] sm:$0xff]  ;;  %v3468_v22 = vpack.c.bf16 %v203_v14, %v199_v13 }
  0xa7   :  { %v214_v21 = vld [vmem:[#allocation5 + $0x1f8] sm:$0xff]  ;;  %v4076_v23 = vpack.c.bf16 %v205_v17, %v201_v15  ;;  %v3470_v24 = vpack.c.bf16 %v212_v19, %v208_v18  ;;  %v207_v25 = vld [vmem:[#allocation5 + $0x1c0] sm:$0xff]  ;;  %v209_v27 = vld [vmem:[#allocation5 + $0x1d0] sm:$0xff] }
  0xa8   :  { %3461 = vmatpush1.bf16.msra.mxu0 %v3460_v62  ;;  %v211_v26 = vld [vmem:[#allocation5 + $0x1e0] sm:$0xff]  ;;  %v4078_v28 = vpack.c.bf16 %v214_v21, %v210_v20  ;;  %v213_v29 = vld [vmem:[#allocation5 + $0x1f0] sm:$0xff]  ;;  %v216_v30 = vld [vmem:[#allocation5 + $0x208] sm:$0xff] }
  0xa9   :  { %4069 = vmatpush1.bf16.msra.mxu1 %v4068_v63  ;;  %3463 = vmatprep.subr.bf16.mxu0 %v3462_v0  ;;  %v220_v31 = vld [vmem:[#allocation5 + $0x228] sm:$0xff]  ;;  %v218_v32 = vld [vmem:[#allocation5 + $0x218] sm:$0xff]  ;;  %v3472_v34 = vpack.c.bf16 %v211_v26, %v207_v25  ;;  %v4080_v35 = vpack.c.bf16 %v213_v29, %v209_v27  ;;  %v215_v37 = vld [vmem:[#allocation5 + $0x200] sm:$0xff] }
  0xaa   :  { %4071 = vmatprep.subr.bf16.mxu1 %v4070_v4  ;;  %v222_v33 = vld [vmem:[#allocation5 + $0x238] sm:$0xff]  ;;  %v3474_v36 = vpack.c.bf16 %v220_v31, %v216_v30  ;;  %v219_v38 = vld [vmem:[#allocation5 + $0x220] sm:$0xff]  ;;  %v217_v39 = vld [vmem:[#allocation5 + $0x210] sm:$0xff] }
  0xab   :  { %v4082_v40 = vpack.c.bf16 %v222_v33, %v218_v32  ;;  %v221_v41 = vld [vmem:[#allocation5 + $0x230] sm:$0xff]  ;;  %v224_v42 = vld [vmem:[#allocation5 + $0x248] sm:$0xff]  ;;  %v226_v44 = vld [vmem:[#allocation5 + $0x258] sm:$0xff]  ;;  %v3476_v46 = vpack.c.bf16 %v219_v38, %v215_v37 }
  0xac   :  { %3465 = vmatpush1.bf16.msra.mxu0 %v3464_v10  ;;  %v228_v43 = vld [vmem:[#allocation5 + $0x268] sm:$0xff]  ;;  %v230_v45 = vld [vmem:[#allocation5 + $0x278] sm:$0xff]  ;;  %v4084_v47 = vpack.c.bf16 %v221_v41, %v217_v39  ;;  %v223_v49 = vld [vmem:[#allocation5 + $0x240] sm:$0xff] }
  0xad   :  { %4073 = vmatpush1.bf16.msra.mxu1 %v4072_v11  ;;  %3467 = vmatprep.subr.bf16.mxu0 %v3466_v12  ;;  %v3478_v48 = vpack.c.bf16 %v228_v43, %v224_v42  ;;  %v227_v50 = vld [vmem:[#allocation5 + $0x260] sm:$0xff]  ;;  %v225_v51 = vld [vmem:[#allocation5 + $0x250] sm:$0xff]  ;;  %v4086_v52 = vpack.c.bf16 %v230_v45, %v226_v44  ;;  %v232_v54 = vld [vmem:[#allocation5 + $0x288] sm:$0xff] }
  0xae   :  { %4075 = vmatprep.subr.bf16.mxu1 %v4074_v16  ;;  %v229_v53 = vld [vmem:[#allocation5 + $0x270] sm:$0xff]  ;;  %v236_v55 = vld [vmem:[#allocation5 + $0x2a8] sm:$0xff]  ;;  %v234_v56 = vld [vmem:[#allocation5 + $0x298] sm:$0xff]  ;;  %v3480_v58 = vpack.c.bf16 %v227_v50, %v223_v49 }
  0xaf   :  { %v238_v57 = vld [vmem:[#allocation5 + $0x2b8] sm:$0xff]  ;;  %v4088_v59 = vpack.c.bf16 %v229_v53, %v225_v51  ;;  %v3482_v60 = vpack.c.bf16 %v236_v55, %v232_v54  ;;  %v231_v61 = vld [vmem:[#allocation5 + $0x280] sm:$0xff]  ;;  %v233_v63 = vld [vmem:[#allocation5 + $0x290] sm:$0xff] }
  0xb0   :  { %3469 = vmatpush1.bf16.msra.mxu0 %v3468_v22  ;;  %v235_v62 = vld [vmem:[#allocation5 + $0x2a0] sm:$0xff]  ;;  %v4090_v0 = vpack.c.bf16 %v238_v57, %v234_v56  ;;  %v237_v1 = vld [vmem:[#allocation5 + $0x2b0] sm:$0xff]  ;;  %v240_v2 = vld [vmem:[#allocation5 + $0x2c8] sm:$0xff] }
  0xb1   :  { %4077 = vmatpush1.bf16.msra.mxu1 %v4076_v23  ;;  %3471 = vmatprep.subr.bf16.mxu0 %v3470_v24  ;;  %v244_v3 = vld [vmem:[#allocation5 + $0x2e8] sm:$0xff]  ;;  %v242_v4 = vld [vmem:[#allocation5 + $0x2d8] sm:$0xff]  ;;  %v3484_v6 = vpack.c.bf16 %v235_v62, %v231_v61  ;;  %v239_v7 = vld [vmem:[#allocation5 + $0x2c0] sm:$0xff]  ;;  %v4092_v8 = vpack.c.bf16 %v237_v1, %v233_v63 }
  0xb2   :  { %4079 = vmatprep.subr.bf16.mxu1 %v4078_v28  ;;  %v246_v5 = vld [vmem:[#allocation5 + $0x2f8] sm:$0xff]  ;;  %v3486_v9 = vpack.c.bf16 %v244_v3, %v240_v2  ;;  %v243_v10 = vld [vmem:[#allocation5 + $0x2e0] sm:$0xff]  ;;  %v241_v11 = vld [vmem:[#allocation5 + $0x2d0] sm:$0xff] }
  0xb3   :  { %v245_v12 = vld [vmem:[#allocation5 + $0x2f0] sm:$0xff]  ;;  %v4094_v13 = vpack.c.bf16 %v246_v5, %v242_v4  ;;  %v248_v14 = vld [vmem:[#allocation5 + $0x308] sm:$0xff]  ;;  %v250_v17 = vld [vmem:[#allocation5 + $0x318] sm:$0xff]  ;;  %v3488_v19 = vpack.c.bf16 %v243_v10, %v239_v7 }
  0xb4   :  { %3473 = vmatpush1.bf16.msra.mxu0 %v3472_v34  ;;  %v252_v15 = vld [vmem:[#allocation5 + $0x328] sm:$0xff]  ;;  %v133_v16 = vld [vmem:[#allocation2 + $0x8] sm:$0xff]  ;;  %v254_v18 = vld [vmem:[#allocation5 + $0x338] sm:$0xff]  ;;  %v4096_v20 = vpack.c.bf16 %v245_v12, %v241_v11 }
  0xb5   :  { %4081 = vmatpush1.bf16.msra.mxu1 %v4080_v35  ;;  %3475 = vmatprep.subr.bf16.mxu0 %v3474_v36  ;;  %v3490_v21 = vpack.c.bf16 %v252_v15, %v248_v14  ;;  %v247_v22 = vld [vmem:[#allocation5 + $0x300] sm:$0xff]  ;;  %v249_v24 = vld [vmem:[#allocation5 + $0x310] sm:$0xff]  ;;  %v4098_v25 = vpack.c.bf16 %v254_v18, %v250_v17  ;;  %v256_v27 = vld [vmem:[#allocation5 + $0x348] sm:$0xff] }
  0xb6   :  { %4083 = vmatprep.subr.bf16.mxu1 %v4082_v40  ;;  %1453 = vmatprep.mubr.f32.mxu0 %v133_v16  ;;  %v251_v23 = vld [vmem:[#allocation5 + $0x320] sm:$0xff]  ;;  %v253_v26 = vld [vmem:[#allocation5 + $0x330] sm:$0xff]  ;;  %v260_v28 = vld [vmem:[#allocation5 + $0x368] sm:$0xff] }
  0xb7   :  { %2163 = vmatprep.mubr.f32.mxu1 %v133_v16  ;;  %v258_v29 = vld [vmem:[#allocation5 + $0x358] sm:$0xff]  ;;  %v3492_v31 = vpack.c.bf16 %v251_v23, %v247_v22  ;;  %v4100_v32 = vpack.c.bf16 %v253_v26, %v249_v24  ;;  %v3494_v33 = vpack.c.bf16 %v260_v28, %v256_v27  ;;  %v255_v34 = vld [vmem:[#allocation5 + $0x340] sm:$0xff]  ;;  %v257_v36 = vld [vmem:[#allocation5 + $0x350] sm:$0xff] }
  0xb8   :  { %3477 = vmatpush1.bf16.msra.mxu0 %v3476_v46  ;;  %v262_v30 = vld [vmem:[#allocation5 + $0x378] sm:$0xff]  ;;  %v259_v35 = vld [vmem:[#allocation5 + $0x360] sm:$0xff]  ;;  %v261_v38 = vld [vmem:[#allocation5 + $0x370] sm:$0xff] }
  0xb9   :  { %4085 = vmatpush1.bf16.msra.mxu1 %v4084_v47  ;;  %3479 = vmatprep.subr.bf16.mxu0 %v3478_v48  ;;  %v4102_v37 = vpack.c.bf16 %v262_v30, %v258_v29  ;;  %v264_v39 = vld [vmem:[#allocation5 + $0x388] sm:$0xff]  ;;  %v266_v41 = vld [vmem:[#allocation5 + $0x398] sm:$0xff]  ;;  %v3496_v43 = vpack.c.bf16 %v259_v35, %v255_v34  ;;  %v4104_v44 = vpack.c.bf16 %v261_v38, %v257_v36  ;;  %v263_v46 = vld [vmem:[#allocation5 + $0x380] sm:$0xff] }
  0xba   :  { %4087 = vmatprep.subr.bf16.mxu1 %v4086_v52  ;;  %v268_v40 = vld [vmem:[#allocation5 + $0x3a8] sm:$0xff]  ;;  %v270_v42 = vld [vmem:[#allocation5 + $0x3b8] sm:$0xff]  ;;  %v267_v47 = vld [vmem:[#allocation5 + $0x3a0] sm:$0xff] }
  0xbb   :  { %v3498_v45 = vpack.c.bf16 %v268_v40, %v264_v39  ;;  %v265_v48 = vld [vmem:[#allocation5 + $0x390] sm:$0xff]  ;;  %v4106_v49 = vpack.c.bf16 %v270_v42, %v266_v41  ;;  %v272_v51 = vld [vmem:[#allocation5 + $0x3c8] sm:$0xff]  ;;  %v274_v53 = vld [vmem:[#allocation5 + $0x3d8] sm:$0xff]  ;;  %v3500_v55 = vpack.c.bf16 %v267_v47, %v263_v46 }
  0xbc   :  { %3481 = vmatpush1.bf16.msra.mxu0 %v3480_v58  ;;  %v269_v50 = vld [vmem:[#allocation5 + $0x3b0] sm:$0xff]  ;;  %v276_v52 = vld [vmem:[#allocation5 + $0x3e8] sm:$0xff]  ;;  %v278_v54 = vld [vmem:[#allocation5 + $0x3f8] sm:$0xff] }
  0xbd   :  { %4089 = vmatpush1.bf16.msra.mxu1 %v4088_v59  ;;  %3483 = vmatprep.subr.bf16.mxu0 %v3482_v60  ;;  %v4108_v56 = vpack.c.bf16 %v269_v50, %v265_v48  ;;  %v3502_v57 = vpack.c.bf16 %v276_v52, %v272_v51  ;;  %v271_v58 = vld [vmem:[#allocation5 + $0x3c0] sm:$0xff]  ;;  %v273_v60 = vld [vmem:[#allocation5 + $0x3d0] sm:$0xff]  ;;  %v4110_v61 = vpack.c.bf16 %v278_v54, %v274_v53  ;;  %v280_v63 = vld [vmem:[#allocation5 + $0x408] sm:$0xff] }
  0xbe   :  { %4091 = vmatprep.subr.bf16.mxu1 %v4090_v0  ;;  %v275_v59 = vld [vmem:[#allocation5 + $0x3e0] sm:$0xff]  ;;  %v277_v62 = vld [vmem:[#allocation5 + $0x3f0] sm:$0xff]  ;;  %v284_v0 = vld [vmem:[#allocation5 + $0x428] sm:$0xff] }
  0xbf   :  { %v282_v1 = vld [vmem:[#allocation5 + $0x418] sm:$0xff]  ;;  %v3504_v3 = vpack.c.bf16 %v275_v59, %v271_v58  ;;  %v4112_v4 = vpack.c.bf16 %v277_v62, %v273_v60  ;;  %v3506_v5 = vpack.c.bf16 %v284_v0, %v280_v63  ;;  %v283_v7 = vld [vmem:[#allocation5 + $0x420] sm:$0xff]  ;;  %v285_v10 = vld [vmem:[#allocation5 + $0x430] sm:$0xff] }
  0xc0   :  { %3485 = vmatpush1.bf16.msra.mxu0 %v3484_v6  ;;  %v286_v2 = vld [vmem:[#allocation5 + $0x438] sm:$0xff]  ;;  %v279_v6 = vld [vmem:[#allocation5 + $0x400] sm:$0xff]  ;;  %v288_v11 = vld [vmem:[#allocation5 + $0x448] sm:$0xff] }
  0xc1   :  { %4093 = vmatpush1.bf16.msra.mxu1 %v4092_v8  ;;  %3487 = vmatprep.subr.bf16.mxu0 %v3486_v9  ;;  %v281_v8 = vld [vmem:[#allocation5 + $0x410] sm:$0xff]  ;;  %v4114_v9 = vpack.c.bf16 %v286_v2, %v282_v1  ;;  %v292_v12 = vld [vmem:[#allocation5 + $0x468] sm:$0xff]  ;;  %v294_v14 = vld [vmem:[#allocation5 + $0x478] sm:$0xff]  ;;  %v3508_v16 = vpack.c.bf16 %v283_v7, %v279_v6 }
  0xc2   :  { %4095 = vmatprep.subr.bf16.mxu1 %v4094_v13  ;;  %v290_v13 = vld [vmem:[#allocation5 + $0x458] sm:$0xff]  ;;  %v132_v15 = vld [vmem:[#allocation2] sm:$0xff]  ;;  %v4116_v17 = vpack.c.bf16 %v285_v10, %v281_v8  ;;  %v3510_v18 = vpack.c.bf16 %v292_v12, %v288_v11  ;;  %v293_v23 = vld [vmem:[#allocation5 + $0x470] sm:$0xff] }
  0xc3   :  { %v4118_v22 = vpack.c.bf16 %v294_v14, %v290_v13  ;;  %v296_v24 = vld [vmem:[#allocation5 + $0x488] sm:$0xff]  ;;  %v298_v26 = vld [vmem:[#allocation5 + $0x498] sm:$0xff]  ;;  %v301_v35 = vld [vmem:[#allocation5 + $0x4b0] sm:$0xff] }
  0xc4   :  { %3489 = vmatpush1.bf16.msra.mxu0 %v3488_v19  ;;  %v287_v19 = vld [vmem:[#allocation5 + $0x440] sm:$0xff]  ;;  %v302_v27 = vld [vmem:[#allocation5 + $0x4b8] sm:$0xff]  ;;  %v304_v36 = vld [vmem:[#allocation5 + $0x4c8] sm:$0xff] }
  0xc5   :  { %4097 = vmatpush1.bf16.msra.mxu1 %v4096_v20  ;;  %3491 = vmatprep.subr.bf16.mxu0 %v3490_v21  ;;  %v291_v20 = vld [vmem:[#allocation5 + $0x460] sm:$0xff]  ;;  %v289_v21 = vld [vmem:[#allocation5 + $0x450] sm:$0xff]  ;;  %v4122_v34 = vpack.c.bf16 %v302_v27, %v298_v26  ;;  %v306_v38 = vld [vmem:[#allocation5 + $0x4d8] sm:$0xff] }
  0xc6   :  { %4099 = vmatprep.subr.bf16.mxu1 %v4098_v25  ;;  %v300_v25 = vld [vmem:[#allocation5 + $0x4a8] sm:$0xff]  ;;  %v3512_v28 = vpack.c.bf16 %v291_v20, %v287_v19  ;;  %v4120_v29 = vpack.c.bf16 %v293_v23, %v289_v21  ;;  %v310_v39 = vld [vmem:[#allocation5 + $0x4f8] sm:$0xff]  ;;  %v309_v47 = vld [vmem:[#allocation5 + $0x4f0] sm:$0xff] }
  0xc7   :  { %v3514_v30 = vpack.c.bf16 %v300_v25, %v296_v24  ;;  %v4126_v46 = vpack.c.bf16 %v310_v39, %v306_v38  ;;  %v312_v48 = vld [vmem:[#allocation5 + $0x508] sm:$0xff]  ;;  %v314_v50 = vld [vmem:[#allocation5 + $0x518] sm:$0xff]  ;;  %v317_v59 = vld [vmem:[#allocation5 + $0x530] sm:$0xff] }
  0xc8   :  { %3493 = vmatpush1.bf16.msra.mxu0 %v3492_v31  ;;  %v295_v31 = vld [vmem:[#allocation5 + $0x480] sm:$0xff]  ;;  %v318_v51 = vld [vmem:[#allocation5 + $0x538] sm:$0xff]  ;;  %v320_v60 = vld [vmem:[#allocation5 + $0x548] sm:$0xff] }
  0xc9   :  { %4101 = vmatpush1.bf16.msra.mxu1 %v4100_v32  ;;  %3495 = vmatprep.subr.bf16.mxu0 %v3494_v33  ;;  %v299_v32 = vld [vmem:[#allocation5 + $0x4a0] sm:$0xff]  ;;  %v297_v33 = vld [vmem:[#allocation5 + $0x490] sm:$0xff]  ;;  %v4130_v58 = vpack.c.bf16 %v318_v51, %v314_v50  ;;  %v322_v62 = vld [vmem:[#allocation5 + $0x558] sm:$0xff] }
  0xca   :  { %4103 = vmatprep.subr.bf16.mxu1 %v4102_v37  ;;  %v308_v37 = vld [vmem:[#allocation5 + $0x4e8] sm:$0xff]  ;;  %v3516_v40 = vpack.c.bf16 %v299_v32, %v295_v31  ;;  %v4124_v41 = vpack.c.bf16 %v301_v35, %v297_v33  ;;  %v326_v63 = vld [vmem:[#allocation5 + $0x578] sm:$0xff]  ;;  %v325_v7 = vld [vmem:[#allocation5 + $0x570] sm:$0xff] }
  0xcb   :  { %v3518_v42 = vpack.c.bf16 %v308_v37, %v304_v36  ;;  %v4134_v6 = vpack.c.bf16 %v326_v63, %v322_v62  ;;  %v328_v8 = vld [vmem:[#allocation5 + $0x588] sm:$0xff]  ;;  %v330_v10 = vld [vmem:[#allocation5 + $0x598] sm:$0xff]  ;;  %v327_v13 = vld [vmem:[#allocation5 + $0x580] sm:$0xff] }
  0xcc   :  { %3497 = vmatpush1.bf16.msra.mxu0 %v3496_v43  ;;  %v303_v43 = vld [vmem:[#allocation5 + $0x4c0] sm:$0xff]  ;;  %v334_v11 = vld [vmem:[#allocation5 + $0x5b8] sm:$0xff]  ;;  %v336_v20 = vld [vmem:[#allocation5 + $0x5c8] sm:$0xff] }
  0xcd   :  { %4105 = vmatpush1.bf16.msra.mxu1 %v4104_v44  ;;  %3499 = vmatprep.subr.bf16.mxu0 %v3498_v45  ;;  %v307_v44 = vld [vmem:[#allocation5 + $0x4e0] sm:$0xff]  ;;  %v305_v45 = vld [vmem:[#allocation5 + $0x4d0] sm:$0xff]  ;;  %v4138_v19 = vpack.c.bf16 %v334_v11, %v330_v10  ;;  %v340_v21 = vld [vmem:[#allocation5 + $0x5e8] sm:$0xff] }
  0xce   :  { %4107 = vmatprep.subr.bf16.mxu1 %v4106_v49  ;;  %v316_v49 = vld [vmem:[#allocation5 + $0x528] sm:$0xff]  ;;  %v3520_v52 = vpack.c.bf16 %v307_v44, %v303_v43  ;;  %v4128_v53 = vpack.c.bf16 %v309_v47, %v305_v45  ;;  %v338_v23 = vld [vmem:[#allocation5 + $0x5d8] sm:$0xff]  ;;  %v3534_v27 = vpack.c.bf16 %v340_v21, %v336_v20  ;;  %v341_v32 = vld [vmem:[#allocation5 + $0x5f0] sm:$0xff] }
  0xcf   :  { %v3522_v54 = vpack.c.bf16 %v316_v49, %v312_v48  ;;  %v342_v24 = vld [vmem:[#allocation5 + $0x5f8] sm:$0xff]  ;;  %v344_v33 = vld [vmem:[#allocation5 + $0x608] sm:$0xff]  ;;  %v349_v44 = vld [vmem:[#allocation5 + $0x630] sm:$0xff] }
  0xd0   :  { %3501 = vmatpush1.bf16.msra.mxu0 %v3500_v55  ;;  %v311_v55 = vld [vmem:[#allocation5 + $0x500] sm:$0xff]  ;;  %v4142_v31 = vpack.c.bf16 %v342_v24, %v338_v23  ;;  %v346_v35 = vld [vmem:[#allocation5 + $0x618] sm:$0xff]  ;;  %v352_v45 = vld [vmem:[#allocation5 + $0x648] sm:$0xff] }
  0xd1   :  { %4109 = vmatpush1.bf16.msra.mxu1 %v4108_v56  ;;  %3503 = vmatprep.subr.bf16.mxu0 %v3502_v57  ;;  %v315_v56 = vld [vmem:[#allocation5 + $0x520] sm:$0xff]  ;;  %v313_v57 = vld [vmem:[#allocation5 + $0x510] sm:$0xff]  ;;  %v350_v36 = vld [vmem:[#allocation5 + $0x638] sm:$0xff] }
  0xd2   :  { %4111 = vmatprep.subr.bf16.mxu1 %v4110_v61  ;;  %v324_v61 = vld [vmem:[#allocation5 + $0x568] sm:$0xff]  ;;  %v3524_v0 = vpack.c.bf16 %v315_v56, %v311_v55  ;;  %v4132_v1 = vpack.c.bf16 %v317_v59, %v313_v57  ;;  %v4146_v43 = vpack.c.bf16 %v350_v36, %v346_v35  ;;  %v354_v47 = vld [vmem:[#allocation5 + $0x658] sm:$0xff]  ;;  %v357_v56 = vld [vmem:[#allocation5 + $0x670] sm:$0xff] }
  0xd3   :  { %v3526_v2 = vpack.c.bf16 %v324_v61, %v320_v60  ;;  %v358_v48 = vld [vmem:[#allocation5 + $0x678] sm:$0xff]  ;;  %v360_v57 = vld [vmem:[#allocation5 + $0x688] sm:$0xff]  ;;  %v375_v24 = vld [vmem:[#allocation5 + $0x700] sm:$0xff] }
  0xd4   :  { %3505 = vmatpush1.bf16.msra.mxu0 %v3504_v3  ;;  %v319_v3 = vld [vmem:[#allocation5 + $0x540] sm:$0xff]  ;;  %v4150_v55 = vpack.c.bf16 %v358_v48, %v354_v47  ;;  %v362_v59 = vld [vmem:[#allocation5 + $0x698] sm:$0xff] }
  0xd5   :  { %4113 = vmatpush1.bf16.msra.mxu1 %v4112_v4  ;;  %3507 = vmatprep.subr.bf16.mxu0 %v3506_v5  ;;  %v323_v4 = vld [vmem:[#allocation5 + $0x560] sm:$0xff]  ;;  %v321_v5 = vld [vmem:[#allocation5 + $0x550] sm:$0xff]  ;;  %v366_v60 = vld [vmem:[#allocation5 + $0x6b8] sm:$0xff] }
  0xd6   :  { %4115 = vmatprep.subr.bf16.mxu1 %v4114_v9  ;;  %v332_v9 = vld [vmem:[#allocation5 + $0x5a8] sm:$0xff]  ;;  %v3528_v12 = vpack.c.bf16 %v323_v4, %v319_v3  ;;  %v4136_v14 = vpack.c.bf16 %v325_v7, %v321_v5  ;;  %v4154_v3 = vpack.c.bf16 %v366_v60, %v362_v59  ;;  %v365_v4 = vld [vmem:[#allocation5 + $0x6b0] sm:$0xff]  ;;  %v370_v7 = vld [vmem:[#allocation5 + $0x6d8] sm:$0xff] }
  0xd7   :  { %1454 = vmatmul.mubr.f32.vlgmr.msra.gmra.mrb[0].mxu0 %v132_v15  ;;  %v368_v5 = vld [vmem:[#allocation5 + $0x6c8] sm:$0xff]  ;;  %v382_v20 = vld [vmem:[#allocation5 + $0x738] sm:$0xff]  ;;  %v383_v36 = vld [vmem:[#allocation5 + $0x740] sm:$0xff] }
  0xd8   :  { %3509 = vmatpush1.bf16.msra.mxu0 %v3508_v16  ;;  %2164 = vmatmul.mubr.f32.vlgmr.msra.gmra.mrb[0].mxu1 %v132_v15  ;;  %v3530_v15 = vpack.c.bf16 %v332_v9, %v328_v8  ;;  %v331_v16 = vld [vmem:[#allocation5 + $0x5a0] sm:$0xff]  ;;  %v374_v8 = vld [vmem:[#allocation5 + $0x6f8] sm:$0xff] }
  0xd9   :  { %4117 = vmatpush1.bf16.msra.mxu1 %v4116_v17  ;;  %3511 = vmatprep.subr.bf16.mxu0 %v3510_v18  ;;  %v329_v17 = vld [vmem:[#allocation5 + $0x590] sm:$0xff]  ;;  %v3532_v25 = vpack.c.bf16 %v331_v16, %v327_v13  ;;  %v371_v13 = vld [vmem:[#allocation5 + $0x6e0] sm:$0xff] }
  0xda   :  { %4119 = vmatprep.subr.bf16.mxu1 %v4118_v22  ;;  %v333_v18 = vld [vmem:[#allocation5 + $0x5b0] sm:$0xff]  ;;  %v135_v22 = vld [vmem:[#allocation2 + $0x18] sm:$0xff] }
  0xdb   :  { %1524 = vmatprep.mubr.f32.mxu0 %v135_v22  ;;  %2234 = vmatprep.mubr.f32.mxu1 %v135_v22  ;;  %v4140_v26 = vpack.c.bf16 %v333_v18, %v329_v17  ;;  %v373_v16 = vld [vmem:[#allocation5 + $0x6f0] sm:$0xff]  ;;  %v376_v17 = vld [vmem:[#allocation5 + $0x708] sm:$0xff]  ;;  %v391_v48 = vld [vmem:[#allocation5 + $0x780] sm:$0xff] }
  0xdc   :  { %3513 = vmatpush1.bf16.msra.mxu0 %v3512_v28  ;;  %v335_v28 = vld [vmem:[#allocation5 + $0x5c0] sm:$0xff]  ;;  %v380_v18 = vld [vmem:[#allocation5 + $0x728] sm:$0xff] }
  0xdd   :  { %4121 = vmatpush1.bf16.msra.mxu1 %v4120_v29  ;;  %3515 = vmatprep.subr.bf16.mxu0 %v3514_v30  ;;  %v339_v29 = vld [vmem:[#allocation5 + $0x5e0] sm:$0xff]  ;;  %v337_v30 = vld [vmem:[#allocation5 + $0x5d0] sm:$0xff]  ;;  %v3554_v23 = vpack.c.bf16 %v380_v18, %v376_v17  ;;  %v134_v17 = vld [vmem:[#allocation2 + $0x10] sm:$0xff] }
  0xde   :  { %4123 = vmatprep.subr.bf16.mxu1 %v4122_v34  ;;  %v348_v34 = vld [vmem:[#allocation5 + $0x628] sm:$0xff]  ;;  %v3536_v37 = vpack.c.bf16 %v339_v29, %v335_v28  ;;  %v4144_v38 = vpack.c.bf16 %v341_v32, %v337_v30  ;;  %v381_v28 = vld [vmem:[#allocation5 + $0x730] sm:$0xff]  ;;  %v390_v32 = vld [vmem:[#allocation5 + $0x778] sm:$0xff] }
  0xdf   :  { %v3538_v39 = vpack.c.bf16 %v348_v34, %v344_v33  ;;  %v384_v29 = vld [vmem:[#allocation5 + $0x748] sm:$0xff]  ;;  %v399_v60 = vld [vmem:[#allocation5 + $0x7c0] sm:$0xff] }
  0xe0   :  { %3517 = vmatpush1.bf16.msra.mxu0 %v3516_v40  ;;  %v343_v40 = vld [vmem:[#allocation5 + $0x600] sm:$0xff]  ;;  %v388_v30 = vld [vmem:[#allocation5 + $0x768] sm:$0xff] }
  0xe1   :  { %4125 = vmatpush1.bf16.msra.mxu1 %v4124_v41  ;;  %3519 = vmatprep.subr.bf16.mxu0 %v3518_v42  ;;  %v347_v41 = vld [vmem:[#allocation5 + $0x620] sm:$0xff]  ;;  %v345_v42 = vld [vmem:[#allocation5 + $0x610] sm:$0xff]  ;;  %v3558_v35 = vpack.c.bf16 %v388_v30, %v384_v29  ;;  %v430_v29 = vld [vmem:[#allocation5 + $0x8b8] sm:$0xff] }
  0xe2   :  { %4127 = vmatprep.subr.bf16.mxu1 %v4126_v46  ;;  %v356_v46 = vld [vmem:[#allocation5 + $0x668] sm:$0xff]  ;;  %v3540_v49 = vpack.c.bf16 %v347_v41, %v343_v40  ;;  %v4148_v50 = vpack.c.bf16 %v349_v44, %v345_v42  ;;  %v389_v40 = vld [vmem:[#allocation5 + $0x770] sm:$0xff]  ;;  %v398_v44 = vld [vmem:[#allocation5 + $0x7b8] sm:$0xff] }
  0xe3   :  { %v3542_v51 = vpack.c.bf16 %v356_v46, %v352_v45  ;;  %v392_v41 = vld [vmem:[#allocation5 + $0x788] sm:$0xff]  ;;  %v137_v30 = vld [vmem:[#allocation2 + $0x28] sm:$0xff] }
  0xe4   :  { %3521 = vmatpush1.bf16.msra.mxu0 %v3520_v52  ;;  %v351_v52 = vld [vmem:[#allocation5 + $0x640] sm:$0xff]  ;;  %v396_v42 = vld [vmem:[#allocation5 + $0x7a8] sm:$0xff] }
  0xe5   :  { %4129 = vmatpush1.bf16.msra.mxu1 %v4128_v53  ;;  %3523 = vmatprep.subr.bf16.mxu0 %v3522_v54  ;;  %v355_v53 = vld [vmem:[#allocation5 + $0x660] sm:$0xff]  ;;  %v353_v54 = vld [vmem:[#allocation5 + $0x650] sm:$0xff]  ;;  %v3562_v47 = vpack.c.bf16 %v396_v42, %v392_v41  ;;  %v434_v41 = vld [vmem:[#allocation5 + $0x8d8] sm:$0xff] }
  0xe6   :  { %4131 = vmatprep.subr.bf16.mxu1 %v4130_v58  ;;  %v364_v58 = vld [vmem:[#allocation5 + $0x6a8] sm:$0xff]  ;;  %v3544_v61 = vpack.c.bf16 %v355_v53, %v351_v52  ;;  %v4152_v62 = vpack.c.bf16 %v357_v56, %v353_v54  ;;  %v397_v52 = vld [vmem:[#allocation5 + $0x7b0] sm:$0xff]  ;;  %v406_v56 = vld [vmem:[#allocation5 + $0x7f8] sm:$0xff] }
  0xe7   :  { %v3546_v63 = vpack.c.bf16 %v364_v58, %v360_v57  ;;  %v400_v53 = vld [vmem:[#allocation5 + $0x7c8] sm:$0xff]  ;;  %v438_v42 = vld [vmem:[#allocation5 + $0x8f8] sm:$0xff] }
  0xe8   :  { %3525 = vmatpush1.bf16.msra.mxu0 %v3524_v0  ;;  %v359_v0 = vld [vmem:[#allocation5 + $0x680] sm:$0xff]  ;;  %v404_v54 = vld [vmem:[#allocation5 + $0x7e8] sm:$0xff] }
  0xe9   :  { %4133 = vmatpush1.bf16.msra.mxu1 %v4132_v1  ;;  %3527 = vmatprep.subr.bf16.mxu0 %v3526_v2  ;;  %v363_v1 = vld [vmem:[#allocation5 + $0x6a0] sm:$0xff]  ;;  %v361_v2 = vld [vmem:[#allocation5 + $0x690] sm:$0xff]  ;;  %v3566_v59 = vpack.c.bf16 %v404_v54, %v400_v53  ;;  %v442_v53 = vld [vmem:[#allocation5 + $0x918] sm:$0xff] }
  0xea   :  { %4135 = vmatprep.subr.bf16.mxu1 %v4134_v6  ;;  %v372_v6 = vld [vmem:[#allocation5 + $0x6e8] sm:$0xff]  ;;  %v3548_v9 = vpack.c.bf16 %v363_v1, %v359_v0  ;;  %v4156_v10 = vpack.c.bf16 %v365_v4, %v361_v2  ;;  %v405_v0 = vld [vmem:[#allocation5 + $0x7f0] sm:$0xff]  ;;  %v414_v4 = vld [vmem:[#allocation5 + $0x838] sm:$0xff] }
  0xeb   :  { %v3550_v11 = vpack.c.bf16 %v372_v6, %v368_v5  ;;  %v408_v1 = vld [vmem:[#allocation5 + $0x808] sm:$0xff]  ;;  %v446_v54 = vld [vmem:[#allocation5 + $0x938] sm:$0xff] }
  0xec   :  { %3529 = vmatpush1.bf16.msra.mxu0 %v3528_v12  ;;  %v367_v12 = vld [vmem:[#allocation5 + $0x6c0] sm:$0xff]  ;;  %v412_v2 = vld [vmem:[#allocation5 + $0x828] sm:$0xff] }
  0xed   :  { %4137 = vmatpush1.bf16.msra.mxu1 %v4136_v14  ;;  %3531 = vmatprep.subr.bf16.mxu0 %v3530_v15  ;;  %v369_v14 = vld [vmem:[#allocation5 + $0x6d0] sm:$0xff]  ;;  %v4158_v15 = vpack.c.bf16 %v374_v8, %v370_v7  ;;  %v3552_v21 = vpack.c.bf16 %v371_v13, %v367_v12  ;;  %v3570_v7 = vpack.c.bf16 %v412_v2, %v408_v1  ;;  %v407_v8 = vld [vmem:[#allocation5 + $0x800] sm:$0xff]  ;;  %v416_v13 = vld [vmem:[#allocation5 + $0x848] sm:$0xff] }
  0xee   :  { %4139 = vmatprep.subr.bf16.mxu1 %v4138_v19  ;;  %v378_v19 = vld [vmem:[#allocation5 + $0x718] sm:$0xff]  ;;  %v4160_v22 = vpack.c.bf16 %v373_v16, %v369_v14  ;;  %v413_v12 = vld [vmem:[#allocation5 + $0x830] sm:$0xff]  ;;  %v420_v14 = vld [vmem:[#allocation5 + $0x868] sm:$0xff] }
  0xef   :  { %v422_v16 = vld [vmem:[#allocation5 + $0x878] sm:$0xff] }
  0xf0   :  { %3533 = vmatpush1.bf16.msra.mxu0 %v3532_v25  ;;  %v379_v25 = vld [vmem:[#allocation5 + $0x720] sm:$0xff]  ;;  %v450_v1 = vld [vmem:[#allocation5 + $0x958] sm:$0xff] }
  0xf1   :  { %4141 = vmatpush1.bf16.msra.mxu1 %v4140_v26  ;;  %3535 = vmatprep.subr.bf16.mxu0 %v3534_v27  ;;  %v377_v26 = vld [vmem:[#allocation5 + $0x710] sm:$0xff]  ;;  %v4162_v27 = vpack.c.bf16 %v382_v20, %v378_v19  ;;  %v3556_v33 = vpack.c.bf16 %v379_v25, %v375_v24  ;;  %v3574_v20 = vpack.c.bf16 %v420_v14, %v416_v13  ;;  %v454_v2 = vld [vmem:[#allocation5 + $0x978] sm:$0xff] }
  0xf2   :  { %4143 = vmatprep.subr.bf16.mxu1 %v4142_v31  ;;  %v386_v31 = vld [vmem:[#allocation5 + $0x758] sm:$0xff]  ;;  %v4164_v34 = vpack.c.bf16 %v381_v28, %v377_v26  ;;  %v421_v25 = vld [vmem:[#allocation5 + $0x870] sm:$0xff]  ;;  %v424_v26 = vld [vmem:[#allocation5 + $0x888] sm:$0xff] }
  0xf3   :  { %v426_v28 = vld [vmem:[#allocation5 + $0x898] sm:$0xff] }
  0xf4   :  { %3537 = vmatpush1.bf16.msra.mxu0 %v3536_v37  ;;  %v387_v37 = vld [vmem:[#allocation5 + $0x760] sm:$0xff]  ;;  %v458_v13 = vld [vmem:[#allocation5 + $0x998] sm:$0xff] }
  0xf5   :  { %4145 = vmatpush1.bf16.msra.mxu1 %v4144_v38  ;;  %3539 = vmatprep.subr.bf16.mxu0 %v3538_v39  ;;  %v385_v38 = vld [vmem:[#allocation5 + $0x750] sm:$0xff]  ;;  %v4166_v39 = vpack.c.bf16 %v390_v32, %v386_v31  ;;  %v3560_v45 = vpack.c.bf16 %v387_v37, %v383_v36  ;;  %v4186_v37 = vpack.c.bf16 %v430_v29, %v426_v28  ;;  %v462_v14 = vld [vmem:[#allocation5 + $0x9b8] sm:$0xff] }
  0xf6   :  { %4147 = vmatprep.subr.bf16.mxu1 %v4146_v43  ;;  %v394_v43 = vld [vmem:[#allocation5 + $0x798] sm:$0xff]  ;;  %v4168_v46 = vpack.c.bf16 %v389_v40, %v385_v38  ;;  %v425_v36 = vld [vmem:[#allocation5 + $0x890] sm:$0xff]  ;;  %v436_v40 = vld [vmem:[#allocation5 + $0x8e8] sm:$0xff] }
  0xf7   :  { %v429_v38 = vld [vmem:[#allocation5 + $0x8b0] sm:$0xff] }
  0xf8   :  { %3541 = vmatpush1.bf16.msra.mxu0 %v3540_v49  ;;  %v395_v49 = vld [vmem:[#allocation5 + $0x7a0] sm:$0xff] }
  0xf9   :  { %4149 = vmatpush1.bf16.msra.mxu1 %v4148_v50  ;;  %3543 = vmatprep.subr.bf16.mxu0 %v3542_v51  ;;  %v393_v50 = vld [vmem:[#allocation5 + $0x790] sm:$0xff]  ;;  %v4170_v51 = vpack.c.bf16 %v398_v44, %v394_v43  ;;  %v3564_v57 = vpack.c.bf16 %v395_v49, %v391_v48  ;;  %v4188_v44 = vpack.c.bf16 %v429_v38, %v425_v36  ;;  %v476_v36 = vld [vmem:[#allocation5 + $0xa28] sm:$0xff]  ;;  %v478_v38 = vld [vmem:[#allocation5 + $0xa38] sm:$0xff] }
  0xfa   :  { %4151 = vmatprep.subr.bf16.mxu1 %v4150_v55  ;;  %v402_v55 = vld [vmem:[#allocation5 + $0x7d8] sm:$0xff]  ;;  %v4172_v58 = vpack.c.bf16 %v397_v52, %v393_v50  ;;  %v433_v48 = vld [vmem:[#allocation5 + $0x8d0] sm:$0xff]  ;;  %v4190_v49 = vpack.c.bf16 %v438_v42, %v434_v41  ;;  %v444_v52 = vld [vmem:[#allocation5 + $0x928] sm:$0xff] }
  0xfb   :  { %v437_v50 = vld [vmem:[#allocation5 + $0x8f0] sm:$0xff]  ;;  %v471_v42 = vld [vmem:[#allocation5 + $0xa00] sm:$0xff] }
  0xfc   :  { %3545 = vmatpush1.bf16.msra.mxu0 %v3544_v61  ;;  %v403_v61 = vld [vmem:[#allocation5 + $0x7e0] sm:$0xff] }
  0xfd   :  { %4153 = vmatpush1.bf16.msra.mxu1 %v4152_v62  ;;  %3547 = vmatprep.subr.bf16.mxu0 %v3546_v63  ;;  %v401_v62 = vld [vmem:[#allocation5 + $0x7d0] sm:$0xff]  ;;  %v4174_v63 = vpack.c.bf16 %v406_v56, %v402_v55  ;;  %v3568_v5 = vpack.c.bf16 %v403_v61, %v399_v60  ;;  %v4192_v56 = vpack.c.bf16 %v437_v50, %v433_v48  ;;  %v484_v48 = vld [vmem:[#allocation5 + $0xa68] sm:$0xff]  ;;  %v486_v50 = vld [vmem:[#allocation5 + $0xa78] sm:$0xff] }
  0xfe   :  { %4155 = vmatprep.subr.bf16.mxu1 %v4154_v3  ;;  %v410_v3 = vld [vmem:[#allocation5 + $0x818] sm:$0xff]  ;;  %v4176_v6 = vpack.c.bf16 %v405_v0, %v401_v62  ;;  %v441_v60 = vld [vmem:[#allocation5 + $0x910] sm:$0xff]  ;;  %v4194_v61 = vpack.c.bf16 %v446_v54, %v442_v53  ;;  %v452_v0 = vld [vmem:[#allocation5 + $0x968] sm:$0xff] }
  0xff   :  { %v445_v62 = vld [vmem:[#allocation5 + $0x930] sm:$0xff]  ;;  %v479_v54 = vld [vmem:[#allocation5 + $0xa40] sm:$0xff] }
 0x100   :  { %3549 = vmatpush1.bf16.msra.mxu0 %v3548_v9  ;;  %v411_v9 = vld [vmem:[#allocation5 + $0x820] sm:$0xff] }
 0x101   :  { %4157 = vmatpush1.bf16.msra.mxu1 %v4156_v10  ;;  %3551 = vmatprep.subr.bf16.mxu0 %v3550_v11  ;;  %v409_v10 = vld [vmem:[#allocation5 + $0x810] sm:$0xff]  ;;  %v4178_v11 = vpack.c.bf16 %v414_v4, %v410_v3  ;;  %v3572_v18 = vpack.c.bf16 %v411_v9, %v407_v8  ;;  %v4196_v4 = vpack.c.bf16 %v445_v62, %v441_v60  ;;  %v492_v60 = vld [vmem:[#allocation5 + $0xaa8] sm:$0xff]  ;;  %v494_v62 = vld [vmem:[#allocation5 + $0xab8] sm:$0xff] }
 0x102   :  { %4159 = vmatprep.subr.bf16.mxu1 %v4158_v15  ;;  %v418_v15 = vld [vmem:[#allocation5 + $0x858] sm:$0xff]  ;;  %v4180_v19 = vpack.c.bf16 %v413_v12, %v409_v10  ;;  %v449_v8 = vld [vmem:[#allocation5 + $0x950] sm:$0xff]  ;;  %v4198_v9 = vpack.c.bf16 %v454_v2, %v450_v1  ;;  %v460_v12 = vld [vmem:[#allocation5 + $0x9a8] sm:$0xff] }
 0x103   :  { %v4182_v24 = vpack.c.bf16 %v422_v16, %v418_v15  ;;  %v453_v10 = vld [vmem:[#allocation5 + $0x970] sm:$0xff]  ;;  %v487_v2 = vld [vmem:[#allocation5 + $0xa80] sm:$0xff] }
 0x104   :  { %3553 = vmatpush1.bf16.msra.mxu0 %v3552_v21  ;;  %v415_v21 = vld [vmem:[#allocation5 + $0x840] sm:$0xff]  ;;  %v4200_v16 = vpack.c.bf16 %v453_v10, %v449_v8  ;;  %v500_v8 = vld [vmem:[#allocation5 + $0xae8] sm:$0xff]  ;;  %v502_v10 = vld [vmem:[#allocation5 + $0xaf8] sm:$0xff] }
 0x105   :  { %4161 = vmatpush1.bf16.msra.mxu1 %v4160_v22  ;;  %3555 = vmatprep.subr.bf16.mxu0 %v3554_v23  ;;  %v419_v22 = vld [vmem:[#allocation5 + $0x860] sm:$0xff]  ;;  %v417_v23 = vld [vmem:[#allocation5 + $0x850] sm:$0xff] }
 0x106   :  { %4163 = vmatprep.subr.bf16.mxu1 %v4162_v27  ;;  %v428_v27 = vld [vmem:[#allocation5 + $0x8a8] sm:$0xff]  ;;  %v3576_v31 = vpack.c.bf16 %v419_v22, %v415_v21  ;;  %v4184_v32 = vpack.c.bf16 %v421_v25, %v417_v23  ;;  %v4202_v21 = vpack.c.bf16 %v462_v14, %v458_v13  ;;  %v461_v22 = vld [vmem:[#allocation5 + $0x9b0] sm:$0xff]  ;;  %v466_v25 = vld [vmem:[#allocation5 + $0x9d8] sm:$0xff] }
 0x107   :  { %v464_v23 = vld [vmem:[#allocation5 + $0x9c8] sm:$0xff]  ;;  %v495_v14 = vld [vmem:[#allocation5 + $0xac0] sm:$0xff] }
 0x108   :  { %3557 = vmatpush1.bf16.msra.mxu0 %v3556_v33  ;;  %v3578_v33 = vpack.c.bf16 %v428_v27, %v424_v26  ;;  %v470_v26 = vld [vmem:[#allocation5 + $0x9f8] sm:$0xff] }
 0x109   :  { %4165 = vmatpush1.bf16.msra.mxu1 %v4164_v34  ;;  %3559 = vmatprep.subr.bf16.mxu0 %v3558_v35  ;;  %v423_v34 = vld [vmem:[#allocation5 + $0x880] sm:$0xff] }
 0x10a   :  { %4167 = vmatprep.subr.bf16.mxu1 %v4166_v39  ;;  %v427_v35 = vld [vmem:[#allocation5 + $0x8a0] sm:$0xff]  ;;  %v432_v39 = vld [vmem:[#allocation5 + $0x8c8] sm:$0xff] }
 0x10b   :  { %v3580_v43 = vpack.c.bf16 %v427_v35, %v423_v34  ;;  %v469_v34 = vld [vmem:[#allocation5 + $0x9f0] sm:$0xff]  ;;  %v472_v35 = vld [vmem:[#allocation5 + $0xa08] sm:$0xff] }
 0x10c   :  { %3561 = vmatpush1.bf16.msra.mxu0 %v3560_v45  ;;  %v3582_v45 = vpack.c.bf16 %v436_v40, %v432_v39  ;;  %v3602_v41 = vpack.c.bf16 %v476_v36, %v472_v35 }
 0x10d   :  { %4169 = vmatpush1.bf16.msra.mxu1 %v4168_v46  ;;  %3563 = vmatprep.subr.bf16.mxu0 %v3562_v47  ;;  %v431_v46 = vld [vmem:[#allocation5 + $0x8c0] sm:$0xff] }
 0x10e   :  { %4171 = vmatprep.subr.bf16.mxu1 %v4170_v51  ;;  %v435_v47 = vld [vmem:[#allocation5 + $0x8e0] sm:$0xff]  ;;  %v440_v51 = vld [vmem:[#allocation5 + $0x908] sm:$0xff] }
 0x10f   :  { %v3584_v55 = vpack.c.bf16 %v435_v47, %v431_v46  ;;  %v477_v46 = vld [vmem:[#allocation5 + $0xa30] sm:$0xff]  ;;  %v480_v47 = vld [vmem:[#allocation5 + $0xa48] sm:$0xff] }
 0x110   :  { %3565 = vmatpush1.bf16.msra.mxu0 %v3564_v57  ;;  %v3586_v57 = vpack.c.bf16 %v444_v52, %v440_v51  ;;  %v3606_v53 = vpack.c.bf16 %v484_v48, %v480_v47 }
 0x111   :  { %4173 = vmatpush1.bf16.msra.mxu1 %v4172_v58  ;;  %3567 = vmatprep.subr.bf16.mxu0 %v3566_v59  ;;  %v439_v58 = vld [vmem:[#allocation5 + $0x900] sm:$0xff] }
 0x112   :  { %4175 = vmatprep.subr.bf16.mxu1 %v4174_v63  ;;  %v443_v59 = vld [vmem:[#allocation5 + $0x920] sm:$0xff]  ;;  %v448_v63 = vld [vmem:[#allocation5 + $0x948] sm:$0xff] }
 0x113   :  { %v3588_v3 = vpack.c.bf16 %v443_v59, %v439_v58  ;;  %v485_v58 = vld [vmem:[#allocation5 + $0xa70] sm:$0xff]  ;;  %v488_v59 = vld [vmem:[#allocation5 + $0xa88] sm:$0xff] }
 0x114   :  { %3569 = vmatpush1.bf16.msra.mxu0 %v3568_v5  ;;  %v3590_v5 = vpack.c.bf16 %v452_v0, %v448_v63  ;;  %v3610_v1 = vpack.c.bf16 %v492_v60, %v488_v59 }
 0x115   :  { %4177 = vmatpush1.bf16.msra.mxu1 %v4176_v6  ;;  %3571 = vmatprep.subr.bf16.mxu0 %v3570_v7  ;;  %v447_v6 = vld [vmem:[#allocation5 + $0x940] sm:$0xff] }
 0x116   :  { %4179 = vmatprep.subr.bf16.mxu1 %v4178_v11  ;;  %v451_v7 = vld [vmem:[#allocation5 + $0x960] sm:$0xff]  ;;  %v456_v11 = vld [vmem:[#allocation5 + $0x988] sm:$0xff] }
 0x117   :  { %1525 = vmatmul.mubr.f32.vlgmr.msra.gmra.mrb[0].mxu0 %v134_v17  ;;  %v3592_v15 = vpack.c.bf16 %v451_v7, %v447_v6  ;;  %v493_v6 = vld [vmem:[#allocation5 + $0xab0] sm:$0xff]  ;;  %v496_v7 = vld [vmem:[#allocation5 + $0xac8] sm:$0xff] }
 0x118   :  { %3573 = vmatpush1.bf16.msra.mxu0 %v3572_v18  ;;  %2235 = vmatmul.mubr.f32.vlgmr.msra.gmra.mrb[0].mxu1 %v134_v17  ;;  %v3594_v17 = vpack.c.bf16 %v460_v12, %v456_v11  ;;  %v455_v18 = vld [vmem:[#allocation5 + $0x980] sm:$0xff]  ;;  %v3614_v13 = vpack.c.bf16 %v500_v8, %v496_v7 }
 0x119   :  { %4181 = vmatpush1.bf16.msra.mxu1 %v4180_v19  ;;  %3575 = vmatprep.subr.bf16.mxu0 %v3574_v20  ;;  %v459_v19 = vld [vmem:[#allocation5 + $0x9a0] sm:$0xff]  ;;  %v457_v20 = vld [vmem:[#allocation5 + $0x990] sm:$0xff] }
 0x11a   :  { %4183 = vmatprep.subr.bf16.mxu1 %v4182_v24  ;;  %1595 = vmatprep.mubr.f32.mxu0 %v137_v30  ;;  %v468_v24 = vld [vmem:[#allocation5 + $0x9e8] sm:$0xff]  ;;  %v3596_v27 = vpack.c.bf16 %v459_v19, %v455_v18  ;;  %v4204_v28 = vpack.c.bf16 %v461_v22, %v457_v20  ;;  %v501_v18 = vld [vmem:[#allocation5 + $0xaf0] sm:$0xff]  ;;  %v510_v22 = vld [vmem:[#allocation5 + $0xb38] sm:$0xff] }
 0x11b   :  { %2305 = vmatprep.mubr.f32.mxu1 %v137_v30  ;;  %v3598_v29 = vpack.c.bf16 %v468_v24, %v464_v23  ;;  %v463_v30 = vld [vmem:[#allocation5 + $0x9c0] sm:$0xff]  ;;  %v504_v19 = vld [vmem:[#allocation5 + $0xb08] sm:$0xff] }
 0x11c   :  { %3577 = vmatpush1.bf16.msra.mxu0 %v3576_v31  ;;  %v467_v31 = vld [vmem:[#allocation5 + $0x9e0] sm:$0xff]  ;;  %v508_v20 = vld [vmem:[#allocation5 + $0xb28] sm:$0xff] }
 0x11d   :  { %4185 = vmatpush1.bf16.msra.mxu1 %v4184_v32  ;;  %3579 = vmatprep.subr.bf16.mxu0 %v3578_v33  ;;  %v465_v32 = vld [vmem:[#allocation5 + $0x9d0] sm:$0xff]  ;;  %v4206_v33 = vpack.c.bf16 %v470_v26, %v466_v25  ;;  %v3600_v39 = vpack.c.bf16 %v467_v31, %v463_v30  ;;  %v3618_v25 = vpack.c.bf16 %v508_v20, %v504_v19  ;;  %v503_v26 = vld [vmem:[#allocation5 + $0xb00] sm:$0xff]  ;;  %v512_v31 = vld [vmem:[#allocation5 + $0xb48] sm:$0xff] }
 0x11e   :  { %4187 = vmatprep.subr.bf16.mxu1 %v4186_v37  ;;  %v474_v37 = vld [vmem:[#allocation5 + $0xa18] sm:$0xff]  ;;  %v4208_v40 = vpack.c.bf16 %v469_v34, %v465_v32  ;;  %v509_v30 = vld [vmem:[#allocation5 + $0xb30] sm:$0xff]  ;;  %v516_v32 = vld [vmem:[#allocation5 + $0xb68] sm:$0xff] }
 0x11f   :  { %v518_v34 = vld [vmem:[#allocation5 + $0xb78] sm:$0xff]  ;;  %v136_v19 = vld [vmem:[#allocation2 + $0x20] sm:$0xff] }
 0x120   :  { %3581 = vmatpush1.bf16.msra.mxu0 %v3580_v43  ;;  %v475_v43 = vld [vmem:[#allocation5 + $0xa20] sm:$0xff] }
 0x121   :  { %4189 = vmatpush1.bf16.msra.mxu1 %v4188_v44  ;;  %3583 = vmatprep.subr.bf16.mxu0 %v3582_v45  ;;  %v473_v44 = vld [vmem:[#allocation5 + $0xa10] sm:$0xff]  ;;  %v4210_v45 = vpack.c.bf16 %v478_v38, %v474_v37  ;;  %v3604_v51 = vpack.c.bf16 %v475_v43, %v471_v42  ;;  %v3622_v37 = vpack.c.bf16 %v516_v32, %v512_v31  ;;  %v511_v38 = vld [vmem:[#allocation5 + $0xb40] sm:$0xff]  ;;  %v520_v43 = vld [vmem:[#allocation5 + $0xb88] sm:$0xff] }
 0x122   :  { %4191 = vmatprep.subr.bf16.mxu1 %v4190_v49  ;;  %v482_v49 = vld [vmem:[#allocation5 + $0xa58] sm:$0xff]  ;;  %v4212_v52 = vpack.c.bf16 %v477_v46, %v473_v44  ;;  %v517_v42 = vld [vmem:[#allocation5 + $0xb70] sm:$0xff]  ;;  %v524_v44 = vld [vmem:[#allocation5 + $0xba8] sm:$0xff] }
 0x123   :  { %v526_v46 = vld [vmem:[#allocation5 + $0xbb8] sm:$0xff]  ;;  %v139_v32 = vld [vmem:[#allocation2 + $0x38] sm:$0xff] }
 0x124   :  { %3585 = vmatpush1.bf16.msra.mxu0 %v3584_v55  ;;  %v483_v55 = vld [vmem:[#allocation5 + $0xa60] sm:$0xff]  ;;  %v558_v31 = vld [vmem:[#allocation5 + $0xcb8] sm:$0xff] }
 0x125   :  { %4193 = vmatpush1.bf16.msra.mxu1 %v4192_v56  ;;  %3587 = vmatprep.subr.bf16.mxu0 %v3586_v57  ;;  %v481_v56 = vld [vmem:[#allocation5 + $0xa50] sm:$0xff]  ;;  %v4214_v57 = vpack.c.bf16 %v486_v50, %v482_v49  ;;  %v3608_v63 = vpack.c.bf16 %v483_v55, %v479_v54  ;;  %v3626_v49 = vpack.c.bf16 %v524_v44, %v520_v43  ;;  %v519_v50 = vld [vmem:[#allocation5 + $0xb80] sm:$0xff]  ;;  %v528_v55 = vld [vmem:[#allocation5 + $0xbc8] sm:$0xff] }
 0x126   :  { %4195 = vmatprep.subr.bf16.mxu1 %v4194_v61  ;;  %v490_v61 = vld [vmem:[#allocation5 + $0xa98] sm:$0xff]  ;;  %v4216_v0 = vpack.c.bf16 %v485_v58, %v481_v56  ;;  %v525_v54 = vld [vmem:[#allocation5 + $0xbb0] sm:$0xff]  ;;  %v532_v56 = vld [vmem:[#allocation5 + $0xbe8] sm:$0xff] }
 0x127   :  { %v534_v58 = vld [vmem:[#allocation5 + $0xbf8] sm:$0xff] }
 0x128   :  { %3589 = vmatpush1.bf16.msra.mxu0 %v3588_v3  ;;  %v491_v3 = vld [vmem:[#allocation5 + $0xaa0] sm:$0xff]  ;;  %v562_v43 = vld [vmem:[#allocation5 + $0xcd8] sm:$0xff] }
 0x129   :  { %4197 = vmatpush1.bf16.msra.mxu1 %v4196_v4  ;;  %3591 = vmatprep.subr.bf16.mxu0 %v3590_v5  ;;  %v489_v4 = vld [vmem:[#allocation5 + $0xa90] sm:$0xff]  ;;  %v4218_v5 = vpack.c.bf16 %v494_v62, %v490_v61  ;;  %v3612_v11 = vpack.c.bf16 %v491_v3, %v487_v2  ;;  %v3630_v61 = vpack.c.bf16 %v532_v56, %v528_v55  ;;  %v527_v62 = vld [vmem:[#allocation5 + $0xbc0] sm:$0xff]  ;;  %v536_v3 = vld [vmem:[#allocation5 + $0xc08] sm:$0xff] }
 0x12a   :  { %4199 = vmatprep.subr.bf16.mxu1 %v4198_v9  ;;  %v498_v9 = vld [vmem:[#allocation5 + $0xad8] sm:$0xff]  ;;  %v4220_v12 = vpack.c.bf16 %v493_v6, %v489_v4  ;;  %v533_v2 = vld [vmem:[#allocation5 + $0xbf0] sm:$0xff]  ;;  %v540_v4 = vld [vmem:[#allocation5 + $0xc28] sm:$0xff] }
 0x12b   :  { %v542_v6 = vld [vmem:[#allocation5 + $0xc38] sm:$0xff] }
 0x12c   :  { %3593 = vmatpush1.bf16.msra.mxu0 %v3592_v15  ;;  %v499_v15 = vld [vmem:[#allocation5 + $0xae0] sm:$0xff]  ;;  %v566_v44 = vld [vmem:[#allocation5 + $0xcf8] sm:$0xff] }
 0x12d   :  { %4201 = vmatpush1.bf16.msra.mxu1 %v4200_v16  ;;  %3595 = vmatprep.subr.bf16.mxu0 %v3594_v17  ;;  %v497_v16 = vld [vmem:[#allocation5 + $0xad0] sm:$0xff]  ;;  %v4222_v17 = vpack.c.bf16 %v502_v10, %v498_v9  ;;  %v3616_v23 = vpack.c.bf16 %v499_v15, %v495_v14  ;;  %v3634_v9 = vpack.c.bf16 %v540_v4, %v536_v3  ;;  %v535_v10 = vld [vmem:[#allocation5 + $0xc00] sm:$0xff]  ;;  %v544_v15 = vld [vmem:[#allocation5 + $0xc48] sm:$0xff] }
 0x12e   :  { %4203 = vmatprep.subr.bf16.mxu1 %v4202_v21  ;;  %v506_v21 = vld [vmem:[#allocation5 + $0xb18] sm:$0xff]  ;;  %v4224_v24 = vpack.c.bf16 %v501_v18, %v497_v16  ;;  %v541_v14 = vld [vmem:[#allocation5 + $0xc30] sm:$0xff]  ;;  %v548_v16 = vld [vmem:[#allocation5 + $0xc68] sm:$0xff] }
 0x12f   :  { %v550_v18 = vld [vmem:[#allocation5 + $0xc78] sm:$0xff] }
 0x130   :  { %3597 = vmatpush1.bf16.msra.mxu0 %v3596_v27  ;;  %v507_v27 = vld [vmem:[#allocation5 + $0xb20] sm:$0xff]  ;;  %v570_v55 = vld [vmem:[#allocation5 + $0xd18] sm:$0xff] }
 0x131   :  { %4205 = vmatpush1.bf16.msra.mxu1 %v4204_v28  ;;  %3599 = vmatprep.subr.bf16.mxu0 %v3598_v29  ;;  %v505_v28 = vld [vmem:[#allocation5 + $0xb10] sm:$0xff]  ;;  %v4226_v29 = vpack.c.bf16 %v510_v22, %v506_v21  ;;  %v3620_v35 = vpack.c.bf16 %v507_v27, %v503_v26  ;;  %v3638_v22 = vpack.c.bf16 %v548_v16, %v544_v15  ;;  %v574_v56 = vld [vmem:[#allocation5 + $0xd38] sm:$0xff] }
 0x132   :  { %4207 = vmatprep.subr.bf16.mxu1 %v4206_v33  ;;  %v514_v33 = vld [vmem:[#allocation5 + $0xb58] sm:$0xff]  ;;  %v4228_v36 = vpack.c.bf16 %v509_v30, %v505_v28  ;;  %v549_v27 = vld [vmem:[#allocation5 + $0xc70] sm:$0xff]  ;;  %v552_v28 = vld [vmem:[#allocation5 + $0xc88] sm:$0xff] }
 0x133   :  { %v554_v30 = vld [vmem:[#allocation5 + $0xc98] sm:$0xff] }
 0x134   :  { %3601 = vmatpush1.bf16.msra.mxu0 %v3600_v39  ;;  %v515_v39 = vld [vmem:[#allocation5 + $0xb60] sm:$0xff]  ;;  %v578_v3 = vld [vmem:[#allocation5 + $0xd58] sm:$0xff] }
 0x135   :  { %4209 = vmatpush1.bf16.msra.mxu1 %v4208_v40  ;;  %3603 = vmatprep.subr.bf16.mxu0 %v3602_v41  ;;  %v513_v40 = vld [vmem:[#allocation5 + $0xb50] sm:$0xff]  ;;  %v4230_v41 = vpack.c.bf16 %v518_v34, %v514_v33  ;;  %v3624_v47 = vpack.c.bf16 %v515_v39, %v511_v38  ;;  %v4250_v39 = vpack.c.bf16 %v558_v31, %v554_v30  ;;  %v582_v4 = vld [vmem:[#allocation5 + $0xd78] sm:$0xff] }
 0x136   :  { %4211 = vmatprep.subr.bf16.mxu1 %v4210_v45  ;;  %v522_v45 = vld [vmem:[#allocation5 + $0xb98] sm:$0xff]  ;;  %v4232_v48 = vpack.c.bf16 %v517_v42, %v513_v40  ;;  %v553_v38 = vld [vmem:[#allocation5 + $0xc90] sm:$0xff]  ;;  %v564_v42 = vld [vmem:[#allocation5 + $0xce8] sm:$0xff] }
 0x137   :  { %v557_v40 = vld [vmem:[#allocation5 + $0xcb0] sm:$0xff]  ;;  %v586_v15 = vld [vmem:[#allocation5 + $0xd98] sm:$0xff] }
 0x138   :  { %3605 = vmatpush1.bf16.msra.mxu0 %v3604_v51  ;;  %v523_v51 = vld [vmem:[#allocation5 + $0xba0] sm:$0xff]  ;;  %v590_v16 = vld [vmem:[#allocation5 + $0xdb8] sm:$0xff] }
 0x139   :  { %4213 = vmatpush1.bf16.msra.mxu1 %v4212_v52  ;;  %3607 = vmatprep.subr.bf16.mxu0 %v3606_v53  ;;  %v521_v52 = vld [vmem:[#allocation5 + $0xb90] sm:$0xff]  ;;  %v4234_v53 = vpack.c.bf16 %v526_v46, %v522_v45  ;;  %v3628_v59 = vpack.c.bf16 %v523_v51, %v519_v50  ;;  %v4252_v46 = vpack.c.bf16 %v557_v40, %v553_v38  ;;  %v604_v38 = vld [vmem:[#allocation5 + $0xe28] sm:$0xff]  ;;  %v606_v40 = vld [vmem:[#allocation5 + $0xe38] sm:$0xff] }
 0x13a   :  { %4215 = vmatprep.subr.bf16.mxu1 %v4214_v57  ;;  %v530_v57 = vld [vmem:[#allocation5 + $0xbd8] sm:$0xff]  ;;  %v4236_v60 = vpack.c.bf16 %v525_v54, %v521_v52  ;;  %v561_v50 = vld [vmem:[#allocation5 + $0xcd0] sm:$0xff]  ;;  %v4254_v51 = vpack.c.bf16 %v566_v44, %v562_v43  ;;  %v572_v54 = vld [vmem:[#allocation5 + $0xd28] sm:$0xff] }
 0x13b   :  { %v565_v52 = vld [vmem:[#allocation5 + $0xcf0] sm:$0xff]  ;;  %v599_v44 = vld [vmem:[#allocation5 + $0xe00] sm:$0xff] }
 0x13c   :  { %3609 = vmatpush1.bf16.msra.mxu0 %v3608_v63  ;;  %v531_v63 = vld [vmem:[#allocation5 + $0xbe0] sm:$0xff] }
 0x13d   :  { %4217 = vmatpush1.bf16.msra.mxu1 %v4216_v0  ;;  %3611 = vmatprep.subr.bf16.mxu0 %v3610_v1  ;;  %v529_v0 = vld [vmem:[#allocation5 + $0xbd0] sm:$0xff]  ;;  %v4238_v1 = vpack.c.bf16 %v534_v58, %v530_v57  ;;  %v3632_v7 = vpack.c.bf16 %v531_v63, %v527_v62  ;;  %v4256_v58 = vpack.c.bf16 %v565_v52, %v561_v50  ;;  %v612_v50 = vld [vmem:[#allocation5 + $0xe68] sm:$0xff]  ;;  %v614_v52 = vld [vmem:[#allocation5 + $0xe78] sm:$0xff] }
 0x13e   :  { %4219 = vmatprep.subr.bf16.mxu1 %v4218_v5  ;;  %v538_v5 = vld [vmem:[#allocation5 + $0xc18] sm:$0xff]  ;;  %v4240_v8 = vpack.c.bf16 %v533_v2, %v529_v0  ;;  %v569_v62 = vld [vmem:[#allocation5 + $0xd10] sm:$0xff]  ;;  %v4258_v63 = vpack.c.bf16 %v574_v56, %v570_v55  ;;  %v580_v2 = vld [vmem:[#allocation5 + $0xd68] sm:$0xff] }
 0x13f   :  { %v573_v0 = vld [vmem:[#allocation5 + $0xd30] sm:$0xff]  ;;  %v607_v56 = vld [vmem:[#allocation5 + $0xe40] sm:$0xff] }
 0x140   :  { %3613 = vmatpush1.bf16.msra.mxu0 %v3612_v11  ;;  %v539_v11 = vld [vmem:[#allocation5 + $0xc20] sm:$0xff] }
 0x141   :  { %4221 = vmatpush1.bf16.msra.mxu1 %v4220_v12  ;;  %3615 = vmatprep.subr.bf16.mxu0 %v3614_v13  ;;  %v537_v12 = vld [vmem:[#allocation5 + $0xc10] sm:$0xff]  ;;  %v4242_v13 = vpack.c.bf16 %v542_v6, %v538_v5  ;;  %v3636_v20 = vpack.c.bf16 %v539_v11, %v535_v10  ;;  %v4260_v6 = vpack.c.bf16 %v573_v0, %v569_v62  ;;  %v620_v62 = vld [vmem:[#allocation5 + $0xea8] sm:$0xff]  ;;  %v622_v0 = vld [vmem:[#allocation5 + $0xeb8] sm:$0xff] }
 0x142   :  { %4223 = vmatprep.subr.bf16.mxu1 %v4222_v17  ;;  %v546_v17 = vld [vmem:[#allocation5 + $0xc58] sm:$0xff]  ;;  %v4244_v21 = vpack.c.bf16 %v541_v14, %v537_v12  ;;  %v577_v10 = vld [vmem:[#allocation5 + $0xd50] sm:$0xff]  ;;  %v4262_v11 = vpack.c.bf16 %v582_v4, %v578_v3  ;;  %v588_v14 = vld [vmem:[#allocation5 + $0xda8] sm:$0xff] }
 0x143   :  { %v4246_v26 = vpack.c.bf16 %v550_v18, %v546_v17  ;;  %v581_v12 = vld [vmem:[#allocation5 + $0xd70] sm:$0xff]  ;;  %v615_v4 = vld [vmem:[#allocation5 + $0xe80] sm:$0xff] }
 0x144   :  { %3617 = vmatpush1.bf16.msra.mxu0 %v3616_v23  ;;  %v543_v23 = vld [vmem:[#allocation5 + $0xc40] sm:$0xff]  ;;  %v4264_v18 = vpack.c.bf16 %v581_v12, %v577_v10  ;;  %v628_v10 = vld [vmem:[#allocation5 + $0xee8] sm:$0xff]  ;;  %v630_v12 = vld [vmem:[#allocation5 + $0xef8] sm:$0xff] }
 0x145   :  { %4225 = vmatpush1.bf16.msra.mxu1 %v4224_v24  ;;  %3619 = vmatprep.subr.bf16.mxu0 %v3618_v25  ;;  %v547_v24 = vld [vmem:[#allocation5 + $0xc60] sm:$0xff]  ;;  %v545_v25 = vld [vmem:[#allocation5 + $0xc50] sm:$0xff] }
 0x146   :  { %4227 = vmatprep.subr.bf16.mxu1 %v4226_v29  ;;  %v556_v29 = vld [vmem:[#allocation5 + $0xca8] sm:$0xff]  ;;  %v3640_v33 = vpack.c.bf16 %v547_v24, %v543_v23  ;;  %v4248_v34 = vpack.c.bf16 %v549_v27, %v545_v25  ;;  %v4266_v23 = vpack.c.bf16 %v590_v16, %v586_v15  ;;  %v589_v24 = vld [vmem:[#allocation5 + $0xdb0] sm:$0xff]  ;;  %v594_v27 = vld [vmem:[#allocation5 + $0xdd8] sm:$0xff] }
 0x147   :  { %v592_v25 = vld [vmem:[#allocation5 + $0xdc8] sm:$0xff]  ;;  %v623_v16 = vld [vmem:[#allocation5 + $0xec0] sm:$0xff] }
 0x148   :  { %3621 = vmatpush1.bf16.msra.mxu0 %v3620_v35  ;;  %v3642_v35 = vpack.c.bf16 %v556_v29, %v552_v28  ;;  %v598_v28 = vld [vmem:[#allocation5 + $0xdf8] sm:$0xff] }
 0x149   :  { %4229 = vmatpush1.bf16.msra.mxu1 %v4228_v36  ;;  %3623 = vmatprep.subr.bf16.mxu0 %v3622_v37  ;;  %v551_v36 = vld [vmem:[#allocation5 + $0xc80] sm:$0xff] }
 0x14a   :  { %4231 = vmatprep.subr.bf16.mxu1 %v4230_v41  ;;  %v555_v37 = vld [vmem:[#allocation5 + $0xca0] sm:$0xff]  ;;  %v560_v41 = vld [vmem:[#allocation5 + $0xcc8] sm:$0xff] }
 0x14b   :  { %v3644_v45 = vpack.c.bf16 %v555_v37, %v551_v36  ;;  %v597_v36 = vld [vmem:[#allocation5 + $0xdf0] sm:$0xff]  ;;  %v600_v37 = vld [vmem:[#allocation5 + $0xe08] sm:$0xff] }
 0x14c   :  { %3625 = vmatpush1.bf16.msra.mxu0 %v3624_v47  ;;  %v3646_v47 = vpack.c.bf16 %v564_v42, %v560_v41  ;;  %v3666_v43 = vpack.c.bf16 %v604_v38, %v600_v37 }
 0x14d   :  { %4233 = vmatpush1.bf16.msra.mxu1 %v4232_v48  ;;  %3627 = vmatprep.subr.bf16.mxu0 %v3626_v49  ;;  %v559_v48 = vld [vmem:[#allocation5 + $0xcc0] sm:$0xff] }
 0x14e   :  { %4235 = vmatprep.subr.bf16.mxu1 %v4234_v53  ;;  %v563_v49 = vld [vmem:[#allocation5 + $0xce0] sm:$0xff]  ;;  %v568_v53 = vld [vmem:[#allocation5 + $0xd08] sm:$0xff] }
 0x14f   :  { %v3648_v57 = vpack.c.bf16 %v563_v49, %v559_v48  ;;  %v605_v48 = vld [vmem:[#allocation5 + $0xe30] sm:$0xff]  ;;  %v608_v49 = vld [vmem:[#allocation5 + $0xe48] sm:$0xff] }
 0x150   :  { %3629 = vmatpush1.bf16.msra.mxu0 %v3628_v59  ;;  %v3650_v59 = vpack.c.bf16 %v572_v54, %v568_v53  ;;  %v3670_v55 = vpack.c.bf16 %v612_v50, %v608_v49 }
 0x151   :  { %4237 = vmatpush1.bf16.msra.mxu1 %v4236_v60  ;;  %3631 = vmatprep.subr.bf16.mxu0 %v3630_v61  ;;  %v567_v60 = vld [vmem:[#allocation5 + $0xd00] sm:$0xff] }
 0x152   :  { %4239 = vmatprep.subr.bf16.mxu1 %v4238_v1  ;;  %v571_v61 = vld [vmem:[#allocation5 + $0xd20] sm:$0xff]  ;;  %v576_v1 = vld [vmem:[#allocation5 + $0xd48] sm:$0xff] }
 0x153   :  { %v3652_v5 = vpack.c.bf16 %v571_v61, %v567_v60  ;;  %v613_v60 = vld [vmem:[#allocation5 + $0xe70] sm:$0xff]  ;;  %v616_v61 = vld [vmem:[#allocation5 + $0xe88] sm:$0xff] }
 0x154   :  { %3633 = vmatpush1.bf16.msra.mxu0 %v3632_v7  ;;  %v3654_v7 = vpack.c.bf16 %v580_v2, %v576_v1  ;;  %v3674_v3 = vpack.c.bf16 %v620_v62, %v616_v61 }
 0x155   :  { %4241 = vmatpush1.bf16.msra.mxu1 %v4240_v8  ;;  %3635 = vmatprep.subr.bf16.mxu0 %v3634_v9  ;;  %v575_v8 = vld [vmem:[#allocation5 + $0xd40] sm:$0xff] }
 0x156   :  { %4243 = vmatprep.subr.bf16.mxu1 %v4242_v13  ;;  %v579_v9 = vld [vmem:[#allocation5 + $0xd60] sm:$0xff]  ;;  %v584_v13 = vld [vmem:[#allocation5 + $0xd88] sm:$0xff] }
 0x157   :  { %1596 = vmatmul.mubr.f32.vlgmr.msra.gmra.mrb[0].mxu0 %v136_v19  ;;  %v3656_v17 = vpack.c.bf16 %v579_v9, %v575_v8  ;;  %v621_v8 = vld [vmem:[#allocation5 + $0xeb0] sm:$0xff]  ;;  %v624_v9 = vld [vmem:[#allocation5 + $0xec8] sm:$0xff] }
 0x158   :  { %3637 = vmatpush1.bf16.msra.mxu0 %v3636_v20  ;;  %2306 = vmatmul.mubr.f32.vlgmr.msra.gmra.mrb[0].mxu1 %v136_v19  ;;  %v3658_v19 = vpack.c.bf16 %v588_v14, %v584_v13  ;;  %v583_v20 = vld [vmem:[#allocation5 + $0xd80] sm:$0xff]  ;;  %v3678_v15 = vpack.c.bf16 %v628_v10, %v624_v9 }
 0x159   :  { %4245 = vmatpush1.bf16.msra.mxu1 %v4244_v21  ;;  %3639 = vmatprep.subr.bf16.mxu0 %v3638_v22  ;;  %v587_v21 = vld [vmem:[#allocation5 + $0xda0] sm:$0xff]  ;;  %v585_v22 = vld [vmem:[#allocation5 + $0xd90] sm:$0xff] }
 0x15a   :  { %4247 = vmatprep.subr.bf16.mxu1 %v4246_v26  ;;  %1666 = vmatprep.mubr.f32.mxu0 %v139_v32  ;;  %v596_v26 = vld [vmem:[#allocation5 + $0xde8] sm:$0xff]  ;;  %v3660_v29 = vpack.c.bf16 %v587_v21, %v583_v20  ;;  %v4268_v30 = vpack.c.bf16 %v589_v24, %v585_v22  ;;  %v629_v20 = vld [vmem:[#allocation5 + $0xef0] sm:$0xff]  ;;  %v638_v24 = vld [vmem:[#allocation5 + $0xf38] sm:$0xff] }
 0x15b   :  { %2376 = vmatprep.mubr.f32.mxu1 %v139_v32  ;;  %v3662_v31 = vpack.c.bf16 %v596_v26, %v592_v25  ;;  %v591_v32 = vld [vmem:[#allocation5 + $0xdc0] sm:$0xff]  ;;  %v632_v21 = vld [vmem:[#allocation5 + $0xf08] sm:$0xff] }
 0x15c   :  { %3641 = vmatpush1.bf16.msra.mxu0 %v3640_v33  ;;  %v595_v33 = vld [vmem:[#allocation5 + $0xde0] sm:$0xff]  ;;  %v636_v22 = vld [vmem:[#allocation5 + $0xf28] sm:$0xff] }
 0x15d   :  { %4249 = vmatpush1.bf16.msra.mxu1 %v4248_v34  ;;  %3643 = vmatprep.subr.bf16.mxu0 %v3642_v35  ;;  %v593_v34 = vld [vmem:[#allocation5 + $0xdd0] sm:$0xff]  ;;  %v4270_v35 = vpack.c.bf16 %v598_v28, %v594_v27  ;;  %v3664_v41 = vpack.c.bf16 %v595_v33, %v591_v32  ;;  %v3682_v27 = vpack.c.bf16 %v636_v22, %v632_v21  ;;  %v631_v28 = vld [vmem:[#allocation5 + $0xf00] sm:$0xff]  ;;  %v640_v33 = vld [vmem:[#allocation5 + $0xf48] sm:$0xff] }
 0x15e   :  { %4251 = vmatprep.subr.bf16.mxu1 %v4250_v39  ;;  %v602_v39 = vld [vmem:[#allocation5 + $0xe18] sm:$0xff]  ;;  %v4272_v42 = vpack.c.bf16 %v597_v36, %v593_v34  ;;  %v637_v32 = vld [vmem:[#allocation5 + $0xf30] sm:$0xff]  ;;  %v644_v34 = vld [vmem:[#allocation5 + $0xf68] sm:$0xff] }
 0x15f   :  { %v646_v36 = vld [vmem:[#allocation5 + $0xf78] sm:$0xff] }
 0x160   :  { %3645 = vmatpush1.bf16.msra.mxu0 %v3644_v45  ;;  %v603_v45 = vld [vmem:[#allocation5 + $0xe20] sm:$0xff]  ;;  %v138_v21 = vld [vmem:[#allocation2 + $0x30] sm:$0xff] }
 0x161   :  { %4253 = vmatpush1.bf16.msra.mxu1 %v4252_v46  ;;  %3647 = vmatprep.subr.bf16.mxu0 %v3646_v47  ;;  %v601_v46 = vld [vmem:[#allocation5 + $0xe10] sm:$0xff]  ;;  %v4274_v47 = vpack.c.bf16 %v606_v40, %v602_v39  ;;  %v3668_v53 = vpack.c.bf16 %v603_v45, %v599_v44  ;;  %v3686_v39 = vpack.c.bf16 %v644_v34, %v640_v33  ;;  %v639_v40 = vld [vmem:[#allocation5 + $0xf40] sm:$0xff]  ;;  %v648_v45 = vld [vmem:[#allocation5 + $0xf88] sm:$0xff] }
 0x162   :  { %4255 = vmatprep.subr.bf16.mxu1 %v4254_v51  ;;  %v610_v51 = vld [vmem:[#allocation5 + $0xe58] sm:$0xff]  ;;  %v4276_v54 = vpack.c.bf16 %v605_v48, %v601_v46  ;;  %v645_v44 = vld [vmem:[#allocation5 + $0xf70] sm:$0xff]  ;;  %v652_v46 = vld [vmem:[#allocation5 + $0xfa8] sm:$0xff] }
 0x163   :  { %v654_v48 = vld [vmem:[#allocation5 + $0xfb8] sm:$0xff]  ;;  %v141_v34 = vld [vmem:[#allocation2 + $0x48] sm:$0xff] }
 0x164   :  { %3649 = vmatpush1.bf16.msra.mxu0 %v3648_v57  ;;  %v611_v57 = vld [vmem:[#allocation5 + $0xe60] sm:$0xff]  ;;  %v686_v33 = vld [vmem:[#allocation5 + $0x10b8] sm:$0xff] }
 0x165   :  { %4257 = vmatpush1.bf16.msra.mxu1 %v4256_v58  ;;  %3651 = vmatprep.subr.bf16.mxu0 %v3650_v59  ;;  %v609_v58 = vld [vmem:[#allocation5 + $0xe50] sm:$0xff]  ;;  %v4278_v59 = vpack.c.bf16 %v614_v52, %v610_v51  ;;  %v3672_v1 = vpack.c.bf16 %v611_v57, %v607_v56  ;;  %v3690_v51 = vpack.c.bf16 %v652_v46, %v648_v45  ;;  %v647_v52 = vld [vmem:[#allocation5 + $0xf80] sm:$0xff]  ;;  %v656_v57 = vld [vmem:[#allocation5 + $0xfc8] sm:$0xff] }
 0x166   :  { %4259 = vmatprep.subr.bf16.mxu1 %v4258_v63  ;;  %v618_v63 = vld [vmem:[#allocation5 + $0xe98] sm:$0xff]  ;;  %v4280_v2 = vpack.c.bf16 %v613_v60, %v609_v58  ;;  %v653_v56 = vld [vmem:[#allocation5 + $0xfb0] sm:$0xff]  ;;  %v660_v58 = vld [vmem:[#allocation5 + $0xfe8] sm:$0xff] }
 0x167   :  { %v662_v60 = vld [vmem:[#allocation5 + $0xff8] sm:$0xff] }
 0x168   :  { %3653 = vmatpush1.bf16.msra.mxu0 %v3652_v5  ;;  %v619_v5 = vld [vmem:[#allocation5 + $0xea0] sm:$0xff]  ;;  %v690_v45 = vld [vmem:[#allocation5 + $0x10d8] sm:$0xff] }
 0x169   :  { %4261 = vmatpush1.bf16.msra.mxu1 %v4260_v6  ;;  %3655 = vmatprep.subr.bf16.mxu0 %v3654_v7  ;;  %v617_v6 = vld [vmem:[#allocation5 + $0xe90] sm:$0xff]  ;;  %v4282_v7 = vpack.c.bf16 %v622_v0, %v618_v63  ;;  %v3676_v13 = vpack.c.bf16 %v619_v5, %v615_v4  ;;  %v3694_v63 = vpack.c.bf16 %v660_v58, %v656_v57  ;;  %v655_v0 = vld [vmem:[#allocation5 + $0xfc0] sm:$0xff]  ;;  %v664_v5 = vld [vmem:[#allocation5 + $0x1008] sm:$0xff] }
 0x16a   :  { %4263 = vmatprep.subr.bf16.mxu1 %v4262_v11  ;;  %v626_v11 = vld [vmem:[#allocation5 + $0xed8] sm:$0xff]  ;;  %v4284_v14 = vpack.c.bf16 %v621_v8, %v617_v6  ;;  %v661_v4 = vld [vmem:[#allocation5 + $0xff0] sm:$0xff]  ;;  %v668_v6 = vld [vmem:[#allocation5 + $0x1028] sm:$0xff] }
 0x16b   :  { %v670_v8 = vld [vmem:[#allocation5 + $0x1038] sm:$0xff] }
 0x16c   :  { %3657 = vmatpush1.bf16.msra.mxu0 %v3656_v17  ;;  %v627_v17 = vld [vmem:[#allocation5 + $0xee0] sm:$0xff]  ;;  %v694_v46 = vld [vmem:[#allocation5 + $0x10f8] sm:$0xff] }
 0x16d   :  { %4265 = vmatpush1.bf16.msra.mxu1 %v4264_v18  ;;  %3659 = vmatprep.subr.bf16.mxu0 %v3658_v19  ;;  %v625_v18 = vld [vmem:[#allocation5 + $0xed0] sm:$0xff]  ;;  %v4286_v19 = vpack.c.bf16 %v630_v12, %v626_v11  ;;  %v3680_v25 = vpack.c.bf16 %v627_v17, %v623_v16  ;;  %v3698_v11 = vpack.c.bf16 %v668_v6, %v664_v5  ;;  %v663_v12 = vld [vmem:[#allocation5 + $0x1000] sm:$0xff]  ;;  %v672_v17 = vld [vmem:[#allocation5 + $0x1048] sm:$0xff] }
 0x16e   :  { %4267 = vmatprep.subr.bf16.mxu1 %v4266_v23  ;;  %v634_v23 = vld [vmem:[#allocation5 + $0xf18] sm:$0xff]  ;;  %v4288_v26 = vpack.c.bf16 %v629_v20, %v625_v18  ;;  %v669_v16 = vld [vmem:[#allocation5 + $0x1030] sm:$0xff]  ;;  %v676_v18 = vld [vmem:[#allocation5 + $0x1068] sm:$0xff] }
 0x16f   :  { %v678_v20 = vld [vmem:[#allocation5 + $0x1078] sm:$0xff] }
 0x170   :  { %3661 = vmatpush1.bf16.msra.mxu0 %v3660_v29  ;;  %v635_v29 = vld [vmem:[#allocation5 + $0xf20] sm:$0xff]  ;;  %v698_v57 = vld [vmem:[#allocation5 + $0x1118] sm:$0xff] }
 0x171   :  { %4269 = vmatpush1.bf16.msra.mxu1 %v4268_v30  ;;  %3663 = vmatprep.subr.bf16.mxu0 %v3662_v31  ;;  %v633_v30 = vld [vmem:[#allocation5 + $0xf10] sm:$0xff]  ;;  %v4290_v31 = vpack.c.bf16 %v638_v24, %v634_v23  ;;  %v3684_v37 = vpack.c.bf16 %v635_v29, %v631_v28  ;;  %v3702_v24 = vpack.c.bf16 %v676_v18, %v672_v17  ;;  %v702_v58 = vld [vmem:[#allocation5 + $0x1138] sm:$0xff] }
 0x172   :  { %4271 = vmatprep.subr.bf16.mxu1 %v4270_v35  ;;  %v642_v35 = vld [vmem:[#allocation5 + $0xf58] sm:$0xff]  ;;  %v4292_v38 = vpack.c.bf16 %v637_v32, %v633_v30  ;;  %v677_v29 = vld [vmem:[#allocation5 + $0x1070] sm:$0xff]  ;;  %v680_v30 = vld [vmem:[#allocation5 + $0x1088] sm:$0xff] }
 0x173   :  { %v682_v32 = vld [vmem:[#allocation5 + $0x1098] sm:$0xff] }
 0x174   :  { %3665 = vmatpush1.bf16.msra.mxu0 %v3664_v41  ;;  %v643_v41 = vld [vmem:[#allocation5 + $0xf60] sm:$0xff]  ;;  %v706_v5 = vld [vmem:[#allocation5 + $0x1158] sm:$0xff] }
 0x175   :  { %4273 = vmatpush1.bf16.msra.mxu1 %v4272_v42  ;;  %3667 = vmatprep.subr.bf16.mxu0 %v3666_v43  ;;  %v641_v42 = vld [vmem:[#allocation5 + $0xf50] sm:$0xff]  ;;  %v4294_v43 = vpack.c.bf16 %v646_v36, %v642_v35  ;;  %v3688_v49 = vpack.c.bf16 %v643_v41, %v639_v40  ;;  %v4314_v41 = vpack.c.bf16 %v686_v33, %v682_v32  ;;  %v710_v6 = vld [vmem:[#allocation5 + $0x1178] sm:$0xff] }
 0x176   :  { %4275 = vmatprep.subr.bf16.mxu1 %v4274_v47  ;;  %v650_v47 = vld [vmem:[#allocation5 + $0xf98] sm:$0xff]  ;;  %v4296_v50 = vpack.c.bf16 %v645_v44, %v641_v42  ;;  %v681_v40 = vld [vmem:[#allocation5 + $0x1090] sm:$0xff]  ;;  %v692_v44 = vld [vmem:[#allocation5 + $0x10e8] sm:$0xff] }
 0x177   :  { %v685_v42 = vld [vmem:[#allocation5 + $0x10b0] sm:$0xff]  ;;  %v714_v17 = vld [vmem:[#allocation5 + $0x1198] sm:$0xff] }
 0x178   :  { %3669 = vmatpush1.bf16.msra.mxu0 %v3668_v53  ;;  %v651_v53 = vld [vmem:[#allocation5 + $0xfa0] sm:$0xff]  ;;  %v718_v18 = vld [vmem:[#allocation5 + $0x11b8] sm:$0xff] }
 0x179   :  { %4277 = vmatpush1.bf16.msra.mxu1 %v4276_v54  ;;  %3671 = vmatprep.subr.bf16.mxu0 %v3670_v55  ;;  %v649_v54 = vld [vmem:[#allocation5 + $0xf90] sm:$0xff]  ;;  %v4298_v55 = vpack.c.bf16 %v654_v48, %v650_v47  ;;  %v3692_v61 = vpack.c.bf16 %v651_v53, %v647_v52  ;;  %v4316_v48 = vpack.c.bf16 %v685_v42, %v681_v40  ;;  %v732_v40 = vld [vmem:[#allocation5 + $0x1228] sm:$0xff]  ;;  %v734_v42 = vld [vmem:[#allocation5 + $0x1238] sm:$0xff] }
 0x17a   :  { %4279 = vmatprep.subr.bf16.mxu1 %v4278_v59  ;;  %v658_v59 = vld [vmem:[#allocation5 + $0xfd8] sm:$0xff]  ;;  %v4300_v62 = vpack.c.bf16 %v653_v56, %v649_v54  ;;  %v689_v52 = vld [vmem:[#allocation5 + $0x10d0] sm:$0xff]  ;;  %v4318_v53 = vpack.c.bf16 %v694_v46, %v690_v45  ;;  %v700_v56 = vld [vmem:[#allocation5 + $0x1128] sm:$0xff] }
 0x17b   :  { %v693_v54 = vld [vmem:[#allocation5 + $0x10f0] sm:$0xff]  ;;  %v727_v46 = vld [vmem:[#allocation5 + $0x1200] sm:$0xff] }
 0x17c   :  { %3673 = vmatpush1.bf16.msra.mxu0 %v3672_v1  ;;  %v659_v1 = vld [vmem:[#allocation5 + $0xfe0] sm:$0xff] }
 0x17d   :  { %4281 = vmatpush1.bf16.msra.mxu1 %v4280_v2  ;;  %3675 = vmatprep.subr.bf16.mxu0 %v3674_v3  ;;  %v657_v2 = vld [vmem:[#allocation5 + $0xfd0] sm:$0xff]  ;;  %v4302_v3 = vpack.c.bf16 %v662_v60, %v658_v59  ;;  %v3696_v9 = vpack.c.bf16 %v659_v1, %v655_v0  ;;  %v4320_v60 = vpack.c.bf16 %v693_v54, %v689_v52  ;;  %v740_v52 = vld [vmem:[#allocation5 + $0x1268] sm:$0xff]  ;;  %v742_v54 = vld [vmem:[#allocation5 + $0x1278] sm:$0xff] }
 0x17e   :  { %4283 = vmatprep.subr.bf16.mxu1 %v4282_v7  ;;  %v666_v7 = vld [vmem:[#allocation5 + $0x1018] sm:$0xff]  ;;  %v4304_v10 = vpack.c.bf16 %v661_v4, %v657_v2  ;;  %v697_v0 = vld [vmem:[#allocation5 + $0x1110] sm:$0xff]  ;;  %v4322_v1 = vpack.c.bf16 %v702_v58, %v698_v57  ;;  %v708_v4 = vld [vmem:[#allocation5 + $0x1168] sm:$0xff] }
 0x17f   :  { %v701_v2 = vld [vmem:[#allocation5 + $0x1130] sm:$0xff]  ;;  %v735_v58 = vld [vmem:[#allocation5 + $0x1240] sm:$0xff] }
 0x180   :  { %3677 = vmatpush1.bf16.msra.mxu0 %v3676_v13  ;;  %v667_v13 = vld [vmem:[#allocation5 + $0x1020] sm:$0xff] }
 0x181   :  { %4285 = vmatpush1.bf16.msra.mxu1 %v4284_v14  ;;  %3679 = vmatprep.subr.bf16.mxu0 %v3678_v15  ;;  %v665_v14 = vld [vmem:[#allocation5 + $0x1010] sm:$0xff]  ;;  %v4306_v15 = vpack.c.bf16 %v670_v8, %v666_v7  ;;  %v3700_v22 = vpack.c.bf16 %v667_v13, %v663_v12  ;;  %v4324_v8 = vpack.c.bf16 %v701_v2, %v697_v0  ;;  %v748_v0 = vld [vmem:[#allocation5 + $0x12a8] sm:$0xff]  ;;  %v750_v2 = vld [vmem:[#allocation5 + $0x12b8] sm:$0xff] }
 0x182   :  { %4287 = vmatprep.subr.bf16.mxu1 %v4286_v19  ;;  %v674_v19 = vld [vmem:[#allocation5 + $0x1058] sm:$0xff]  ;;  %v4308_v23 = vpack.c.bf16 %v669_v16, %v665_v14  ;;  %v705_v12 = vld [vmem:[#allocation5 + $0x1150] sm:$0xff]  ;;  %v4326_v13 = vpack.c.bf16 %v710_v6, %v706_v5  ;;  %v716_v16 = vld [vmem:[#allocation5 + $0x11a8] sm:$0xff] }
 0x183   :  { %v4310_v28 = vpack.c.bf16 %v678_v20, %v674_v19  ;;  %v709_v14 = vld [vmem:[#allocation5 + $0x1170] sm:$0xff]  ;;  %v743_v6 = vld [vmem:[#allocation5 + $0x1280] sm:$0xff] }
 0x184   :  { %3681 = vmatpush1.bf16.msra.mxu0 %v3680_v25  ;;  %v671_v25 = vld [vmem:[#allocation5 + $0x1040] sm:$0xff]  ;;  %v4328_v20 = vpack.c.bf16 %v709_v14, %v705_v12  ;;  %v756_v12 = vld [vmem:[#allocation5 + $0x12e8] sm:$0xff]  ;;  %v758_v14 = vld [vmem:[#allocation5 + $0x12f8] sm:$0xff] }
 0x185   :  { %4289 = vmatpush1.bf16.msra.mxu1 %v4288_v26  ;;  %3683 = vmatprep.subr.bf16.mxu0 %v3682_v27  ;;  %v675_v26 = vld [vmem:[#allocation5 + $0x1060] sm:$0xff]  ;;  %v673_v27 = vld [vmem:[#allocation5 + $0x1050] sm:$0xff] }
 0x186   :  { %4291 = vmatprep.subr.bf16.mxu1 %v4290_v31  ;;  %v684_v31 = vld [vmem:[#allocation5 + $0x10a8] sm:$0xff]  ;;  %v3704_v35 = vpack.c.bf16 %v675_v26, %v671_v25  ;;  %v4312_v36 = vpack.c.bf16 %v677_v29, %v673_v27  ;;  %v4330_v25 = vpack.c.bf16 %v718_v18, %v714_v17  ;;  %v717_v26 = vld [vmem:[#allocation5 + $0x11b0] sm:$0xff]  ;;  %v722_v29 = vld [vmem:[#allocation5 + $0x11d8] sm:$0xff] }
 0x187   :  { %v720_v27 = vld [vmem:[#allocation5 + $0x11c8] sm:$0xff]  ;;  %v751_v18 = vld [vmem:[#allocation5 + $0x12c0] sm:$0xff] }
 0x188   :  { %3685 = vmatpush1.bf16.msra.mxu0 %v3684_v37  ;;  %v3706_v37 = vpack.c.bf16 %v684_v31, %v680_v30  ;;  %v726_v30 = vld [vmem:[#allocation5 + $0x11f8] sm:$0xff] }
 0x189   :  { %4293 = vmatpush1.bf16.msra.mxu1 %v4292_v38  ;;  %3687 = vmatprep.subr.bf16.mxu0 %v3686_v39  ;;  %v679_v38 = vld [vmem:[#allocation5 + $0x1080] sm:$0xff] }
 0x18a   :  { %4295 = vmatprep.subr.bf16.mxu1 %v4294_v43  ;;  %v683_v39 = vld [vmem:[#allocation5 + $0x10a0] sm:$0xff]  ;;  %v688_v43 = vld [vmem:[#allocation5 + $0x10c8] sm:$0xff] }
 0x18b   :  { %v3708_v47 = vpack.c.bf16 %v683_v39, %v679_v38  ;;  %v725_v38 = vld [vmem:[#allocation5 + $0x11f0] sm:$0xff]  ;;  %v728_v39 = vld [vmem:[#allocation5 + $0x1208] sm:$0xff] }
 0x18c   :  { %3689 = vmatpush1.bf16.msra.mxu0 %v3688_v49  ;;  %v3710_v49 = vpack.c.bf16 %v692_v44, %v688_v43  ;;  %v3730_v45 = vpack.c.bf16 %v732_v40, %v728_v39 }
 0x18d   :  { %4297 = vmatpush1.bf16.msra.mxu1 %v4296_v50  ;;  %3691 = vmatprep.subr.bf16.mxu0 %v3690_v51  ;;  %v687_v50 = vld [vmem:[#allocation5 + $0x10c0] sm:$0xff] }
 0x18e   :  { %4299 = vmatprep.subr.bf16.mxu1 %v4298_v55  ;;  %v691_v51 = vld [vmem:[#allocation5 + $0x10e0] sm:$0xff]  ;;  %v696_v55 = vld [vmem:[#allocation5 + $0x1108] sm:$0xff] }
 0x18f   :  { %v3712_v59 = vpack.c.bf16 %v691_v51, %v687_v50  ;;  %v733_v50 = vld [vmem:[#allocation5 + $0x1230] sm:$0xff]  ;;  %v736_v51 = vld [vmem:[#allocation5 + $0x1248] sm:$0xff] }
 0x190   :  { %3693 = vmatpush1.bf16.msra.mxu0 %v3692_v61  ;;  %v3714_v61 = vpack.c.bf16 %v700_v56, %v696_v55  ;;  %v3734_v57 = vpack.c.bf16 %v740_v52, %v736_v51 }
 0x191   :  { %4301 = vmatpush1.bf16.msra.mxu1 %v4300_v62  ;;  %3695 = vmatprep.subr.bf16.mxu0 %v3694_v63  ;;  %v695_v62 = vld [vmem:[#allocation5 + $0x1100] sm:$0xff] }
 0x192   :  { %4303 = vmatprep.subr.bf16.mxu1 %v4302_v3  ;;  %v699_v63 = vld [vmem:[#allocation5 + $0x1120] sm:$0xff]  ;;  %v704_v3 = vld [vmem:[#allocation5 + $0x1148] sm:$0xff] }
 0x193   :  { %v3716_v7 = vpack.c.bf16 %v699_v63, %v695_v62  ;;  %v741_v62 = vld [vmem:[#allocation5 + $0x1270] sm:$0xff]  ;;  %v744_v63 = vld [vmem:[#allocation5 + $0x1288] sm:$0xff] }
 0x194   :  { %3697 = vmatpush1.bf16.msra.mxu0 %v3696_v9  ;;  %v3718_v9 = vpack.c.bf16 %v708_v4, %v704_v3  ;;  %v3738_v5 = vpack.c.bf16 %v748_v0, %v744_v63 }
 0x195   :  { %4305 = vmatpush1.bf16.msra.mxu1 %v4304_v10  ;;  %3699 = vmatprep.subr.bf16.mxu0 %v3698_v11  ;;  %v703_v10 = vld [vmem:[#allocation5 + $0x1140] sm:$0xff] }
 0x196   :  { %4307 = vmatprep.subr.bf16.mxu1 %v4306_v15  ;;  %v707_v11 = vld [vmem:[#allocation5 + $0x1160] sm:$0xff]  ;;  %v712_v15 = vld [vmem:[#allocation5 + $0x1188] sm:$0xff] }
 0x197   :  { %1667 = vmatmul.mubr.f32.vlgmr.msra.gmra.mrb[0].mxu0 %v138_v21  ;;  %v3720_v19 = vpack.c.bf16 %v707_v11, %v703_v10  ;;  %v749_v10 = vld [vmem:[#allocation5 + $0x12b0] sm:$0xff]  ;;  %v752_v11 = vld [vmem:[#allocation5 + $0x12c8] sm:$0xff] }
 0x198   :  { %3701 = vmatpush1.bf16.msra.mxu0 %v3700_v22  ;;  %2377 = vmatmul.mubr.f32.vlgmr.msra.gmra.mrb[0].mxu1 %v138_v21  ;;  %v3722_v21 = vpack.c.bf16 %v716_v16, %v712_v15  ;;  %v711_v22 = vld [vmem:[#allocation5 + $0x1180] sm:$0xff]  ;;  %v3742_v17 = vpack.c.bf16 %v756_v12, %v752_v11 }
 0x199   :  { %4309 = vmatpush1.bf16.msra.mxu1 %v4308_v23  ;;  %3703 = vmatprep.subr.bf16.mxu0 %v3702_v24  ;;  %v715_v23 = vld [vmem:[#allocation5 + $0x11a0] sm:$0xff]  ;;  %v713_v24 = vld [vmem:[#allocation5 + $0x1190] sm:$0xff] }
 0x19a   :  { %4311 = vmatprep.subr.bf16.mxu1 %v4310_v28  ;;  %1737 = vmatprep.mubr.f32.mxu0 %v141_v34  ;;  %v724_v28 = vld [vmem:[#allocation5 + $0x11e8] sm:$0xff]  ;;  %v3724_v31 = vpack.c.bf16 %v715_v23, %v711_v22  ;;  %v4332_v32 = vpack.c.bf16 %v717_v26, %v713_v24  ;;  %v757_v22 = vld [vmem:[#allocation5 + $0x12f0] sm:$0xff]  ;;  %v766_v26 = vld [vmem:[#allocation5 + $0x1338] sm:$0xff] }
 0x19b   :  { %2447 = vmatprep.mubr.f32.mxu1 %v141_v34  ;;  %v3726_v33 = vpack.c.bf16 %v724_v28, %v720_v27  ;;  %v719_v34 = vld [vmem:[#allocation5 + $0x11c0] sm:$0xff]  ;;  %v760_v23 = vld [vmem:[#allocation5 + $0x1308] sm:$0xff] }
 0x19c   :  { %3705 = vmatpush1.bf16.msra.mxu0 %v3704_v35  ;;  %v723_v35 = vld [vmem:[#allocation5 + $0x11e0] sm:$0xff]  ;;  %v764_v24 = vld [vmem:[#allocation5 + $0x1328] sm:$0xff] }
 0x19d   :  { %4313 = vmatpush1.bf16.msra.mxu1 %v4312_v36  ;;  %3707 = vmatprep.subr.bf16.mxu0 %v3706_v37  ;;  %v721_v36 = vld [vmem:[#allocation5 + $0x11d0] sm:$0xff]  ;;  %v4334_v37 = vpack.c.bf16 %v726_v30, %v722_v29  ;;  %v3728_v43 = vpack.c.bf16 %v723_v35, %v719_v34  ;;  %v3746_v29 = vpack.c.bf16 %v764_v24, %v760_v23  ;;  %v759_v30 = vld [vmem:[#allocation5 + $0x1300] sm:$0xff]  ;;  %v768_v35 = vld [vmem:[#allocation5 + $0x1348] sm:$0xff] }
 0x19e   :  { %4315 = vmatprep.subr.bf16.mxu1 %v4314_v41  ;;  %v730_v41 = vld [vmem:[#allocation5 + $0x1218] sm:$0xff]  ;;  %v4336_v44 = vpack.c.bf16 %v725_v38, %v721_v36  ;;  %v765_v34 = vld [vmem:[#allocation5 + $0x1330] sm:$0xff]  ;;  %v772_v36 = vld [vmem:[#allocation5 + $0x1368] sm:$0xff] }
 0x19f   :  { %v774_v38 = vld [vmem:[#allocation5 + $0x1378] sm:$0xff]  ;;  %v140_v23 = vld [vmem:[#allocation2 + $0x40] sm:$0xff] }
 0x1a0   :  { %3709 = vmatpush1.bf16.msra.mxu0 %v3708_v47  ;;  %v731_v47 = vld [vmem:[#allocation5 + $0x1220] sm:$0xff] }
 0x1a1   :  { %4317 = vmatpush1.bf16.msra.mxu1 %v4316_v48  ;;  %3711 = vmatprep.subr.bf16.mxu0 %v3710_v49  ;;  %v729_v48 = vld [vmem:[#allocation5 + $0x1210] sm:$0xff]  ;;  %v4338_v49 = vpack.c.bf16 %v734_v42, %v730_v41  ;;  %v3732_v55 = vpack.c.bf16 %v731_v47, %v727_v46  ;;  %v3750_v41 = vpack.c.bf16 %v772_v36, %v768_v35  ;;  %v767_v42 = vld [vmem:[#allocation5 + $0x1340] sm:$0xff]  ;;  %v776_v47 = vld [vmem:[#allocation5 + $0x1388] sm:$0xff] }
 0x1a2   :  { %4319 = vmatprep.subr.bf16.mxu1 %v4318_v53  ;;  %v738_v53 = vld [vmem:[#allocation5 + $0x1258] sm:$0xff]  ;;  %v4340_v56 = vpack.c.bf16 %v733_v50, %v729_v48  ;;  %v773_v46 = vld [vmem:[#allocation5 + $0x1370] sm:$0xff]  ;;  %v780_v48 = vld [vmem:[#allocation5 + $0x13a8] sm:$0xff] }
 0x1a3   :  { %v782_v50 = vld [vmem:[#allocation5 + $0x13b8] sm:$0xff]  ;;  %v143_v36 = vld [vmem:[#allocation2 + $0x58] sm:$0xff] }
 0x1a4   :  { %3713 = vmatpush1.bf16.msra.mxu0 %v3712_v59  ;;  %v739_v59 = vld [vmem:[#allocation5 + $0x1260] sm:$0xff]  ;;  %v814_v35 = vld [vmem:[#allocation5 + $0x14b8] sm:$0xff] }
 0x1a5   :  { %4321 = vmatpush1.bf16.msra.mxu1 %v4320_v60  ;;  %3715 = vmatprep.subr.bf16.mxu0 %v3714_v61  ;;  %v737_v60 = vld [vmem:[#allocation5 + $0x1250] sm:$0xff]  ;;  %v4342_v61 = vpack.c.bf16 %v742_v54, %v738_v53  ;;  %v3736_v3 = vpack.c.bf16 %v739_v59, %v735_v58  ;;  %v3754_v53 = vpack.c.bf16 %v780_v48, %v776_v47  ;;  %v775_v54 = vld [vmem:[#allocation5 + $0x1380] sm:$0xff]  ;;  %v784_v59 = vld [vmem:[#allocation5 + $0x13c8] sm:$0xff] }
 0x1a6   :  { %4323 = vmatprep.subr.bf16.mxu1 %v4322_v1  ;;  %v746_v1 = vld [vmem:[#allocation5 + $0x1298] sm:$0xff]  ;;  %v4344_v4 = vpack.c.bf16 %v741_v62, %v737_v60  ;;  %v781_v58 = vld [vmem:[#allocation5 + $0x13b0] sm:$0xff]  ;;  %v788_v60 = vld [vmem:[#allocation5 + $0x13e8] sm:$0xff] }
 0x1a7   :  { %v790_v62 = vld [vmem:[#allocation5 + $0x13f8] sm:$0xff] }
 0x1a8   :  { %3717 = vmatpush1.bf16.msra.mxu0 %v3716_v7  ;;  %v747_v7 = vld [vmem:[#allocation5 + $0x12a0] sm:$0xff]  ;;  %v818_v47 = vld [vmem:[#allocation5 + $0x14d8] sm:$0xff] }
 0x1a9   :  { %4325 = vmatpush1.bf16.msra.mxu1 %v4324_v8  ;;  %3719 = vmatprep.subr.bf16.mxu0 %v3718_v9  ;;  %v745_v8 = vld [vmem:[#allocation5 + $0x1290] sm:$0xff]  ;;  %v4346_v9 = vpack.c.bf16 %v750_v2, %v746_v1  ;;  %v3740_v15 = vpack.c.bf16 %v747_v7, %v743_v6  ;;  %v3758_v1 = vpack.c.bf16 %v788_v60, %v784_v59  ;;  %v783_v2 = vld [vmem:[#allocation5 + $0x13c0] sm:$0xff]  ;;  %v792_v7 = vld [vmem:[#allocation5 + $0x1408] sm:$0xff] }
 0x1aa   :  { %4327 = vmatprep.subr.bf16.mxu1 %v4326_v13  ;;  %v754_v13 = vld [vmem:[#allocation5 + $0x12d8] sm:$0xff]  ;;  %v4348_v16 = vpack.c.bf16 %v749_v10, %v745_v8  ;;  %v789_v6 = vld [vmem:[#allocation5 + $0x13f0] sm:$0xff]  ;;  %v796_v8 = vld [vmem:[#allocation5 + $0x1428] sm:$0xff] }
 0x1ab   :  { %v798_v10 = vld [vmem:[#allocation5 + $0x1438] sm:$0xff] }
 0x1ac   :  { %3721 = vmatpush1.bf16.msra.mxu0 %v3720_v19  ;;  %v755_v19 = vld [vmem:[#allocation5 + $0x12e0] sm:$0xff]  ;;  %v822_v48 = vld [vmem:[#allocation5 + $0x14f8] sm:$0xff] }
 0x1ad   :  { %4329 = vmatpush1.bf16.msra.mxu1 %v4328_v20  ;;  %3723 = vmatprep.subr.bf16.mxu0 %v3722_v21  ;;  %v753_v20 = vld [vmem:[#allocation5 + $0x12d0] sm:$0xff]  ;;  %v4350_v21 = vpack.c.bf16 %v758_v14, %v754_v13  ;;  %v3744_v27 = vpack.c.bf16 %v755_v19, %v751_v18  ;;  %v3762_v13 = vpack.c.bf16 %v796_v8, %v792_v7  ;;  %v791_v14 = vld [vmem:[#allocation5 + $0x1400] sm:$0xff]  ;;  %v800_v19 = vld [vmem:[#allocation5 + $0x1448] sm:$0xff] }
 0x1ae   :  { %4331 = vmatprep.subr.bf16.mxu1 %v4330_v25  ;;  %v762_v25 = vld [vmem:[#allocation5 + $0x1318] sm:$0xff]  ;;  %v4352_v28 = vpack.c.bf16 %v757_v22, %v753_v20  ;;  %v797_v18 = vld [vmem:[#allocation5 + $0x1430] sm:$0xff]  ;;  %v804_v20 = vld [vmem:[#allocation5 + $0x1468] sm:$0xff] }
 0x1af   :  { %v806_v22 = vld [vmem:[#allocation5 + $0x1478] sm:$0xff] }
 0x1b0   :  { %3725 = vmatpush1.bf16.msra.mxu0 %v3724_v31  ;;  %v763_v31 = vld [vmem:[#allocation5 + $0x1320] sm:$0xff]  ;;  %v826_v59 = vld [vmem:[#allocation5 + $0x1518] sm:$0xff] }
 0x1b1   :  { %4333 = vmatpush1.bf16.msra.mxu1 %v4332_v32  ;;  %3727 = vmatprep.subr.bf16.mxu0 %v3726_v33  ;;  %v761_v32 = vld [vmem:[#allocation5 + $0x1310] sm:$0xff]  ;;  %v4354_v33 = vpack.c.bf16 %v766_v26, %v762_v25  ;;  %v3748_v39 = vpack.c.bf16 %v763_v31, %v759_v30  ;;  %v3766_v26 = vpack.c.bf16 %v804_v20, %v800_v19  ;;  %v830_v60 = vld [vmem:[#allocation5 + $0x1538] sm:$0xff] }
 0x1b2   :  { %4335 = vmatprep.subr.bf16.mxu1 %v4334_v37  ;;  %v770_v37 = vld [vmem:[#allocation5 + $0x1358] sm:$0xff]  ;;  %v4356_v40 = vpack.c.bf16 %v765_v34, %v761_v32  ;;  %v805_v31 = vld [vmem:[#allocation5 + $0x1470] sm:$0xff]  ;;  %v808_v32 = vld [vmem:[#allocation5 + $0x1488] sm:$0xff] }
 0x1b3   :  { %v810_v34 = vld [vmem:[#allocation5 + $0x1498] sm:$0xff] }
 0x1b4   :  { %3729 = vmatpush1.bf16.msra.mxu0 %v3728_v43  ;;  %v771_v43 = vld [vmem:[#allocation5 + $0x1360] sm:$0xff]  ;;  %v834_v7 = vld [vmem:[#allocation5 + $0x1558] sm:$0xff] }
 0x1b5   :  { %4337 = vmatpush1.bf16.msra.mxu1 %v4336_v44  ;;  %3731 = vmatprep.subr.bf16.mxu0 %v3730_v45  ;;  %v769_v44 = vld [vmem:[#allocation5 + $0x1350] sm:$0xff]  ;;  %v4358_v45 = vpack.c.bf16 %v774_v38, %v770_v37  ;;  %v3752_v51 = vpack.c.bf16 %v771_v43, %v767_v42  ;;  %v4378_v43 = vpack.c.bf16 %v814_v35, %v810_v34  ;;  %v838_v8 = vld [vmem:[#allocation5 + $0x1578] sm:$0xff] }
 0x1b6   :  { %4339 = vmatprep.subr.bf16.mxu1 %v4338_v49  ;;  %v778_v49 = vld [vmem:[#allocation5 + $0x1398] sm:$0xff]  ;;  %v4360_v52 = vpack.c.bf16 %v773_v46, %v769_v44  ;;  %v809_v42 = vld [vmem:[#allocation5 + $0x1490] sm:$0xff]  ;;  %v820_v46 = vld [vmem:[#allocation5 + $0x14e8] sm:$0xff] }
 0x1b7   :  { %v813_v44 = vld [vmem:[#allocation5 + $0x14b0] sm:$0xff]  ;;  %v842_v19 = vld [vmem:[#allocation5 + $0x1598] sm:$0xff] }
 0x1b8   :  { %3733 = vmatpush1.bf16.msra.mxu0 %v3732_v55  ;;  %v779_v55 = vld [vmem:[#allocation5 + $0x13a0] sm:$0xff]  ;;  %v846_v20 = vld [vmem:[#allocation5 + $0x15b8] sm:$0xff] }
 0x1b9   :  { %4341 = vmatpush1.bf16.msra.mxu1 %v4340_v56  ;;  %3735 = vmatprep.subr.bf16.mxu0 %v3734_v57  ;;  %v777_v56 = vld [vmem:[#allocation5 + $0x1390] sm:$0xff]  ;;  %v4362_v57 = vpack.c.bf16 %v782_v50, %v778_v49  ;;  %v3756_v63 = vpack.c.bf16 %v779_v55, %v775_v54  ;;  %v4380_v50 = vpack.c.bf16 %v813_v44, %v809_v42  ;;  %v860_v42 = vld [vmem:[#allocation5 + $0x1628] sm:$0xff]  ;;  %v862_v44 = vld [vmem:[#allocation5 + $0x1638] sm:$0xff] }
 0x1ba   :  { %4343 = vmatprep.subr.bf16.mxu1 %v4342_v61  ;;  %v786_v61 = vld [vmem:[#allocation5 + $0x13d8] sm:$0xff]  ;;  %v4364_v0 = vpack.c.bf16 %v781_v58, %v777_v56  ;;  %v817_v54 = vld [vmem:[#allocation5 + $0x14d0] sm:$0xff]  ;;  %v4382_v55 = vpack.c.bf16 %v822_v48, %v818_v47  ;;  %v828_v58 = vld [vmem:[#allocation5 + $0x1528] sm:$0xff] }
 0x1bb   :  { %v821_v56 = vld [vmem:[#allocation5 + $0x14f0] sm:$0xff]  ;;  %v855_v48 = vld [vmem:[#allocation5 + $0x1600] sm:$0xff] }
 0x1bc   :  { %3737 = vmatpush1.bf16.msra.mxu0 %v3736_v3  ;;  %v787_v3 = vld [vmem:[#allocation5 + $0x13e0] sm:$0xff] }
 0x1bd   :  { %4345 = vmatpush1.bf16.msra.mxu1 %v4344_v4  ;;  %3739 = vmatprep.subr.bf16.mxu0 %v3738_v5  ;;  %v785_v4 = vld [vmem:[#allocation5 + $0x13d0] sm:$0xff]  ;;  %v4366_v5 = vpack.c.bf16 %v790_v62, %v786_v61  ;;  %v3760_v11 = vpack.c.bf16 %v787_v3, %v783_v2  ;;  %v4384_v62 = vpack.c.bf16 %v821_v56, %v817_v54  ;;  %v868_v54 = vld [vmem:[#allocation5 + $0x1668] sm:$0xff]  ;;  %v870_v56 = vld [vmem:[#allocation5 + $0x1678] sm:$0xff] }
 0x1be   :  { %4347 = vmatprep.subr.bf16.mxu1 %v4346_v9  ;;  %v794_v9 = vld [vmem:[#allocation5 + $0x1418] sm:$0xff]  ;;  %v4368_v12 = vpack.c.bf16 %v789_v6, %v785_v4  ;;  %v825_v2 = vld [vmem:[#allocation5 + $0x1510] sm:$0xff]  ;;  %v4386_v3 = vpack.c.bf16 %v830_v60, %v826_v59  ;;  %v836_v6 = vld [vmem:[#allocation5 + $0x1568] sm:$0xff] }
 0x1bf   :  { %v829_v4 = vld [vmem:[#allocation5 + $0x1530] sm:$0xff]  ;;  %v863_v60 = vld [vmem:[#allocation5 + $0x1640] sm:$0xff] }
 0x1c0   :  { %3741 = vmatpush1.bf16.msra.mxu0 %v3740_v15  ;;  %v795_v15 = vld [vmem:[#allocation5 + $0x1420] sm:$0xff] }
 0x1c1   :  { %4349 = vmatpush1.bf16.msra.mxu1 %v4348_v16  ;;  %3743 = vmatprep.subr.bf16.mxu0 %v3742_v17  ;;  %v793_v16 = vld [vmem:[#allocation5 + $0x1410] sm:$0xff]  ;;  %v4370_v17 = vpack.c.bf16 %v798_v10, %v794_v9  ;;  %v3764_v24 = vpack.c.bf16 %v795_v15, %v791_v14  ;;  %v4388_v10 = vpack.c.bf16 %v829_v4, %v825_v2  ;;  %v876_v2 = vld [vmem:[#allocation5 + $0x16a8] sm:$0xff]  ;;  %v878_v4 = vld [vmem:[#allocation5 + $0x16b8] sm:$0xff] }
 0x1c2   :  { %4351 = vmatprep.subr.bf16.mxu1 %v4350_v21  ;;  %v802_v21 = vld [vmem:[#allocation5 + $0x1458] sm:$0xff]  ;;  %v4372_v25 = vpack.c.bf16 %v797_v18, %v793_v16  ;;  %v833_v14 = vld [vmem:[#allocation5 + $0x1550] sm:$0xff]  ;;  %v4390_v15 = vpack.c.bf16 %v838_v8, %v834_v7  ;;  %v844_v18 = vld [vmem:[#allocation5 + $0x15a8] sm:$0xff] }
 0x1c3   :  { %v4374_v30 = vpack.c.bf16 %v806_v22, %v802_v21  ;;  %v837_v16 = vld [vmem:[#allocation5 + $0x1570] sm:$0xff]  ;;  %v871_v8 = vld [vmem:[#allocation5 + $0x1680] sm:$0xff] }
 0x1c4   :  { %3745 = vmatpush1.bf16.msra.mxu0 %v3744_v27  ;;  %v799_v27 = vld [vmem:[#allocation5 + $0x1440] sm:$0xff]  ;;  %v4392_v22 = vpack.c.bf16 %v837_v16, %v833_v14  ;;  %v884_v14 = vld [vmem:[#allocation5 + $0x16e8] sm:$0xff]  ;;  %v886_v16 = vld [vmem:[#allocation5 + $0x16f8] sm:$0xff] }
 0x1c5   :  { %4353 = vmatpush1.bf16.msra.mxu1 %v4352_v28  ;;  %3747 = vmatprep.subr.bf16.mxu0 %v3746_v29  ;;  %v803_v28 = vld [vmem:[#allocation5 + $0x1460] sm:$0xff]  ;;  %v801_v29 = vld [vmem:[#allocation5 + $0x1450] sm:$0xff] }
 0x1c6   :  { %4355 = vmatprep.subr.bf16.mxu1 %v4354_v33  ;;  %v812_v33 = vld [vmem:[#allocation5 + $0x14a8] sm:$0xff]  ;;  %v3768_v37 = vpack.c.bf16 %v803_v28, %v799_v27  ;;  %v4376_v38 = vpack.c.bf16 %v805_v31, %v801_v29  ;;  %v4394_v27 = vpack.c.bf16 %v846_v20, %v842_v19  ;;  %v845_v28 = vld [vmem:[#allocation5 + $0x15b0] sm:$0xff]  ;;  %v850_v31 = vld [vmem:[#allocation5 + $0x15d8] sm:$0xff] }
 0x1c7   :  { %v848_v29 = vld [vmem:[#allocation5 + $0x15c8] sm:$0xff]  ;;  %v879_v20 = vld [vmem:[#allocation5 + $0x16c0] sm:$0xff] }
 0x1c8   :  { %3749 = vmatpush1.bf16.msra.mxu0 %v3748_v39  ;;  %v3770_v39 = vpack.c.bf16 %v812_v33, %v808_v32  ;;  %v854_v32 = vld [vmem:[#allocation5 + $0x15f8] sm:$0xff] }
 0x1c9   :  { %4357 = vmatpush1.bf16.msra.mxu1 %v4356_v40  ;;  %3751 = vmatprep.subr.bf16.mxu0 %v3750_v41  ;;  %v807_v40 = vld [vmem:[#allocation5 + $0x1480] sm:$0xff] }
 0x1ca   :  { %4359 = vmatprep.subr.bf16.mxu1 %v4358_v45  ;;  %v811_v41 = vld [vmem:[#allocation5 + $0x14a0] sm:$0xff]  ;;  %v816_v45 = vld [vmem:[#allocation5 + $0x14c8] sm:$0xff] }
 0x1cb   :  { %v3772_v49 = vpack.c.bf16 %v811_v41, %v807_v40  ;;  %v853_v40 = vld [vmem:[#allocation5 + $0x15f0] sm:$0xff]  ;;  %v856_v41 = vld [vmem:[#allocation5 + $0x1608] sm:$0xff] }
 0x1cc   :  { %3753 = vmatpush1.bf16.msra.mxu0 %v3752_v51  ;;  %v3774_v51 = vpack.c.bf16 %v820_v46, %v816_v45  ;;  %v3794_v47 = vpack.c.bf16 %v860_v42, %v856_v41 }
 0x1cd   :  { %4361 = vmatpush1.bf16.msra.mxu1 %v4360_v52  ;;  %3755 = vmatprep.subr.bf16.mxu0 %v3754_v53  ;;  %v815_v52 = vld [vmem:[#allocation5 + $0x14c0] sm:$0xff] }
 0x1ce   :  { %4363 = vmatprep.subr.bf16.mxu1 %v4362_v57  ;;  %v819_v53 = vld [vmem:[#allocation5 + $0x14e0] sm:$0xff]  ;;  %v824_v57 = vld [vmem:[#allocation5 + $0x1508] sm:$0xff] }
 0x1cf   :  { %v3776_v61 = vpack.c.bf16 %v819_v53, %v815_v52  ;;  %v861_v52 = vld [vmem:[#allocation5 + $0x1630] sm:$0xff]  ;;  %v864_v53 = vld [vmem:[#allocation5 + $0x1648] sm:$0xff] }
 0x1d0   :  { %3757 = vmatpush1.bf16.msra.mxu0 %v3756_v63  ;;  %v3778_v63 = vpack.c.bf16 %v828_v58, %v824_v57  ;;  %v3798_v59 = vpack.c.bf16 %v868_v54, %v864_v53 }
 0x1d1   :  { %4365 = vmatpush1.bf16.msra.mxu1 %v4364_v0  ;;  %3759 = vmatprep.subr.bf16.mxu0 %v3758_v1  ;;  %v823_v0 = vld [vmem:[#allocation5 + $0x1500] sm:$0xff] }
 0x1d2   :  { %4367 = vmatprep.subr.bf16.mxu1 %v4366_v5  ;;  %v827_v1 = vld [vmem:[#allocation5 + $0x1520] sm:$0xff]  ;;  %v832_v5 = vld [vmem:[#allocation5 + $0x1548] sm:$0xff] }
 0x1d3   :  { %v3780_v9 = vpack.c.bf16 %v827_v1, %v823_v0  ;;  %v869_v0 = vld [vmem:[#allocation5 + $0x1670] sm:$0xff]  ;;  %v872_v1 = vld [vmem:[#allocation5 + $0x1688] sm:$0xff] }
 0x1d4   :  { %3761 = vmatpush1.bf16.msra.mxu0 %v3760_v11  ;;  %v3782_v11 = vpack.c.bf16 %v836_v6, %v832_v5  ;;  %v3802_v7 = vpack.c.bf16 %v876_v2, %v872_v1 }
 0x1d5   :  { %4369 = vmatpush1.bf16.msra.mxu1 %v4368_v12  ;;  %3763 = vmatprep.subr.bf16.mxu0 %v3762_v13  ;;  %v831_v12 = vld [vmem:[#allocation5 + $0x1540] sm:$0xff] }
 0x1d6   :  { %4371 = vmatprep.subr.bf16.mxu1 %v4370_v17  ;;  %v835_v13 = vld [vmem:[#allocation5 + $0x1560] sm:$0xff]  ;;  %v840_v17 = vld [vmem:[#allocation5 + $0x1588] sm:$0xff] }
 0x1d7   :  { %1738 = vmatmul.mubr.f32.vlgmr.msra.gmra.mrb[0].mxu0 %v140_v23  ;;  %v3784_v21 = vpack.c.bf16 %v835_v13, %v831_v12  ;;  %v877_v12 = vld [vmem:[#allocation5 + $0x16b0] sm:$0xff]  ;;  %v880_v13 = vld [vmem:[#allocation5 + $0x16c8] sm:$0xff] }
 0x1d8   :  { %3765 = vmatpush1.bf16.msra.mxu0 %v3764_v24  ;;  %2448 = vmatmul.mubr.f32.vlgmr.msra.gmra.mrb[0].mxu1 %v140_v23  ;;  %v3786_v23 = vpack.c.bf16 %v844_v18, %v840_v17  ;;  %v839_v24 = vld [vmem:[#allocation5 + $0x1580] sm:$0xff]  ;;  %v3806_v19 = vpack.c.bf16 %v884_v14, %v880_v13 }
 0x1d9   :  { %4373 = vmatpush1.bf16.msra.mxu1 %v4372_v25  ;;  %3767 = vmatprep.subr.bf16.mxu0 %v3766_v26  ;;  %v843_v25 = vld [vmem:[#allocation5 + $0x15a0] sm:$0xff]  ;;  %v841_v26 = vld [vmem:[#allocation5 + $0x1590] sm:$0xff] }
 0x1da   :  { %4375 = vmatprep.subr.bf16.mxu1 %v4374_v30  ;;  %1808 = vmatprep.mubr.f32.mxu0 %v143_v36  ;;  %v852_v30 = vld [vmem:[#allocation5 + $0x15e8] sm:$0xff]  ;;  %v3788_v33 = vpack.c.bf16 %v843_v25, %v839_v24  ;;  %v4396_v34 = vpack.c.bf16 %v845_v28, %v841_v26  ;;  %v885_v24 = vld [vmem:[#allocation5 + $0x16f0] sm:$0xff]  ;;  %v894_v28 = vld [vmem:[#allocation5 + $0x1738] sm:$0xff] }
 0x1db   :  { %2518 = vmatprep.mubr.f32.mxu1 %v143_v36  ;;  %v3790_v35 = vpack.c.bf16 %v852_v30, %v848_v29  ;;  %v847_v36 = vld [vmem:[#allocation5 + $0x15c0] sm:$0xff]  ;;  %v888_v25 = vld [vmem:[#allocation5 + $0x1708] sm:$0xff] }
 0x1dc   :  { %3769 = vmatpush1.bf16.msra.mxu0 %v3768_v37  ;;  %v851_v37 = vld [vmem:[#allocation5 + $0x15e0] sm:$0xff]  ;;  %v892_v26 = vld [vmem:[#allocation5 + $0x1728] sm:$0xff] }
 0x1dd   :  { %4377 = vmatpush1.bf16.msra.mxu1 %v4376_v38  ;;  %3771 = vmatprep.subr.bf16.mxu0 %v3770_v39  ;;  %v849_v38 = vld [vmem:[#allocation5 + $0x15d0] sm:$0xff]  ;;  %v4398_v39 = vpack.c.bf16 %v854_v32, %v850_v31  ;;  %v3792_v45 = vpack.c.bf16 %v851_v37, %v847_v36  ;;  %v3810_v31 = vpack.c.bf16 %v892_v26, %v888_v25  ;;  %v887_v32 = vld [vmem:[#allocation5 + $0x1700] sm:$0xff]  ;;  %v896_v37 = vld [vmem:[#allocation5 + $0x1748] sm:$0xff] }
 0x1de   :  { %4379 = vmatprep.subr.bf16.mxu1 %v4378_v43  ;;  %v858_v43 = vld [vmem:[#allocation5 + $0x1618] sm:$0xff]  ;;  %v4400_v46 = vpack.c.bf16 %v853_v40, %v849_v38  ;;  %v893_v36 = vld [vmem:[#allocation5 + $0x1730] sm:$0xff]  ;;  %v900_v38 = vld [vmem:[#allocation5 + $0x1768] sm:$0xff] }
 0x1df   :  { %v902_v40 = vld [vmem:[#allocation5 + $0x1778] sm:$0xff] }
 0x1e0   :  { %3773 = vmatpush1.bf16.msra.mxu0 %v3772_v49  ;;  %v859_v49 = vld [vmem:[#allocation5 + $0x1620] sm:$0xff]  ;;  %v142_v25 = vld [vmem:[#allocation2 + $0x50] sm:$0xff] }
 0x1e1   :  { %4381 = vmatpush1.bf16.msra.mxu1 %v4380_v50  ;;  %3775 = vmatprep.subr.bf16.mxu0 %v3774_v51  ;;  %v857_v50 = vld [vmem:[#allocation5 + $0x1610] sm:$0xff]  ;;  %v4402_v51 = vpack.c.bf16 %v862_v44, %v858_v43  ;;  %v3796_v57 = vpack.c.bf16 %v859_v49, %v855_v48  ;;  %v3814_v43 = vpack.c.bf16 %v900_v38, %v896_v37  ;;  %v895_v44 = vld [vmem:[#allocation5 + $0x1740] sm:$0xff]  ;;  %v904_v49 = vld [vmem:[#allocation5 + $0x1788] sm:$0xff] }
 0x1e2   :  { %4383 = vmatprep.subr.bf16.mxu1 %v4382_v55  ;;  %v866_v55 = vld [vmem:[#allocation5 + $0x1658] sm:$0xff]  ;;  %v4404_v58 = vpack.c.bf16 %v861_v52, %v857_v50  ;;  %v901_v48 = vld [vmem:[#allocation5 + $0x1770] sm:$0xff]  ;;  %v908_v50 = vld [vmem:[#allocation5 + $0x17a8] sm:$0xff] }
 0x1e3   :  { %v910_v52 = vld [vmem:[#allocation5 + $0x17b8] sm:$0xff]  ;;  %v145_v38 = vld [vmem:[#allocation2 + $0x68] sm:$0xff] }
 0x1e4   :  { %3777 = vmatpush1.bf16.msra.mxu0 %v3776_v61  ;;  %v867_v61 = vld [vmem:[#allocation5 + $0x1660] sm:$0xff]  ;;  %v942_v37 = vld [vmem:[#allocation5 + $0x18b8] sm:$0xff] }
 0x1e5   :  { %4385 = vmatpush1.bf16.msra.mxu1 %v4384_v62  ;;  %3779 = vmatprep.subr.bf16.mxu0 %v3778_v63  ;;  %v865_v62 = vld [vmem:[#allocation5 + $0x1650] sm:$0xff]  ;;  %v4406_v63 = vpack.c.bf16 %v870_v56, %v866_v55  ;;  %v3800_v5 = vpack.c.bf16 %v867_v61, %v863_v60  ;;  %v3818_v55 = vpack.c.bf16 %v908_v50, %v904_v49  ;;  %v903_v56 = vld [vmem:[#allocation5 + $0x1780] sm:$0xff]  ;;  %v912_v61 = vld [vmem:[#allocation5 + $0x17c8] sm:$0xff] }
 0x1e6   :  { %4387 = vmatprep.subr.bf16.mxu1 %v4386_v3  ;;  %v874_v3 = vld [vmem:[#allocation5 + $0x1698] sm:$0xff]  ;;  %v4408_v6 = vpack.c.bf16 %v869_v0, %v865_v62  ;;  %v909_v60 = vld [vmem:[#allocation5 + $0x17b0] sm:$0xff]  ;;  %v916_v62 = vld [vmem:[#allocation5 + $0x17e8] sm:$0xff] }
 0x1e7   :  { %v918_v0 = vld [vmem:[#allocation5 + $0x17f8] sm:$0xff] }
 0x1e8   :  { %3781 = vmatpush1.bf16.msra.mxu0 %v3780_v9  ;;  %v875_v9 = vld [vmem:[#allocation5 + $0x16a0] sm:$0xff]  ;;  %v946_v49 = vld [vmem:[#allocation5 + $0x18d8] sm:$0xff] }
 0x1e9   :  { %4389 = vmatpush1.bf16.msra.mxu1 %v4388_v10  ;;  %3783 = vmatprep.subr.bf16.mxu0 %v3782_v11  ;;  %v873_v10 = vld [vmem:[#allocation5 + $0x1690] sm:$0xff]  ;;  %v4410_v11 = vpack.c.bf16 %v878_v4, %v874_v3  ;;  %v3804_v17 = vpack.c.bf16 %v875_v9, %v871_v8  ;;  %v3822_v3 = vpack.c.bf16 %v916_v62, %v912_v61  ;;  %v911_v4 = vld [vmem:[#allocation5 + $0x17c0] sm:$0xff]  ;;  %v920_v9 = vld [vmem:[#allocation5 + $0x1808] sm:$0xff] }
 0x1ea   :  { %4391 = vmatprep.subr.bf16.mxu1 %v4390_v15  ;;  %v882_v15 = vld [vmem:[#allocation5 + $0x16d8] sm:$0xff]  ;;  %v4412_v18 = vpack.c.bf16 %v877_v12, %v873_v10  ;;  %v917_v8 = vld [vmem:[#allocation5 + $0x17f0] sm:$0xff]  ;;  %v924_v10 = vld [vmem:[#allocation5 + $0x1828] sm:$0xff] }
 0x1eb   :  { %v926_v12 = vld [vmem:[#allocation5 + $0x1838] sm:$0xff] }
 0x1ec   :  { %3785 = vmatpush1.bf16.msra.mxu0 %v3784_v21  ;;  %v883_v21 = vld [vmem:[#allocation5 + $0x16e0] sm:$0xff]  ;;  %v950_v50 = vld [vmem:[#allocation5 + $0x18f8] sm:$0xff] }
 0x1ed   :  { %4393 = vmatpush1.bf16.msra.mxu1 %v4392_v22  ;;  %3787 = vmatprep.subr.bf16.mxu0 %v3786_v23  ;;  %v881_v22 = vld [vmem:[#allocation5 + $0x16d0] sm:$0xff]  ;;  %v4414_v23 = vpack.c.bf16 %v886_v16, %v882_v15  ;;  %v3808_v29 = vpack.c.bf16 %v883_v21, %v879_v20  ;;  %v3826_v15 = vpack.c.bf16 %v924_v10, %v920_v9  ;;  %v919_v16 = vld [vmem:[#allocation5 + $0x1800] sm:$0xff]  ;;  %v928_v21 = vld [vmem:[#allocation5 + $0x1848] sm:$0xff] }
 0x1ee   :  { %4395 = vmatprep.subr.bf16.mxu1 %v4394_v27  ;;  %v890_v27 = vld [vmem:[#allocation5 + $0x1718] sm:$0xff]  ;;  %v4416_v30 = vpack.c.bf16 %v885_v24, %v881_v22  ;;  %v925_v20 = vld [vmem:[#allocation5 + $0x1830] sm:$0xff]  ;;  %v932_v22 = vld [vmem:[#allocation5 + $0x1868] sm:$0xff] }
 0x1ef   :  { %v934_v24 = vld [vmem:[#allocation5 + $0x1878] sm:$0xff] }
 0x1f0   :  { %3789 = vmatpush1.bf16.msra.mxu0 %v3788_v33  ;;  %v891_v33 = vld [vmem:[#allocation5 + $0x1720] sm:$0xff]  ;;  %v954_v61 = vld [vmem:[#allocation5 + $0x1918] sm:$0xff] }
 0x1f1   :  { %4397 = vmatpush1.bf16.msra.mxu1 %v4396_v34  ;;  %3791 = vmatprep.subr.bf16.mxu0 %v3790_v35  ;;  %v889_v34 = vld [vmem:[#allocation5 + $0x1710] sm:$0xff]  ;;  %v4418_v35 = vpack.c.bf16 %v894_v28, %v890_v27  ;;  %v3812_v41 = vpack.c.bf16 %v891_v33, %v887_v32  ;;  %v3830_v28 = vpack.c.bf16 %v932_v22, %v928_v21  ;;  %v958_v62 = vld [vmem:[#allocation5 + $0x1938] sm:$0xff] }
 0x1f2   :  { %4399 = vmatprep.subr.bf16.mxu1 %v4398_v39  ;;  %v898_v39 = vld [vmem:[#allocation5 + $0x1758] sm:$0xff]  ;;  %v4420_v42 = vpack.c.bf16 %v893_v36, %v889_v34  ;;  %v933_v33 = vld [vmem:[#allocation5 + $0x1870] sm:$0xff]  ;;  %v936_v34 = vld [vmem:[#allocation5 + $0x1888] sm:$0xff] }
 0x1f3   :  { %v938_v36 = vld [vmem:[#allocation5 + $0x1898] sm:$0xff] }
 0x1f4   :  { %3793 = vmatpush1.bf16.msra.mxu0 %v3792_v45  ;;  %v899_v45 = vld [vmem:[#allocation5 + $0x1760] sm:$0xff]  ;;  %v962_v9 = vld [vmem:[#allocation5 + $0x1958] sm:$0xff] }
 0x1f5   :  { %4401 = vmatpush1.bf16.msra.mxu1 %v4400_v46  ;;  %3795 = vmatprep.subr.bf16.mxu0 %v3794_v47  ;;  %v897_v46 = vld [vmem:[#allocation5 + $0x1750] sm:$0xff]  ;;  %v4422_v47 = vpack.c.bf16 %v902_v40, %v898_v39  ;;  %v3816_v53 = vpack.c.bf16 %v899_v45, %v895_v44  ;;  %v4442_v45 = vpack.c.bf16 %v942_v37, %v938_v36  ;;  %v966_v10 = vld [vmem:[#allocation5 + $0x1978] sm:$0xff] }
 0x1f6   :  { %4403 = vmatprep.subr.bf16.mxu1 %v4402_v51  ;;  %v906_v51 = vld [vmem:[#allocation5 + $0x1798] sm:$0xff]  ;;  %v4424_v54 = vpack.c.bf16 %v901_v48, %v897_v46  ;;  %v937_v44 = vld [vmem:[#allocation5 + $0x1890] sm:$0xff]  ;;  %v948_v48 = vld [vmem:[#allocation5 + $0x18e8] sm:$0xff] }
 0x1f7   :  { %v941_v46 = vld [vmem:[#allocation5 + $0x18b0] sm:$0xff]  ;;  %v970_v21 = vld [vmem:[#allocation5 + $0x1998] sm:$0xff] }
 0x1f8   :  { %3797 = vmatpush1.bf16.msra.mxu0 %v3796_v57  ;;  %v907_v57 = vld [vmem:[#allocation5 + $0x17a0] sm:$0xff]  ;;  %v974_v22 = vld [vmem:[#allocation5 + $0x19b8] sm:$0xff] }
 0x1f9   :  { %4405 = vmatpush1.bf16.msra.mxu1 %v4404_v58  ;;  %3799 = vmatprep.subr.bf16.mxu0 %v3798_v59  ;;  %v905_v58 = vld [vmem:[#allocation5 + $0x1790] sm:$0xff]  ;;  %v4426_v59 = vpack.c.bf16 %v910_v52, %v906_v51  ;;  %v3820_v1 = vpack.c.bf16 %v907_v57, %v903_v56  ;;  %v4444_v52 = vpack.c.bf16 %v941_v46, %v937_v44  ;;  %v988_v44 = vld [vmem:[#allocation5 + $0x1a28] sm:$0xff]  ;;  %v990_v46 = vld [vmem:[#allocation5 + $0x1a38] sm:$0xff] }
 0x1fa   :  { %4407 = vmatprep.subr.bf16.mxu1 %v4406_v63  ;;  %v914_v63 = vld [vmem:[#allocation5 + $0x17d8] sm:$0xff]  ;;  %v4428_v2 = vpack.c.bf16 %v909_v60, %v905_v58  ;;  %v945_v56 = vld [vmem:[#allocation5 + $0x18d0] sm:$0xff]  ;;  %v4446_v57 = vpack.c.bf16 %v950_v50, %v946_v49  ;;  %v956_v60 = vld [vmem:[#allocation5 + $0x1928] sm:$0xff] }
 0x1fb   :  { %v949_v58 = vld [vmem:[#allocation5 + $0x18f0] sm:$0xff]  ;;  %v983_v50 = vld [vmem:[#allocation5 + $0x1a00] sm:$0xff] }
 0x1fc   :  { %3801 = vmatpush1.bf16.msra.mxu0 %v3800_v5  ;;  %v915_v5 = vld [vmem:[#allocation5 + $0x17e0] sm:$0xff] }
 0x1fd   :  { %4409 = vmatpush1.bf16.msra.mxu1 %v4408_v6  ;;  %3803 = vmatprep.subr.bf16.mxu0 %v3802_v7  ;;  %v913_v6 = vld [vmem:[#allocation5 + $0x17d0] sm:$0xff]  ;;  %v4430_v7 = vpack.c.bf16 %v918_v0, %v914_v63  ;;  %v3824_v13 = vpack.c.bf16 %v915_v5, %v911_v4  ;;  %v4448_v0 = vpack.c.bf16 %v949_v58, %v945_v56  ;;  %v996_v56 = vld [vmem:[#allocation5 + $0x1a68] sm:$0xff]  ;;  %v998_v58 = vld [vmem:[#allocation5 + $0x1a78] sm:$0xff] }
 0x1fe   :  { %4411 = vmatprep.subr.bf16.mxu1 %v4410_v11  ;;  %v922_v11 = vld [vmem:[#allocation5 + $0x1818] sm:$0xff]  ;;  %v4432_v14 = vpack.c.bf16 %v917_v8, %v913_v6  ;;  %v953_v4 = vld [vmem:[#allocation5 + $0x1910] sm:$0xff]  ;;  %v4450_v5 = vpack.c.bf16 %v958_v62, %v954_v61  ;;  %v964_v8 = vld [vmem:[#allocation5 + $0x1968] sm:$0xff] }
 0x1ff   :  { %v957_v6 = vld [vmem:[#allocation5 + $0x1930] sm:$0xff]  ;;  %v991_v62 = vld [vmem:[#allocation5 + $0x1a40] sm:$0xff] }
 0x200   :  { %3805 = vmatpush1.bf16.msra.mxu0 %v3804_v17  ;;  %v923_v17 = vld [vmem:[#allocation5 + $0x1820] sm:$0xff] }
 0x201   :  { %4413 = vmatpush1.bf16.msra.mxu1 %v4412_v18  ;;  %3807 = vmatprep.subr.bf16.mxu0 %v3806_v19  ;;  %v921_v18 = vld [vmem:[#allocation5 + $0x1810] sm:$0xff]  ;;  %v4434_v19 = vpack.c.bf16 %v926_v12, %v922_v11  ;;  %v3828_v26 = vpack.c.bf16 %v923_v17, %v919_v16  ;;  %v4452_v12 = vpack.c.bf16 %v957_v6, %v953_v4  ;;  %v1004_v4 = vld [vmem:[#allocation5 + $0x1aa8] sm:$0xff]  ;;  %v1006_v6 = vld [vmem:[#allocation5 + $0x1ab8] sm:$0xff] }
 0x202   :  { %4415 = vmatprep.subr.bf16.mxu1 %v4414_v23  ;;  %v930_v23 = vld [vmem:[#allocation5 + $0x1858] sm:$0xff]  ;;  %v4436_v27 = vpack.c.bf16 %v925_v20, %v921_v18  ;;  %v961_v16 = vld [vmem:[#allocation5 + $0x1950] sm:$0xff]  ;;  %v4454_v17 = vpack.c.bf16 %v966_v10, %v962_v9  ;;  %v972_v20 = vld [vmem:[#allocation5 + $0x19a8] sm:$0xff] }
 0x203   :  { %v4438_v32 = vpack.c.bf16 %v934_v24, %v930_v23  ;;  %v965_v18 = vld [vmem:[#allocation5 + $0x1970] sm:$0xff]  ;;  %v999_v10 = vld [vmem:[#allocation5 + $0x1a80] sm:$0xff] }
 0x204   :  { %3809 = vmatpush1.bf16.msra.mxu0 %v3808_v29  ;;  %v927_v29 = vld [vmem:[#allocation5 + $0x1840] sm:$0xff]  ;;  %v4456_v24 = vpack.c.bf16 %v965_v18, %v961_v16  ;;  %v1012_v16 = vld [vmem:[#allocation5 + $0x1ae8] sm:$0xff]  ;;  %v1014_v18 = vld [vmem:[#allocation5 + $0x1af8] sm:$0xff] }
 0x205   :  { %4417 = vmatpush1.bf16.msra.mxu1 %v4416_v30  ;;  %3811 = vmatprep.subr.bf16.mxu0 %v3810_v31  ;;  %v931_v30 = vld [vmem:[#allocation5 + $0x1860] sm:$0xff]  ;;  %v929_v31 = vld [vmem:[#allocation5 + $0x1850] sm:$0xff] }
 0x206   :  { %4419 = vmatprep.subr.bf16.mxu1 %v4418_v35  ;;  %v940_v35 = vld [vmem:[#allocation5 + $0x18a8] sm:$0xff]  ;;  %v3832_v39 = vpack.c.bf16 %v931_v30, %v927_v29  ;;  %v4440_v40 = vpack.c.bf16 %v933_v33, %v929_v31  ;;  %v4458_v29 = vpack.c.bf16 %v974_v22, %v970_v21  ;;  %v973_v30 = vld [vmem:[#allocation5 + $0x19b0] sm:$0xff]  ;;  %v978_v33 = vld [vmem:[#allocation5 + $0x19d8] sm:$0xff] }
 0x207   :  { %v976_v31 = vld [vmem:[#allocation5 + $0x19c8] sm:$0xff]  ;;  %v1007_v22 = vld [vmem:[#allocation5 + $0x1ac0] sm:$0xff] }
 0x208   :  { %3813 = vmatpush1.bf16.msra.mxu0 %v3812_v41  ;;  %v3834_v41 = vpack.c.bf16 %v940_v35, %v936_v34  ;;  %v982_v34 = vld [vmem:[#allocation5 + $0x19f8] sm:$0xff] }
 0x209   :  { %4421 = vmatpush1.bf16.msra.mxu1 %v4420_v42  ;;  %3815 = vmatprep.subr.bf16.mxu0 %v3814_v43  ;;  %v935_v42 = vld [vmem:[#allocation5 + $0x1880] sm:$0xff] }
 0x20a   :  { %4423 = vmatprep.subr.bf16.mxu1 %v4422_v47  ;;  %v939_v43 = vld [vmem:[#allocation5 + $0x18a0] sm:$0xff]  ;;  %v944_v47 = vld [vmem:[#allocation5 + $0x18c8] sm:$0xff] }
 0x20b   :  { %v3836_v51 = vpack.c.bf16 %v939_v43, %v935_v42  ;;  %v981_v42 = vld [vmem:[#allocation5 + $0x19f0] sm:$0xff]  ;;  %v984_v43 = vld [vmem:[#allocation5 + $0x1a08] sm:$0xff] }
 0x20c   :  { %3817 = vmatpush1.bf16.msra.mxu0 %v3816_v53  ;;  %v3838_v53 = vpack.c.bf16 %v948_v48, %v944_v47  ;;  %v3858_v49 = vpack.c.bf16 %v988_v44, %v984_v43 }
 0x20d   :  { %4425 = vmatpush1.bf16.msra.mxu1 %v4424_v54  ;;  %3819 = vmatprep.subr.bf16.mxu0 %v3818_v55  ;;  %v943_v54 = vld [vmem:[#allocation5 + $0x18c0] sm:$0xff] }
 0x20e   :  { %4427 = vmatprep.subr.bf16.mxu1 %v4426_v59  ;;  %v947_v55 = vld [vmem:[#allocation5 + $0x18e0] sm:$0xff]  ;;  %v952_v59 = vld [vmem:[#allocation5 + $0x1908] sm:$0xff] }
 0x20f   :  { %v3840_v63 = vpack.c.bf16 %v947_v55, %v943_v54  ;;  %v989_v54 = vld [vmem:[#allocation5 + $0x1a30] sm:$0xff]  ;;  %v992_v55 = vld [vmem:[#allocation5 + $0x1a48] sm:$0xff] }
 0x210   :  { %3821 = vmatpush1.bf16.msra.mxu0 %v3820_v1  ;;  %v3842_v1 = vpack.c.bf16 %v956_v60, %v952_v59  ;;  %v3862_v61 = vpack.c.bf16 %v996_v56, %v992_v55 }
 0x211   :  { %4429 = vmatpush1.bf16.msra.mxu1 %v4428_v2  ;;  %3823 = vmatprep.subr.bf16.mxu0 %v3822_v3  ;;  %v951_v2 = vld [vmem:[#allocation5 + $0x1900] sm:$0xff] }
 0x212   :  { %4431 = vmatprep.subr.bf16.mxu1 %v4430_v7  ;;  %v955_v3 = vld [vmem:[#allocation5 + $0x1920] sm:$0xff]  ;;  %v960_v7 = vld [vmem:[#allocation5 + $0x1948] sm:$0xff] }
 0x213   :  { %v3844_v11 = vpack.c.bf16 %v955_v3, %v951_v2  ;;  %v997_v2 = vld [vmem:[#allocation5 + $0x1a70] sm:$0xff]  ;;  %v1000_v3 = vld [vmem:[#allocation5 + $0x1a88] sm:$0xff] }
 0x214   :  { %3825 = vmatpush1.bf16.msra.mxu0 %v3824_v13  ;;  %v3846_v13 = vpack.c.bf16 %v964_v8, %v960_v7  ;;  %v3866_v9 = vpack.c.bf16 %v1004_v4, %v1000_v3 }
 0x215   :  { %4433 = vmatpush1.bf16.msra.mxu1 %v4432_v14  ;;  %3827 = vmatprep.subr.bf16.mxu0 %v3826_v15  ;;  %v959_v14 = vld [vmem:[#allocation5 + $0x1940] sm:$0xff] }
 0x216   :  { %4435 = vmatprep.subr.bf16.mxu1 %v4434_v19  ;;  %v963_v15 = vld [vmem:[#allocation5 + $0x1960] sm:$0xff]  ;;  %v968_v19 = vld [vmem:[#allocation5 + $0x1988] sm:$0xff] }
 0x217   :  { %1809 = vmatmul.mubr.f32.vlgmr.msra.gmra.mrb[0].mxu0 %v142_v25  ;;  %v3848_v23 = vpack.c.bf16 %v963_v15, %v959_v14  ;;  %v1005_v14 = vld [vmem:[#allocation5 + $0x1ab0] sm:$0xff]  ;;  %v1008_v15 = vld [vmem:[#allocation5 + $0x1ac8] sm:$0xff] }
 0x218   :  { %3829 = vmatpush1.bf16.msra.mxu0 %v3828_v26  ;;  %2519 = vmatmul.mubr.f32.vlgmr.msra.gmra.mrb[0].mxu1 %v142_v25  ;;  %v3850_v25 = vpack.c.bf16 %v972_v20, %v968_v19  ;;  %v967_v26 = vld [vmem:[#allocation5 + $0x1980] sm:$0xff]  ;;  %v3870_v21 = vpack.c.bf16 %v1012_v16, %v1008_v15 }
 0x219   :  { %4437 = vmatpush1.bf16.msra.mxu1 %v4436_v27  ;;  %3831 = vmatprep.subr.bf16.mxu0 %v3830_v28  ;;  %v971_v27 = vld [vmem:[#allocation5 + $0x19a0] sm:$0xff]  ;;  %v969_v28 = vld [vmem:[#allocation5 + $0x1990] sm:$0xff] }
 0x21a   :  { %4439 = vmatprep.subr.bf16.mxu1 %v4438_v32  ;;  %1879 = vmatprep.mubr.f32.mxu0 %v145_v38  ;;  %v980_v32 = vld [vmem:[#allocation5 + $0x19e8] sm:$0xff]  ;;  %v3852_v35 = vpack.c.bf16 %v971_v27, %v967_v26  ;;  %v4460_v36 = vpack.c.bf16 %v973_v30, %v969_v28  ;;  %v1013_v26 = vld [vmem:[#allocation5 + $0x1af0] sm:$0xff]  ;;  %v1022_v30 = vld [vmem:[#allocation5 + $0x1b38] sm:$0xff] }
 0x21b   :  { %2589 = vmatprep.mubr.f32.mxu1 %v145_v38  ;;  %v3854_v37 = vpack.c.bf16 %v980_v32, %v976_v31  ;;  %v975_v38 = vld [vmem:[#allocation5 + $0x19c0] sm:$0xff]  ;;  %v1016_v27 = vld [vmem:[#allocation5 + $0x1b08] sm:$0xff] }
 0x21c   :  { %3833 = vmatpush1.bf16.msra.mxu0 %v3832_v39  ;;  %v979_v39 = vld [vmem:[#allocation5 + $0x19e0] sm:$0xff]  ;;  %v1020_v28 = vld [vmem:[#allocation5 + $0x1b28] sm:$0xff] }
 0x21d   :  { %4441 = vmatpush1.bf16.msra.mxu1 %v4440_v40  ;;  %3835 = vmatprep.subr.bf16.mxu0 %v3834_v41  ;;  %v977_v40 = vld [vmem:[#allocation5 + $0x19d0] sm:$0xff]  ;;  %v4462_v41 = vpack.c.bf16 %v982_v34, %v978_v33  ;;  %v3856_v47 = vpack.c.bf16 %v979_v39, %v975_v38  ;;  %v3874_v33 = vpack.c.bf16 %v1020_v28, %v1016_v27  ;;  %v1015_v34 = vld [vmem:[#allocation5 + $0x1b00] sm:$0xff]  ;;  %v1024_v39 = vld [vmem:[#allocation5 + $0x1b48] sm:$0xff] }
 0x21e   :  { %4443 = vmatprep.subr.bf16.mxu1 %v4442_v45  ;;  %v986_v45 = vld [vmem:[#allocation5 + $0x1a18] sm:$0xff]  ;;  %v4464_v48 = vpack.c.bf16 %v981_v42, %v977_v40  ;;  %v1021_v38 = vld [vmem:[#allocation5 + $0x1b30] sm:$0xff]  ;;  %v1028_v40 = vld [vmem:[#allocation5 + $0x1b68] sm:$0xff] }
 0x21f   :  { %v1030_v42 = vld [vmem:[#allocation5 + $0x1b78] sm:$0xff]  ;;  %v144_v27 = vld [vmem:[#allocation2 + $0x60] sm:$0xff] }
 0x220   :  { %3837 = vmatpush1.bf16.msra.mxu0 %v3836_v51  ;;  %v987_v51 = vld [vmem:[#allocation5 + $0x1a20] sm:$0xff] }
 0x221   :  { %4445 = vmatpush1.bf16.msra.mxu1 %v4444_v52  ;;  %3839 = vmatprep.subr.bf16.mxu0 %v3838_v53  ;;  %v985_v52 = vld [vmem:[#allocation5 + $0x1a10] sm:$0xff]  ;;  %v4466_v53 = vpack.c.bf16 %v990_v46, %v986_v45  ;;  %v3860_v59 = vpack.c.bf16 %v987_v51, %v983_v50  ;;  %v3878_v45 = vpack.c.bf16 %v1028_v40, %v1024_v39  ;;  %v1023_v46 = vld [vmem:[#allocation5 + $0x1b40] sm:$0xff]  ;;  %v1032_v51 = vld [vmem:[#allocation5 + $0x1b88] sm:$0xff] }
 0x222   :  { %4447 = vmatprep.subr.bf16.mxu1 %v4446_v57  ;;  %v994_v57 = vld [vmem:[#allocation5 + $0x1a58] sm:$0xff]  ;;  %v4468_v60 = vpack.c.bf16 %v989_v54, %v985_v52  ;;  %v1029_v50 = vld [vmem:[#allocation5 + $0x1b70] sm:$0xff]  ;;  %v1036_v52 = vld [vmem:[#allocation5 + $0x1ba8] sm:$0xff] }
 0x223   :  { %v1038_v54 = vld [vmem:[#allocation5 + $0x1bb8] sm:$0xff]  ;;  %v147_v40 = vld [vmem:[#allocation2 + $0x78] sm:$0xff] }
 0x224   :  { %3841 = vmatpush1.bf16.msra.mxu0 %v3840_v63  ;;  %v995_v63 = vld [vmem:[#allocation5 + $0x1a60] sm:$0xff]  ;;  %v1070_v39 = vld [vmem:[#allocation5 + $0x1cb8] sm:$0xff] }
 0x225   :  { %4449 = vmatpush1.bf16.msra.mxu1 %v4448_v0  ;;  %3843 = vmatprep.subr.bf16.mxu0 %v3842_v1  ;;  %v993_v0 = vld [vmem:[#allocation5 + $0x1a50] sm:$0xff]  ;;  %v4470_v1 = vpack.c.bf16 %v998_v58, %v994_v57  ;;  %v3864_v7 = vpack.c.bf16 %v995_v63, %v991_v62  ;;  %v3882_v57 = vpack.c.bf16 %v1036_v52, %v1032_v51  ;;  %v1031_v58 = vld [vmem:[#allocation5 + $0x1b80] sm:$0xff]  ;;  %v1040_v63 = vld [vmem:[#allocation5 + $0x1bc8] sm:$0xff] }
 0x226   :  { %4451 = vmatprep.subr.bf16.mxu1 %v4450_v5  ;;  %v1002_v5 = vld [vmem:[#allocation5 + $0x1a98] sm:$0xff]  ;;  %v4472_v8 = vpack.c.bf16 %v997_v2, %v993_v0  ;;  %v1037_v62 = vld [vmem:[#allocation5 + $0x1bb0] sm:$0xff]  ;;  %v1044_v0 = vld [vmem:[#allocation5 + $0x1be8] sm:$0xff] }
 0x227   :  { %v1046_v2 = vld [vmem:[#allocation5 + $0x1bf8] sm:$0xff] }
 0x228   :  { %3845 = vmatpush1.bf16.msra.mxu0 %v3844_v11  ;;  %v1003_v11 = vld [vmem:[#allocation5 + $0x1aa0] sm:$0xff]  ;;  %v1074_v51 = vld [vmem:[#allocation5 + $0x1cd8] sm:$0xff] }
 0x229   :  { %4453 = vmatpush1.bf16.msra.mxu1 %v4452_v12  ;;  %3847 = vmatprep.subr.bf16.mxu0 %v3846_v13  ;;  %v1001_v12 = vld [vmem:[#allocation5 + $0x1a90] sm:$0xff]  ;;  %v4474_v13 = vpack.c.bf16 %v1006_v6, %v1002_v5  ;;  %v3868_v19 = vpack.c.bf16 %v1003_v11, %v999_v10  ;;  %v3886_v5 = vpack.c.bf16 %v1044_v0, %v1040_v63  ;;  %v1039_v6 = vld [vmem:[#allocation5 + $0x1bc0] sm:$0xff]  ;;  %v1048_v11 = vld [vmem:[#allocation5 + $0x1c08] sm:$0xff] }
 0x22a   :  { %4455 = vmatprep.subr.bf16.mxu1 %v4454_v17  ;;  %v1010_v17 = vld [vmem:[#allocation5 + $0x1ad8] sm:$0xff]  ;;  %v4476_v20 = vpack.c.bf16 %v1005_v14, %v1001_v12  ;;  %v1045_v10 = vld [vmem:[#allocation5 + $0x1bf0] sm:$0xff]  ;;  %v1052_v12 = vld [vmem:[#allocation5 + $0x1c28] sm:$0xff] }
 0x22b   :  { %v1054_v14 = vld [vmem:[#allocation5 + $0x1c38] sm:$0xff] }
 0x22c   :  { %3849 = vmatpush1.bf16.msra.mxu0 %v3848_v23  ;;  %v1011_v23 = vld [vmem:[#allocation5 + $0x1ae0] sm:$0xff]  ;;  %v1078_v52 = vld [vmem:[#allocation5 + $0x1cf8] sm:$0xff] }
 0x22d   :  { %4457 = vmatpush1.bf16.msra.mxu1 %v4456_v24  ;;  %3851 = vmatprep.subr.bf16.mxu0 %v3850_v25  ;;  %v1009_v24 = vld [vmem:[#allocation5 + $0x1ad0] sm:$0xff]  ;;  %v4478_v25 = vpack.c.bf16 %v1014_v18, %v1010_v17  ;;  %v3872_v31 = vpack.c.bf16 %v1011_v23, %v1007_v22  ;;  %v3890_v17 = vpack.c.bf16 %v1052_v12, %v1048_v11  ;;  %v1047_v18 = vld [vmem:[#allocation5 + $0x1c00] sm:$0xff]  ;;  %v1056_v23 = vld [vmem:[#allocation5 + $0x1c48] sm:$0xff] }
 0x22e   :  { %4459 = vmatprep.subr.bf16.mxu1 %v4458_v29  ;;  %v1018_v29 = vld [vmem:[#allocation5 + $0x1b18] sm:$0xff]  ;;  %v4480_v32 = vpack.c.bf16 %v1013_v26, %v1009_v24  ;;  %v1053_v22 = vld [vmem:[#allocation5 + $0x1c30] sm:$0xff]  ;;  %v1060_v24 = vld [vmem:[#allocation5 + $0x1c68] sm:$0xff] }
 0x22f   :  { %v1062_v26 = vld [vmem:[#allocation5 + $0x1c78] sm:$0xff] }
 0x230   :  { %3853 = vmatpush1.bf16.msra.mxu0 %v3852_v35  ;;  %v1019_v35 = vld [vmem:[#allocation5 + $0x1b20] sm:$0xff]  ;;  %v1082_v63 = vld [vmem:[#allocation5 + $0x1d18] sm:$0xff] }
 0x231   :  { %4461 = vmatpush1.bf16.msra.mxu1 %v4460_v36  ;;  %3855 = vmatprep.subr.bf16.mxu0 %v3854_v37  ;;  %v1017_v36 = vld [vmem:[#allocation5 + $0x1b10] sm:$0xff]  ;;  %v4482_v37 = vpack.c.bf16 %v1022_v30, %v1018_v29  ;;  %v3876_v43 = vpack.c.bf16 %v1019_v35, %v1015_v34  ;;  %v3894_v30 = vpack.c.bf16 %v1060_v24, %v1056_v23  ;;  %v1086_v0 = vld [vmem:[#allocation5 + $0x1d38] sm:$0xff] }
 0x232   :  { %4463 = vmatprep.subr.bf16.mxu1 %v4462_v41  ;;  %v1026_v41 = vld [vmem:[#allocation5 + $0x1b58] sm:$0xff]  ;;  %v4484_v44 = vpack.c.bf16 %v1021_v38, %v1017_v36  ;;  %v1061_v35 = vld [vmem:[#allocation5 + $0x1c70] sm:$0xff]  ;;  %v1064_v36 = vld [vmem:[#allocation5 + $0x1c88] sm:$0xff] }
 0x233   :  { %v1066_v38 = vld [vmem:[#allocation5 + $0x1c98] sm:$0xff] }
 0x234   :  { %3857 = vmatpush1.bf16.msra.mxu0 %v3856_v47  ;;  %v1027_v47 = vld [vmem:[#allocation5 + $0x1b60] sm:$0xff]  ;;  %v1090_v11 = vld [vmem:[#allocation5 + $0x1d58] sm:$0xff] }
 0x235   :  { %4465 = vmatpush1.bf16.msra.mxu1 %v4464_v48  ;;  %3859 = vmatprep.subr.bf16.mxu0 %v3858_v49  ;;  %v1025_v48 = vld [vmem:[#allocation5 + $0x1b50] sm:$0xff]  ;;  %v4486_v49 = vpack.c.bf16 %v1030_v42, %v1026_v41  ;;  %v3880_v55 = vpack.c.bf16 %v1027_v47, %v1023_v46  ;;  %v4506_v47 = vpack.c.bf16 %v1070_v39, %v1066_v38  ;;  %v1094_v12 = vld [vmem:[#allocation5 + $0x1d78] sm:$0xff] }
 0x236   :  { %4467 = vmatprep.subr.bf16.mxu1 %v4466_v53  ;;  %v1034_v53 = vld [vmem:[#allocation5 + $0x1b98] sm:$0xff]  ;;  %v4488_v56 = vpack.c.bf16 %v1029_v50, %v1025_v48  ;;  %v1065_v46 = vld [vmem:[#allocation5 + $0x1c90] sm:$0xff]  ;;  %v1076_v50 = vld [vmem:[#allocation5 + $0x1ce8] sm:$0xff] }
 0x237   :  { %v1069_v48 = vld [vmem:[#allocation5 + $0x1cb0] sm:$0xff]  ;;  %v1098_v23 = vld [vmem:[#allocation5 + $0x1d98] sm:$0xff] }
 0x238   :  { %3861 = vmatpush1.bf16.msra.mxu0 %v3860_v59  ;;  %v1035_v59 = vld [vmem:[#allocation5 + $0x1ba0] sm:$0xff]  ;;  %v1102_v24 = vld [vmem:[#allocation5 + $0x1db8] sm:$0xff] }
 0x239   :  { %4469 = vmatpush1.bf16.msra.mxu1 %v4468_v60  ;;  %3863 = vmatprep.subr.bf16.mxu0 %v3862_v61  ;;  %v1033_v60 = vld [vmem:[#allocation5 + $0x1b90] sm:$0xff]  ;;  %v4490_v61 = vpack.c.bf16 %v1038_v54, %v1034_v53  ;;  %v3884_v3 = vpack.c.bf16 %v1035_v59, %v1031_v58  ;;  %v4508_v54 = vpack.c.bf16 %v1069_v48, %v1065_v46  ;;  %v1116_v46 = vld [vmem:[#allocation5 + $0x1e28] sm:$0xff]  ;;  %v1118_v48 = vld [vmem:[#allocation5 + $0x1e38] sm:$0xff] }
 0x23a   :  { %4471 = vmatprep.subr.bf16.mxu1 %v4470_v1  ;;  %v1042_v1 = vld [vmem:[#allocation5 + $0x1bd8] sm:$0xff]  ;;  %v4492_v4 = vpack.c.bf16 %v1037_v62, %v1033_v60  ;;  %v1073_v58 = vld [vmem:[#allocation5 + $0x1cd0] sm:$0xff]  ;;  %v4510_v59 = vpack.c.bf16 %v1078_v52, %v1074_v51  ;;  %v1084_v62 = vld [vmem:[#allocation5 + $0x1d28] sm:$0xff] }
 0x23b   :  { %v1077_v60 = vld [vmem:[#allocation5 + $0x1cf0] sm:$0xff]  ;;  %v1111_v52 = vld [vmem:[#allocation5 + $0x1e00] sm:$0xff] }
 0x23c   :  { %3865 = vmatpush1.bf16.msra.mxu0 %v3864_v7  ;;  %v1043_v7 = vld [vmem:[#allocation5 + $0x1be0] sm:$0xff] }
 0x23d   :  { %4473 = vmatpush1.bf16.msra.mxu1 %v4472_v8  ;;  %3867 = vmatprep.subr.bf16.mxu0 %v3866_v9  ;;  %v1041_v8 = vld [vmem:[#allocation5 + $0x1bd0] sm:$0xff]  ;;  %v4494_v9 = vpack.c.bf16 %v1046_v2, %v1042_v1  ;;  %v3888_v15 = vpack.c.bf16 %v1043_v7, %v1039_v6  ;;  %v4512_v2 = vpack.c.bf16 %v1077_v60, %v1073_v58  ;;  %v1124_v58 = vld [vmem:[#allocation5 + $0x1e68] sm:$0xff]  ;;  %v1126_v60 = vld [vmem:[#allocation5 + $0x1e78] sm:$0xff] }
 0x23e   :  { %4475 = vmatprep.subr.bf16.mxu1 %v4474_v13  ;;  %v1050_v13 = vld [vmem:[#allocation5 + $0x1c18] sm:$0xff]  ;;  %v4496_v16 = vpack.c.bf16 %v1045_v10, %v1041_v8  ;;  %v1081_v6 = vld [vmem:[#allocation5 + $0x1d10] sm:$0xff]  ;;  %v4514_v7 = vpack.c.bf16 %v1086_v0, %v1082_v63  ;;  %v1092_v10 = vld [vmem:[#allocation5 + $0x1d68] sm:$0xff] }
 0x23f   :  { %v1085_v8 = vld [vmem:[#allocation5 + $0x1d30] sm:$0xff]  ;;  %v1119_v0 = vld [vmem:[#allocation5 + $0x1e40] sm:$0xff] }
 0x240   :  { %3869 = vmatpush1.bf16.msra.mxu0 %v3868_v19  ;;  %v1051_v19 = vld [vmem:[#allocation5 + $0x1c20] sm:$0xff] }
 0x241   :  { %4477 = vmatpush1.bf16.msra.mxu1 %v4476_v20  ;;  %3871 = vmatprep.subr.bf16.mxu0 %v3870_v21  ;;  %v1049_v20 = vld [vmem:[#allocation5 + $0x1c10] sm:$0xff]  ;;  %v4498_v21 = vpack.c.bf16 %v1054_v14, %v1050_v13  ;;  %v3892_v28 = vpack.c.bf16 %v1051_v19, %v1047_v18  ;;  %v4516_v14 = vpack.c.bf16 %v1085_v8, %v1081_v6  ;;  %v1132_v6 = vld [vmem:[#allocation5 + $0x1ea8] sm:$0xff]  ;;  %v1134_v8 = vld [vmem:[#allocation5 + $0x1eb8] sm:$0xff] }
 0x242   :  { %4479 = vmatprep.subr.bf16.mxu1 %v4478_v25  ;;  %v1058_v25 = vld [vmem:[#allocation5 + $0x1c58] sm:$0xff]  ;;  %v4500_v29 = vpack.c.bf16 %v1053_v22, %v1049_v20  ;;  %v1089_v18 = vld [vmem:[#allocation5 + $0x1d50] sm:$0xff]  ;;  %v4518_v19 = vpack.c.bf16 %v1094_v12, %v1090_v11  ;;  %v1100_v22 = vld [vmem:[#allocation5 + $0x1da8] sm:$0xff] }
 0x243   :  { %v4502_v34 = vpack.c.bf16 %v1062_v26, %v1058_v25  ;;  %v1093_v20 = vld [vmem:[#allocation5 + $0x1d70] sm:$0xff]  ;;  %v1127_v12 = vld [vmem:[#allocation5 + $0x1e80] sm:$0xff] }
 0x244   :  { %3873 = vmatpush1.bf16.msra.mxu0 %v3872_v31  ;;  %v1055_v31 = vld [vmem:[#allocation5 + $0x1c40] sm:$0xff]  ;;  %v4520_v26 = vpack.c.bf16 %v1093_v20, %v1089_v18  ;;  %v1140_v18 = vld [vmem:[#allocation5 + $0x1ee8] sm:$0xff]  ;;  %v1142_v20 = vld [vmem:[#allocation5 + $0x1ef8] sm:$0xff] }
 0x245   :  { %4481 = vmatpush1.bf16.msra.mxu1 %v4480_v32  ;;  %3875 = vmatprep.subr.bf16.mxu0 %v3874_v33  ;;  %v1059_v32 = vld [vmem:[#allocation5 + $0x1c60] sm:$0xff]  ;;  %v1057_v33 = vld [vmem:[#allocation5 + $0x1c50] sm:$0xff] }
 0x246   :  { %4483 = vmatprep.subr.bf16.mxu1 %v4482_v37  ;;  %v1068_v37 = vld [vmem:[#allocation5 + $0x1ca8] sm:$0xff]  ;;  %v3896_v41 = vpack.c.bf16 %v1059_v32, %v1055_v31  ;;  %v4504_v42 = vpack.c.bf16 %v1061_v35, %v1057_v33  ;;  %v4522_v31 = vpack.c.bf16 %v1102_v24, %v1098_v23  ;;  %v1101_v32 = vld [vmem:[#allocation5 + $0x1db0] sm:$0xff]  ;;  %v1106_v35 = vld [vmem:[#allocation5 + $0x1dd8] sm:$0xff] }
 0x247   :  { %v1104_v33 = vld [vmem:[#allocation5 + $0x1dc8] sm:$0xff]  ;;  %v1135_v24 = vld [vmem:[#allocation5 + $0x1ec0] sm:$0xff] }
 0x248   :  { %3877 = vmatpush1.bf16.msra.mxu0 %v3876_v43  ;;  %v3898_v43 = vpack.c.bf16 %v1068_v37, %v1064_v36  ;;  %v1110_v36 = vld [vmem:[#allocation5 + $0x1df8] sm:$0xff] }
 0x249   :  { %4485 = vmatpush1.bf16.msra.mxu1 %v4484_v44  ;;  %3879 = vmatprep.subr.bf16.mxu0 %v3878_v45  ;;  %v1063_v44 = vld [vmem:[#allocation5 + $0x1c80] sm:$0xff] }
 0x24a   :  { %4487 = vmatprep.subr.bf16.mxu1 %v4486_v49  ;;  %v1067_v45 = vld [vmem:[#allocation5 + $0x1ca0] sm:$0xff]  ;;  %v1072_v49 = vld [vmem:[#allocation5 + $0x1cc8] sm:$0xff] }
 0x24b   :  { %v3900_v53 = vpack.c.bf16 %v1067_v45, %v1063_v44  ;;  %v1109_v44 = vld [vmem:[#allocation5 + $0x1df0] sm:$0xff]  ;;  %v1112_v45 = vld [vmem:[#allocation5 + $0x1e08] sm:$0xff] }
 0x24c   :  { %3881 = vmatpush1.bf16.msra.mxu0 %v3880_v55  ;;  %v3902_v55 = vpack.c.bf16 %v1076_v50, %v1072_v49  ;;  %v3922_v51 = vpack.c.bf16 %v1116_v46, %v1112_v45 }
 0x24d   :  { %4489 = vmatpush1.bf16.msra.mxu1 %v4488_v56  ;;  %3883 = vmatprep.subr.bf16.mxu0 %v3882_v57  ;;  %v1071_v56 = vld [vmem:[#allocation5 + $0x1cc0] sm:$0xff] }
 0x24e   :  { %4491 = vmatprep.subr.bf16.mxu1 %v4490_v61  ;;  %v1075_v57 = vld [vmem:[#allocation5 + $0x1ce0] sm:$0xff]  ;;  %v1080_v61 = vld [vmem:[#allocation5 + $0x1d08] sm:$0xff] }
 0x24f   :  { %v3904_v1 = vpack.c.bf16 %v1075_v57, %v1071_v56  ;;  %v1117_v56 = vld [vmem:[#allocation5 + $0x1e30] sm:$0xff]  ;;  %v1120_v57 = vld [vmem:[#allocation5 + $0x1e48] sm:$0xff] }
 0x250   :  { %3885 = vmatpush1.bf16.msra.mxu0 %v3884_v3  ;;  %v3906_v3 = vpack.c.bf16 %v1084_v62, %v1080_v61  ;;  %v3926_v63 = vpack.c.bf16 %v1124_v58, %v1120_v57 }
 0x251   :  { %4493 = vmatpush1.bf16.msra.mxu1 %v4492_v4  ;;  %3887 = vmatprep.subr.bf16.mxu0 %v3886_v5  ;;  %v1079_v4 = vld [vmem:[#allocation5 + $0x1d00] sm:$0xff] }
 0x252   :  { %4495 = vmatprep.subr.bf16.mxu1 %v4494_v9  ;;  %v1083_v5 = vld [vmem:[#allocation5 + $0x1d20] sm:$0xff]  ;;  %v1088_v9 = vld [vmem:[#allocation5 + $0x1d48] sm:$0xff] }
 0x253   :  { %v3908_v13 = vpack.c.bf16 %v1083_v5, %v1079_v4  ;;  %v1125_v4 = vld [vmem:[#allocation5 + $0x1e70] sm:$0xff]  ;;  %v1128_v5 = vld [vmem:[#allocation5 + $0x1e88] sm:$0xff] }
 0x254   :  { %3889 = vmatpush1.bf16.msra.mxu0 %v3888_v15  ;;  %v3910_v15 = vpack.c.bf16 %v1092_v10, %v1088_v9  ;;  %v3930_v11 = vpack.c.bf16 %v1132_v6, %v1128_v5 }
 0x255   :  { %4497 = vmatpush1.bf16.msra.mxu1 %v4496_v16  ;;  %3891 = vmatprep.subr.bf16.mxu0 %v3890_v17  ;;  %v1087_v16 = vld [vmem:[#allocation5 + $0x1d40] sm:$0xff] }
 0x256   :  { %4499 = vmatprep.subr.bf16.mxu1 %v4498_v21  ;;  %v1091_v17 = vld [vmem:[#allocation5 + $0x1d60] sm:$0xff]  ;;  %v1096_v21 = vld [vmem:[#allocation5 + $0x1d88] sm:$0xff] }
 0x257   :  { %1880 = vmatmul.mubr.f32.vlgmr.msra.gmra.mrb[0].mxu0 %v144_v27  ;;  %v3912_v25 = vpack.c.bf16 %v1091_v17, %v1087_v16  ;;  %v1133_v16 = vld [vmem:[#allocation5 + $0x1eb0] sm:$0xff]  ;;  %v1136_v17 = vld [vmem:[#allocation5 + $0x1ec8] sm:$0xff] }
 0x258   :  { %3893 = vmatpush1.bf16.msra.mxu0 %v3892_v28  ;;  %2590 = vmatmul.mubr.f32.vlgmr.msra.gmra.mrb[0].mxu1 %v144_v27  ;;  %v3914_v27 = vpack.c.bf16 %v1100_v22, %v1096_v21  ;;  %v1095_v28 = vld [vmem:[#allocation5 + $0x1d80] sm:$0xff]  ;;  %v3934_v23 = vpack.c.bf16 %v1140_v18, %v1136_v17 }
 0x259   :  { %4501 = vmatpush1.bf16.msra.mxu1 %v4500_v29  ;;  %3895 = vmatprep.subr.bf16.mxu0 %v3894_v30  ;;  %v1099_v29 = vld [vmem:[#allocation5 + $0x1da0] sm:$0xff]  ;;  %v1097_v30 = vld [vmem:[#allocation5 + $0x1d90] sm:$0xff] }
 0x25a   :  { %4503 = vmatprep.subr.bf16.mxu1 %v4502_v34  ;;  %1950 = vmatprep.mubr.f32.mxu0 %v147_v40  ;;  %v1108_v34 = vld [vmem:[#allocation5 + $0x1de8] sm:$0xff]  ;;  %v3916_v37 = vpack.c.bf16 %v1099_v29, %v1095_v28  ;;  %v4524_v38 = vpack.c.bf16 %v1101_v32, %v1097_v30  ;;  %v1141_v28 = vld [vmem:[#allocation5 + $0x1ef0] sm:$0xff]  ;;  %v1150_v32 = vld [vmem:[#allocation5 + $0x1f38] sm:$0xff] }
 0x25b   :  { %2660 = vmatprep.mubr.f32.mxu1 %v147_v40  ;;  %v3918_v39 = vpack.c.bf16 %v1108_v34, %v1104_v33  ;;  %v1103_v40 = vld [vmem:[#allocation5 + $0x1dc0] sm:$0xff]  ;;  %v1144_v29 = vld [vmem:[#allocation5 + $0x1f08] sm:$0xff] }
 0x25c   :  { %3897 = vmatpush1.bf16.msra.mxu0 %v3896_v41  ;;  %v1107_v41 = vld [vmem:[#allocation5 + $0x1de0] sm:$0xff]  ;;  %v1148_v30 = vld [vmem:[#allocation5 + $0x1f28] sm:$0xff] }
 0x25d   :  { %4505 = vmatpush1.bf16.msra.mxu1 %v4504_v42  ;;  %3899 = vmatprep.subr.bf16.mxu0 %v3898_v43  ;;  %v1105_v42 = vld [vmem:[#allocation5 + $0x1dd0] sm:$0xff]  ;;  %v4526_v43 = vpack.c.bf16 %v1110_v36, %v1106_v35  ;;  %v3920_v49 = vpack.c.bf16 %v1107_v41, %v1103_v40  ;;  %v3938_v35 = vpack.c.bf16 %v1148_v30, %v1144_v29  ;;  %v1143_v36 = vld [vmem:[#allocation5 + $0x1f00] sm:$0xff]  ;;  %v1152_v41 = vld [vmem:[#allocation5 + $0x1f48] sm:$0xff] }
 0x25e   :  { %4507 = vmatprep.subr.bf16.mxu1 %v4506_v47  ;;  %v1114_v47 = vld [vmem:[#allocation5 + $0x1e18] sm:$0xff]  ;;  %v4528_v50 = vpack.c.bf16 %v1109_v44, %v1105_v42  ;;  %v1149_v40 = vld [vmem:[#allocation5 + $0x1f30] sm:$0xff]  ;;  %v1156_v42 = vld [vmem:[#allocation5 + $0x1f68] sm:$0xff] }
 0x25f   :  { %v1158_v44 = vld [vmem:[#allocation5 + $0x1f78] sm:$0xff] }
 0x260   :  { %3901 = vmatpush1.bf16.msra.mxu0 %v3900_v53  ;;  %v1115_v53 = vld [vmem:[#allocation5 + $0x1e20] sm:$0xff]  ;;  %v146_v29 = vld [vmem:[#allocation2 + $0x70] sm:$0xff] }
 0x261   :  { %4509 = vmatpush1.bf16.msra.mxu1 %v4508_v54  ;;  %3903 = vmatprep.subr.bf16.mxu0 %v3902_v55  ;;  %v1113_v54 = vld [vmem:[#allocation5 + $0x1e10] sm:$0xff]  ;;  %v4530_v55 = vpack.c.bf16 %v1118_v48, %v1114_v47  ;;  %v3924_v61 = vpack.c.bf16 %v1115_v53, %v1111_v52  ;;  %v3942_v47 = vpack.c.bf16 %v1156_v42, %v1152_v41  ;;  %v1151_v48 = vld [vmem:[#allocation5 + $0x1f40] sm:$0xff]  ;;  %v1160_v53 = vld [vmem:[#allocation5 + $0x1f88] sm:$0xff] }
 0x262   :  { %4511 = vmatprep.subr.bf16.mxu1 %v4510_v59  ;;  %v1122_v59 = vld [vmem:[#allocation5 + $0x1e58] sm:$0xff]  ;;  %v4532_v62 = vpack.c.bf16 %v1117_v56, %v1113_v54  ;;  %v1157_v52 = vld [vmem:[#allocation5 + $0x1f70] sm:$0xff]  ;;  %v1164_v54 = vld [vmem:[#allocation5 + $0x1fa8] sm:$0xff] }
 0x263   :  { %v1166_v56 = vld [vmem:[#allocation5 + $0x1fb8] sm:$0xff]  ;;  %v149_v42 = vld [vmem:[#allocation2 + $0x88] sm:$0xff] }
 0x264   :  { %3905 = vmatpush1.bf16.msra.mxu0 %v3904_v1  ;;  %v1123_v1 = vld [vmem:[#allocation5 + $0x1e60] sm:$0xff]  ;;  %v1198_v41 = vld [vmem:[#allocation5 + $0x20b8] sm:$0xff] }
 0x265   :  { %4513 = vmatpush1.bf16.msra.mxu1 %v4512_v2  ;;  %3907 = vmatprep.subr.bf16.mxu0 %v3906_v3  ;;  %v1121_v2 = vld [vmem:[#allocation5 + $0x1e50] sm:$0xff]  ;;  %v4534_v3 = vpack.c.bf16 %v1126_v60, %v1122_v59  ;;  %v3928_v9 = vpack.c.bf16 %v1123_v1, %v1119_v0  ;;  %v3946_v59 = vpack.c.bf16 %v1164_v54, %v1160_v53  ;;  %v1159_v60 = vld [vmem:[#allocation5 + $0x1f80] sm:$0xff]  ;;  %v1168_v1 = vld [vmem:[#allocation5 + $0x1fc8] sm:$0xff] }
 0x266   :  { %4515 = vmatprep.subr.bf16.mxu1 %v4514_v7  ;;  %v1130_v7 = vld [vmem:[#allocation5 + $0x1e98] sm:$0xff]  ;;  %v4536_v10 = vpack.c.bf16 %v1125_v4, %v1121_v2  ;;  %v1165_v0 = vld [vmem:[#allocation5 + $0x1fb0] sm:$0xff]  ;;  %v1172_v2 = vld [vmem:[#allocation5 + $0x1fe8] sm:$0xff] }
 0x267   :  { %v1174_v4 = vld [vmem:[#allocation5 + $0x1ff8] sm:$0xff] }
 0x268   :  { %3909 = vmatpush1.bf16.msra.mxu0 %v3908_v13  ;;  %v1131_v13 = vld [vmem:[#allocation5 + $0x1ea0] sm:$0xff]  ;;  %v1202_v53 = vld [vmem:[#allocation5 + $0x20d8] sm:$0xff] }
 0x269   :  { %4517 = vmatpush1.bf16.msra.mxu1 %v4516_v14  ;;  %3911 = vmatprep.subr.bf16.mxu0 %v3910_v15  ;;  %v1129_v14 = vld [vmem:[#allocation5 + $0x1e90] sm:$0xff]  ;;  %v4538_v15 = vpack.c.bf16 %v1134_v8, %v1130_v7  ;;  %v3932_v21 = vpack.c.bf16 %v1131_v13, %v1127_v12  ;;  %v3950_v7 = vpack.c.bf16 %v1172_v2, %v1168_v1  ;;  %v1167_v8 = vld [vmem:[#allocation5 + $0x1fc0] sm:$0xff]  ;;  %v1176_v13 = vld [vmem:[#allocation5 + $0x2008] sm:$0xff] }
 0x26a   :  { %4519 = vmatprep.subr.bf16.mxu1 %v4518_v19  ;;  %v1138_v19 = vld [vmem:[#allocation5 + $0x1ed8] sm:$0xff]  ;;  %v4540_v22 = vpack.c.bf16 %v1133_v16, %v1129_v14  ;;  %v1173_v12 = vld [vmem:[#allocation5 + $0x1ff0] sm:$0xff]  ;;  %v1180_v14 = vld [vmem:[#allocation5 + $0x2028] sm:$0xff] }
 0x26b   :  { %v1182_v16 = vld [vmem:[#allocation5 + $0x2038] sm:$0xff] }
 0x26c   :  { %3913 = vmatpush1.bf16.msra.mxu0 %v3912_v25  ;;  %v1139_v25 = vld [vmem:[#allocation5 + $0x1ee0] sm:$0xff]  ;;  %v1206_v54 = vld [vmem:[#allocation5 + $0x20f8] sm:$0xff] }
 0x26d   :  { %4521 = vmatpush1.bf16.msra.mxu1 %v4520_v26  ;;  %3915 = vmatprep.subr.bf16.mxu0 %v3914_v27  ;;  %v1137_v26 = vld [vmem:[#allocation5 + $0x1ed0] sm:$0xff]  ;;  %v4542_v27 = vpack.c.bf16 %v1142_v20, %v1138_v19  ;;  %v3936_v33 = vpack.c.bf16 %v1139_v25, %v1135_v24  ;;  %v3954_v19 = vpack.c.bf16 %v1180_v14, %v1176_v13  ;;  %v1175_v20 = vld [vmem:[#allocation5 + $0x2000] sm:$0xff]  ;;  %v1184_v25 = vld [vmem:[#allocation5 + $0x2048] sm:$0xff] }
 0x26e   :  { %4523 = vmatprep.subr.bf16.mxu1 %v4522_v31  ;;  %v1146_v31 = vld [vmem:[#allocation5 + $0x1f18] sm:$0xff]  ;;  %v4544_v34 = vpack.c.bf16 %v1141_v28, %v1137_v26  ;;  %v1181_v24 = vld [vmem:[#allocation5 + $0x2030] sm:$0xff]  ;;  %v1188_v26 = vld [vmem:[#allocation5 + $0x2068] sm:$0xff] }
 0x26f   :  { %v1190_v28 = vld [vmem:[#allocation5 + $0x2078] sm:$0xff] }
 0x270   :  { %3917 = vmatpush1.bf16.msra.mxu0 %v3916_v37  ;;  %v1147_v37 = vld [vmem:[#allocation5 + $0x1f20] sm:$0xff]  ;;  %v1210_v1 = vld [vmem:[#allocation5 + $0x2118] sm:$0xff] }
 0x271   :  { %4525 = vmatpush1.bf16.msra.mxu1 %v4524_v38  ;;  %3919 = vmatprep.subr.bf16.mxu0 %v3918_v39  ;;  %v1145_v38 = vld [vmem:[#allocation5 + $0x1f10] sm:$0xff]  ;;  %v4546_v39 = vpack.c.bf16 %v1150_v32, %v1146_v31  ;;  %v3940_v45 = vpack.c.bf16 %v1147_v37, %v1143_v36  ;;  %v3958_v32 = vpack.c.bf16 %v1188_v26, %v1184_v25  ;;  %v1214_v2 = vld [vmem:[#allocation5 + $0x2138] sm:$0xff] }
 0x272   :  { %4527 = vmatprep.subr.bf16.mxu1 %v4526_v43  ;;  %v1154_v43 = vld [vmem:[#allocation5 + $0x1f58] sm:$0xff]  ;;  %v4548_v46 = vpack.c.bf16 %v1149_v40, %v1145_v38  ;;  %v1189_v37 = vld [vmem:[#allocation5 + $0x2070] sm:$0xff]  ;;  %v1192_v38 = vld [vmem:[#allocation5 + $0x2088] sm:$0xff] }
 0x273   :  { %v1194_v40 = vld [vmem:[#allocation5 + $0x2098] sm:$0xff] }
 0x274   :  { %3921 = vmatpush1.bf16.msra.mxu0 %v3920_v49  ;;  %v1155_v49 = vld [vmem:[#allocation5 + $0x1f60] sm:$0xff]  ;;  %v1218_v13 = vld [vmem:[#allocation5 + $0x2158] sm:$0xff] }
 0x275   :  { %4529 = vmatpush1.bf16.msra.mxu1 %v4528_v50  ;;  %3923 = vmatprep.subr.bf16.mxu0 %v3922_v51  ;;  %v1153_v50 = vld [vmem:[#allocation5 + $0x1f50] sm:$0xff]  ;;  %v4550_v51 = vpack.c.bf16 %v1158_v44, %v1154_v43  ;;  %v3944_v57 = vpack.c.bf16 %v1155_v49, %v1151_v48  ;;  %v4570_v49 = vpack.c.bf16 %v1198_v41, %v1194_v40  ;;  %v1222_v14 = vld [vmem:[#allocation5 + $0x2178] sm:$0xff] }
 0x276   :  { %4531 = vmatprep.subr.bf16.mxu1 %v4530_v55  ;;  %v1162_v55 = vld [vmem:[#allocation5 + $0x1f98] sm:$0xff]  ;;  %v4552_v58 = vpack.c.bf16 %v1157_v52, %v1153_v50  ;;  %v1193_v48 = vld [vmem:[#allocation5 + $0x2090] sm:$0xff]  ;;  %v1204_v52 = vld [vmem:[#allocation5 + $0x20e8] sm:$0xff] }
 0x277   :  { %v1197_v50 = vld [vmem:[#allocation5 + $0x20b0] sm:$0xff]  ;;  %v1226_v25 = vld [vmem:[#allocation5 + $0x2198] sm:$0xff] }
 0x278   :  { %3925 = vmatpush1.bf16.msra.mxu0 %v3924_v61  ;;  %v1163_v61 = vld [vmem:[#allocation5 + $0x1fa0] sm:$0xff]  ;;  %v1230_v26 = vld [vmem:[#allocation5 + $0x21b8] sm:$0xff] }
 0x279   :  { %4533 = vmatpush1.bf16.msra.mxu1 %v4532_v62  ;;  %3927 = vmatprep.subr.bf16.mxu0 %v3926_v63  ;;  %v1161_v62 = vld [vmem:[#allocation5 + $0x1f90] sm:$0xff]  ;;  %v4554_v63 = vpack.c.bf16 %v1166_v56, %v1162_v55  ;;  %v3948_v5 = vpack.c.bf16 %v1163_v61, %v1159_v60  ;;  %v4572_v56 = vpack.c.bf16 %v1197_v50, %v1193_v48  ;;  %v1244_v48 = vld [vmem:[#allocation5 + $0x2228] sm:$0xff]  ;;  %v1246_v50 = vld [vmem:[#allocation5 + $0x2238] sm:$0xff] }
 0x27a   :  { %4535 = vmatprep.subr.bf16.mxu1 %v4534_v3  ;;  %v1170_v3 = vld [vmem:[#allocation5 + $0x1fd8] sm:$0xff]  ;;  %v4556_v6 = vpack.c.bf16 %v1165_v0, %v1161_v62  ;;  %v1201_v60 = vld [vmem:[#allocation5 + $0x20d0] sm:$0xff]  ;;  %v4574_v61 = vpack.c.bf16 %v1206_v54, %v1202_v53  ;;  %v1212_v0 = vld [vmem:[#allocation5 + $0x2128] sm:$0xff] }
 0x27b   :  { %v1205_v62 = vld [vmem:[#allocation5 + $0x20f0] sm:$0xff]  ;;  %v1239_v54 = vld [vmem:[#allocation5 + $0x2200] sm:$0xff] }
 0x27c   :  { %3929 = vmatpush1.bf16.msra.mxu0 %v3928_v9  ;;  %v1171_v9 = vld [vmem:[#allocation5 + $0x1fe0] sm:$0xff] }
 0x27d   :  { %4537 = vmatpush1.bf16.msra.mxu1 %v4536_v10  ;;  %3931 = vmatprep.subr.bf16.mxu0 %v3930_v11  ;;  %v1169_v10 = vld [vmem:[#allocation5 + $0x1fd0] sm:$0xff]  ;;  %v4558_v11 = vpack.c.bf16 %v1174_v4, %v1170_v3  ;;  %v3952_v17 = vpack.c.bf16 %v1171_v9, %v1167_v8  ;;  %v4576_v4 = vpack.c.bf16 %v1205_v62, %v1201_v60  ;;  %v1252_v60 = vld [vmem:[#allocation5 + $0x2268] sm:$0xff]  ;;  %v1254_v62 = vld [vmem:[#allocation5 + $0x2278] sm:$0xff] }
 0x27e   :  { %4539 = vmatprep.subr.bf16.mxu1 %v4538_v15  ;;  %v1178_v15 = vld [vmem:[#allocation5 + $0x2018] sm:$0xff]  ;;  %v4560_v18 = vpack.c.bf16 %v1173_v12, %v1169_v10  ;;  %v1209_v8 = vld [vmem:[#allocation5 + $0x2110] sm:$0xff]  ;;  %v4578_v9 = vpack.c.bf16 %v1214_v2, %v1210_v1  ;;  %v1220_v12 = vld [vmem:[#allocation5 + $0x2168] sm:$0xff] }
 0x27f   :  { %v1213_v10 = vld [vmem:[#allocation5 + $0x2130] sm:$0xff]  ;;  %v1247_v2 = vld [vmem:[#allocation5 + $0x2240] sm:$0xff] }
 0x280   :  { %3933 = vmatpush1.bf16.msra.mxu0 %v3932_v21  ;;  %v1179_v21 = vld [vmem:[#allocation5 + $0x2020] sm:$0xff] }
 0x281   :  { %4541 = vmatpush1.bf16.msra.mxu1 %v4540_v22  ;;  %3935 = vmatprep.subr.bf16.mxu0 %v3934_v23  ;;  %v1177_v22 = vld [vmem:[#allocation5 + $0x2010] sm:$0xff]  ;;  %v4562_v23 = vpack.c.bf16 %v1182_v16, %v1178_v15  ;;  %v3956_v30 = vpack.c.bf16 %v1179_v21, %v1175_v20  ;;  %v4580_v16 = vpack.c.bf16 %v1213_v10, %v1209_v8  ;;  %v1260_v8 = vld [vmem:[#allocation5 + $0x22a8] sm:$0xff]  ;;  %v1262_v10 = vld [vmem:[#allocation5 + $0x22b8] sm:$0xff] }
 0x282   :  { %4543 = vmatprep.subr.bf16.mxu1 %v4542_v27  ;;  %v1186_v27 = vld [vmem:[#allocation5 + $0x2058] sm:$0xff]  ;;  %v4564_v31 = vpack.c.bf16 %v1181_v24, %v1177_v22  ;;  %v1217_v20 = vld [vmem:[#allocation5 + $0x2150] sm:$0xff]  ;;  %v4582_v21 = vpack.c.bf16 %v1222_v14, %v1218_v13  ;;  %v1228_v24 = vld [vmem:[#allocation5 + $0x21a8] sm:$0xff] }
 0x283   :  { %v4566_v36 = vpack.c.bf16 %v1190_v28, %v1186_v27  ;;  %v1221_v22 = vld [vmem:[#allocation5 + $0x2170] sm:$0xff]  ;;  %v1255_v14 = vld [vmem:[#allocation5 + $0x2280] sm:$0xff] }
 0x284   :  { %3937 = vmatpush1.bf16.msra.mxu0 %v3936_v33  ;;  %v1183_v33 = vld [vmem:[#allocation5 + $0x2040] sm:$0xff]  ;;  %v4584_v28 = vpack.c.bf16 %v1221_v22, %v1217_v20  ;;  %v1268_v20 = vld [vmem:[#allocation5 + $0x22e8] sm:$0xff]  ;;  %v1270_v22 = vld [vmem:[#allocation5 + $0x22f8] sm:$0xff] }
 0x285   :  { %4545 = vmatpush1.bf16.msra.mxu1 %v4544_v34  ;;  %3939 = vmatprep.subr.bf16.mxu0 %v3938_v35  ;;  %v1187_v34 = vld [vmem:[#allocation5 + $0x2060] sm:$0xff]  ;;  %v1185_v35 = vld [vmem:[#allocation5 + $0x2050] sm:$0xff] }
 0x286   :  { %4547 = vmatprep.subr.bf16.mxu1 %v4546_v39  ;;  %v1196_v39 = vld [vmem:[#allocation5 + $0x20a8] sm:$0xff]  ;;  %v3960_v43 = vpack.c.bf16 %v1187_v34, %v1183_v33  ;;  %v4568_v44 = vpack.c.bf16 %v1189_v37, %v1185_v35  ;;  %v4586_v33 = vpack.c.bf16 %v1230_v26, %v1226_v25  ;;  %v1229_v34 = vld [vmem:[#allocation5 + $0x21b0] sm:$0xff]  ;;  %v1234_v37 = vld [vmem:[#allocation5 + $0x21d8] sm:$0xff] }
 0x287   :  { %v1232_v35 = vld [vmem:[#allocation5 + $0x21c8] sm:$0xff]  ;;  %v1263_v26 = vld [vmem:[#allocation5 + $0x22c0] sm:$0xff] }
 0x288   :  { %3941 = vmatpush1.bf16.msra.mxu0 %v3940_v45  ;;  %v3962_v45 = vpack.c.bf16 %v1196_v39, %v1192_v38  ;;  %v1238_v38 = vld [vmem:[#allocation5 + $0x21f8] sm:$0xff] }
 0x289   :  { %4549 = vmatpush1.bf16.msra.mxu1 %v4548_v46  ;;  %3943 = vmatprep.subr.bf16.mxu0 %v3942_v47  ;;  %v1191_v46 = vld [vmem:[#allocation5 + $0x2080] sm:$0xff] }
 0x28a   :  { %4551 = vmatprep.subr.bf16.mxu1 %v4550_v51  ;;  %v1195_v47 = vld [vmem:[#allocation5 + $0x20a0] sm:$0xff]  ;;  %v1200_v51 = vld [vmem:[#allocation5 + $0x20c8] sm:$0xff] }
 0x28b   :  { %v3964_v55 = vpack.c.bf16 %v1195_v47, %v1191_v46  ;;  %v1237_v46 = vld [vmem:[#allocation5 + $0x21f0] sm:$0xff]  ;;  %v1240_v47 = vld [vmem:[#allocation5 + $0x2208] sm:$0xff] }
 0x28c   :  { %3945 = vmatpush1.bf16.msra.mxu0 %v3944_v57  ;;  %v3966_v57 = vpack.c.bf16 %v1204_v52, %v1200_v51  ;;  %v3986_v53 = vpack.c.bf16 %v1244_v48, %v1240_v47 }
 0x28d   :  { %4553 = vmatpush1.bf16.msra.mxu1 %v4552_v58  ;;  %3947 = vmatprep.subr.bf16.mxu0 %v3946_v59  ;;  %v1199_v58 = vld [vmem:[#allocation5 + $0x20c0] sm:$0xff] }
 0x28e   :  { %4555 = vmatprep.subr.bf16.mxu1 %v4554_v63  ;;  %v1203_v59 = vld [vmem:[#allocation5 + $0x20e0] sm:$0xff]  ;;  %v1208_v63 = vld [vmem:[#allocation5 + $0x2108] sm:$0xff] }
 0x28f   :  { %v3968_v3 = vpack.c.bf16 %v1203_v59, %v1199_v58  ;;  %v1245_v58 = vld [vmem:[#allocation5 + $0x2230] sm:$0xff]  ;;  %v1248_v59 = vld [vmem:[#allocation5 + $0x2248] sm:$0xff] }
 0x290   :  { %3949 = vmatpush1.bf16.msra.mxu0 %v3948_v5  ;;  %v3970_v5 = vpack.c.bf16 %v1212_v0, %v1208_v63  ;;  %v3990_v1 = vpack.c.bf16 %v1252_v60, %v1248_v59 }
 0x291   :  { %4557 = vmatpush1.bf16.msra.mxu1 %v4556_v6  ;;  %3951 = vmatprep.subr.bf16.mxu0 %v3950_v7  ;;  %v1207_v6 = vld [vmem:[#allocation5 + $0x2100] sm:$0xff] }
 0x292   :  { %4559 = vmatprep.subr.bf16.mxu1 %v4558_v11  ;;  %v1211_v7 = vld [vmem:[#allocation5 + $0x2120] sm:$0xff]  ;;  %v1216_v11 = vld [vmem:[#allocation5 + $0x2148] sm:$0xff] }
 0x293   :  { %v3972_v15 = vpack.c.bf16 %v1211_v7, %v1207_v6  ;;  %v1253_v6 = vld [vmem:[#allocation5 + $0x2270] sm:$0xff]  ;;  %v1256_v7 = vld [vmem:[#allocation5 + $0x2288] sm:$0xff] }
 0x294   :  { %3953 = vmatpush1.bf16.msra.mxu0 %v3952_v17  ;;  %v3974_v17 = vpack.c.bf16 %v1220_v12, %v1216_v11  ;;  %v3994_v13 = vpack.c.bf16 %v1260_v8, %v1256_v7 }
 0x295   :  { %4561 = vmatpush1.bf16.msra.mxu1 %v4560_v18  ;;  %3955 = vmatprep.subr.bf16.mxu0 %v3954_v19  ;;  %v1215_v18 = vld [vmem:[#allocation5 + $0x2140] sm:$0xff] }
 0x296   :  { %4563 = vmatprep.subr.bf16.mxu1 %v4562_v23  ;;  %v1219_v19 = vld [vmem:[#allocation5 + $0x2160] sm:$0xff]  ;;  %v1224_v23 = vld [vmem:[#allocation5 + $0x2188] sm:$0xff] }
 0x297   :  { %1951 = vmatmul.mubr.f32.vlgmr.msra.gmra.mrb[0].mxu0 %v146_v29  ;;  %v3976_v27 = vpack.c.bf16 %v1219_v19, %v1215_v18  ;;  %v1261_v18 = vld [vmem:[#allocation5 + $0x22b0] sm:$0xff]  ;;  %v1264_v19 = vld [vmem:[#allocation5 + $0x22c8] sm:$0xff] }
 0x298   :  { %3957 = vmatpush1.bf16.msra.mxu0 %v3956_v30  ;;  %2661 = vmatmul.mubr.f32.vlgmr.msra.gmra.mrb[0].mxu1 %v146_v29  ;;  %v3978_v29 = vpack.c.bf16 %v1228_v24, %v1224_v23  ;;  %v1223_v30 = vld [vmem:[#allocation5 + $0x2180] sm:$0xff]  ;;  %v3998_v25 = vpack.c.bf16 %v1268_v20, %v1264_v19 }
 0x299   :  { %4565 = vmatpush1.bf16.msra.mxu1 %v4564_v31  ;;  %3959 = vmatprep.subr.bf16.mxu0 %v3958_v32  ;;  %v1227_v31 = vld [vmem:[#allocation5 + $0x21a0] sm:$0xff]  ;;  %v1225_v32 = vld [vmem:[#allocation5 + $0x2190] sm:$0xff] }
 0x29a   :  { %4567 = vmatprep.subr.bf16.mxu1 %v4566_v36  ;;  %2021 = vmatprep.mubr.f32.mxu0 %v149_v42  ;;  %v1236_v36 = vld [vmem:[#allocation5 + $0x21e8] sm:$0xff]  ;;  %v3980_v39 = vpack.c.bf16 %v1227_v31, %v1223_v30  ;;  %v4588_v40 = vpack.c.bf16 %v1229_v34, %v1225_v32  ;;  %v1269_v30 = vld [vmem:[#allocation5 + $0x22f0] sm:$0xff]  ;;  %v1278_v34 = vld [vmem:[#allocation5 + $0x2338] sm:$0xff] }
 0x29b   :  { %2731 = vmatprep.mubr.f32.mxu1 %v149_v42  ;;  %v3982_v41 = vpack.c.bf16 %v1236_v36, %v1232_v35  ;;  %v1231_v42 = vld [vmem:[#allocation5 + $0x21c0] sm:$0xff]  ;;  %v1272_v31 = vld [vmem:[#allocation5 + $0x2308] sm:$0xff] }
 0x29c   :  { %3961 = vmatpush1.bf16.msra.mxu0 %v3960_v43  ;;  %v1235_v43 = vld [vmem:[#allocation5 + $0x21e0] sm:$0xff]  ;;  %v1276_v32 = vld [vmem:[#allocation5 + $0x2328] sm:$0xff] }
 0x29d   :  { %4569 = vmatpush1.bf16.msra.mxu1 %v4568_v44  ;;  %3963 = vmatprep.subr.bf16.mxu0 %v3962_v45  ;;  %v1233_v44 = vld [vmem:[#allocation5 + $0x21d0] sm:$0xff]  ;;  %v4590_v45 = vpack.c.bf16 %v1238_v38, %v1234_v37  ;;  %v3984_v51 = vpack.c.bf16 %v1235_v43, %v1231_v42  ;;  %v4002_v37 = vpack.c.bf16 %v1276_v32, %v1272_v31  ;;  %v1271_v38 = vld [vmem:[#allocation5 + $0x2300] sm:$0xff]  ;;  %v1280_v43 = vld [vmem:[#allocation5 + $0x2348] sm:$0xff] }
 0x29e   :  { %4571 = vmatprep.subr.bf16.mxu1 %v4570_v49  ;;  %v1242_v49 = vld [vmem:[#allocation5 + $0x2218] sm:$0xff]  ;;  %v4592_v52 = vpack.c.bf16 %v1237_v46, %v1233_v44  ;;  %v1277_v42 = vld [vmem:[#allocation5 + $0x2330] sm:$0xff]  ;;  %v1284_v44 = vld [vmem:[#allocation5 + $0x2368] sm:$0xff] }
 0x29f   :  { %v1286_v46 = vld [vmem:[#allocation5 + $0x2378] sm:$0xff]  ;;  %v148_v31 = vld [vmem:[#allocation2 + $0x80] sm:$0xff] }
 0x2a0   :  { %3965 = vmatpush1.bf16.msra.mxu0 %v3964_v55  ;;  %v1243_v55 = vld [vmem:[#allocation5 + $0x2220] sm:$0xff] }
 0x2a1   :  { %4573 = vmatpush1.bf16.msra.mxu1 %v4572_v56  ;;  %3967 = vmatprep.subr.bf16.mxu0 %v3966_v57  ;;  %v1241_v56 = vld [vmem:[#allocation5 + $0x2210] sm:$0xff]  ;;  %v4594_v57 = vpack.c.bf16 %v1246_v50, %v1242_v49  ;;  %v3988_v63 = vpack.c.bf16 %v1243_v55, %v1239_v54  ;;  %v4006_v49 = vpack.c.bf16 %v1284_v44, %v1280_v43  ;;  %v1279_v50 = vld [vmem:[#allocation5 + $0x2340] sm:$0xff]  ;;  %v1288_v55 = vld [vmem:[#allocation5 + $0x2388] sm:$0xff] }
 0x2a2   :  { %4575 = vmatprep.subr.bf16.mxu1 %v4574_v61  ;;  %v1250_v61 = vld [vmem:[#allocation5 + $0x2258] sm:$0xff]  ;;  %v4596_v0 = vpack.c.bf16 %v1245_v58, %v1241_v56  ;;  %v1285_v54 = vld [vmem:[#allocation5 + $0x2370] sm:$0xff]  ;;  %v1292_v56 = vld [vmem:[#allocation5 + $0x23a8] sm:$0xff] }
 0x2a3   :  { %v1294_v58 = vld [vmem:[#allocation5 + $0x23b8] sm:$0xff] }
 0x2a4   :  { %3969 = vmatpush1.bf16.msra.mxu0 %v3968_v3  ;;  %v1251_v3 = vld [vmem:[#allocation5 + $0x2260] sm:$0xff]  ;;  %v1326_v43 = vld [vmem:[#allocation5 + $0x24b8] sm:$0xff] }
 0x2a5   :  { %4577 = vmatpush1.bf16.msra.mxu1 %v4576_v4  ;;  %3971 = vmatprep.subr.bf16.mxu0 %v3970_v5  ;;  %v1249_v4 = vld [vmem:[#allocation5 + $0x2250] sm:$0xff]  ;;  %v4598_v5 = vpack.c.bf16 %v1254_v62, %v1250_v61  ;;  %v3992_v11 = vpack.c.bf16 %v1251_v3, %v1247_v2  ;;  %v4010_v61 = vpack.c.bf16 %v1292_v56, %v1288_v55  ;;  %v1287_v62 = vld [vmem:[#allocation5 + $0x2380] sm:$0xff]  ;;  %v1296_v3 = vld [vmem:[#allocation5 + $0x23c8] sm:$0xff] }
 0x2a6   :  { %4579 = vmatprep.subr.bf16.mxu1 %v4578_v9  ;;  %v1258_v9 = vld [vmem:[#allocation5 + $0x2298] sm:$0xff]  ;;  %v4600_v12 = vpack.c.bf16 %v1253_v6, %v1249_v4  ;;  %v1293_v2 = vld [vmem:[#allocation5 + $0x23b0] sm:$0xff]  ;;  %v1300_v4 = vld [vmem:[#allocation5 + $0x23e8] sm:$0xff] }
 0x2a7   :  { %v1302_v6 = vld [vmem:[#allocation5 + $0x23f8] sm:$0xff] }
 0x2a8   :  { %3973 = vmatpush1.bf16.msra.mxu0 %v3972_v15  ;;  %v1259_v15 = vld [vmem:[#allocation5 + $0x22a0] sm:$0xff]  ;;  %v1330_v55 = vld [vmem:[#allocation5 + $0x24d8] sm:$0xff] }
 0x2a9   :  { %4581 = vmatpush1.bf16.msra.mxu1 %v4580_v16  ;;  %3975 = vmatprep.subr.bf16.mxu0 %v3974_v17  ;;  %v1257_v16 = vld [vmem:[#allocation5 + $0x2290] sm:$0xff]  ;;  %v4602_v17 = vpack.c.bf16 %v1262_v10, %v1258_v9  ;;  %v3996_v23 = vpack.c.bf16 %v1259_v15, %v1255_v14  ;;  %v4014_v9 = vpack.c.bf16 %v1300_v4, %v1296_v3  ;;  %v1295_v10 = vld [vmem:[#allocation5 + $0x23c0] sm:$0xff]  ;;  %v1304_v15 = vld [vmem:[#allocation5 + $0x2408] sm:$0xff] }
 0x2aa   :  { %4583 = vmatprep.subr.bf16.mxu1 %v4582_v21  ;;  %v1266_v21 = vld [vmem:[#allocation5 + $0x22d8] sm:$0xff]  ;;  %v4604_v24 = vpack.c.bf16 %v1261_v18, %v1257_v16  ;;  %v1301_v14 = vld [vmem:[#allocation5 + $0x23f0] sm:$0xff]  ;;  %v1308_v16 = vld [vmem:[#allocation5 + $0x2428] sm:$0xff] }
 0x2ab   :  { %v1310_v18 = vld [vmem:[#allocation5 + $0x2438] sm:$0xff] }
 0x2ac   :  { %3977 = vmatpush1.bf16.msra.mxu0 %v3976_v27  ;;  %v1267_v27 = vld [vmem:[#allocation5 + $0x22e0] sm:$0xff]  ;;  %v1334_v56 = vld [vmem:[#allocation5 + $0x24f8] sm:$0xff] }
 0x2ad   :  { %4585 = vmatpush1.bf16.msra.mxu1 %v4584_v28  ;;  %3979 = vmatprep.subr.bf16.mxu0 %v3978_v29  ;;  %v1265_v28 = vld [vmem:[#allocation5 + $0x22d0] sm:$0xff]  ;;  %v4606_v29 = vpack.c.bf16 %v1270_v22, %v1266_v21  ;;  %v4000_v35 = vpack.c.bf16 %v1267_v27, %v1263_v26  ;;  %v4018_v21 = vpack.c.bf16 %v1308_v16, %v1304_v15  ;;  %v1303_v22 = vld [vmem:[#allocation5 + $0x2400] sm:$0xff]  ;;  %v1312_v27 = vld [vmem:[#allocation5 + $0x2448] sm:$0xff] }
 0x2ae   :  { %4587 = vmatprep.subr.bf16.mxu1 %v4586_v33  ;;  %v1274_v33 = vld [vmem:[#allocation5 + $0x2318] sm:$0xff]  ;;  %v4608_v36 = vpack.c.bf16 %v1269_v30, %v1265_v28  ;;  %v1309_v26 = vld [vmem:[#allocation5 + $0x2430] sm:$0xff]  ;;  %v1316_v28 = vld [vmem:[#allocation5 + $0x2468] sm:$0xff] }
 0x2af   :  { %v1318_v30 = vld [vmem:[#allocation5 + $0x2478] sm:$0xff] }
 0x2b0   :  { %3981 = vmatpush1.bf16.msra.mxu0 %v3980_v39  ;;  %v1275_v39 = vld [vmem:[#allocation5 + $0x2320] sm:$0xff]  ;;  %v1338_v3 = vld [vmem:[#allocation5 + $0x2518] sm:$0xff] }
 0x2b1   :  { %4589 = vmatpush1.bf16.msra.mxu1 %v4588_v40  ;;  %3983 = vmatprep.subr.bf16.mxu0 %v3982_v41  ;;  %v1273_v40 = vld [vmem:[#allocation5 + $0x2310] sm:$0xff]  ;;  %v4610_v41 = vpack.c.bf16 %v1278_v34, %v1274_v33  ;;  %v4004_v47 = vpack.c.bf16 %v1275_v39, %v1271_v38  ;;  %v4022_v34 = vpack.c.bf16 %v1316_v28, %v1312_v27  ;;  %v1342_v4 = vld [vmem:[#allocation5 + $0x2538] sm:$0xff] }
 0x2b2   :  { %4591 = vmatprep.subr.bf16.mxu1 %v4590_v45  ;;  %v1282_v45 = vld [vmem:[#allocation5 + $0x2358] sm:$0xff]  ;;  %v4612_v48 = vpack.c.bf16 %v1277_v42, %v1273_v40  ;;  %v1317_v39 = vld [vmem:[#allocation5 + $0x2470] sm:$0xff]  ;;  %v1320_v40 = vld [vmem:[#allocation5 + $0x2488] sm:$0xff] }
 0x2b3   :  { %v1322_v42 = vld [vmem:[#allocation5 + $0x2498] sm:$0xff] }
 0x2b4   :  { %3985 = vmatpush1.bf16.msra.mxu0 %v3984_v51  ;;  %v1283_v51 = vld [vmem:[#allocation5 + $0x2360] sm:$0xff]  ;;  %v1346_v15 = vld [vmem:[#allocation5 + $0x2558] sm:$0xff] }
 0x2b5   :  { %4593 = vmatpush1.bf16.msra.mxu1 %v4592_v52  ;;  %3987 = vmatprep.subr.bf16.mxu0 %v3986_v53  ;;  %v1281_v52 = vld [vmem:[#allocation5 + $0x2350] sm:$0xff]  ;;  %v4614_v53 = vpack.c.bf16 %v1286_v46, %v1282_v45  ;;  %v4008_v59 = vpack.c.bf16 %v1283_v51, %v1279_v50  ;;  %v4634_v50 = vpack.c.bf16 %v1326_v43, %v1322_v42  ;;  %v1350_v16 = vld [vmem:[#allocation5 + $0x2578] sm:$0xff] }
 0x2b6   :  { %4595 = vmatprep.subr.bf16.mxu1 %v4594_v57  ;;  %v1290_v57 = vld [vmem:[#allocation5 + $0x2398] sm:$0xff]  ;;  %v4616_v60 = vpack.c.bf16 %v1285_v54, %v1281_v52  ;;  %v1325_v51 = vld [vmem:[#allocation5 + $0x24b0] sm:$0xff]  ;;  %v1328_v52 = vld [vmem:[#allocation5 + $0x24c8] sm:$0xff]  ;;  %v5093_v54 = vmov 0.0  }
 0x2b7   :  { %v1354_v27 = vld [vmem:[#allocation5 + $0x2598] sm:$0xff] }
 0x2b8   :  { %3989 = vmatpush1.bf16.msra.mxu0 %v3988_v63  ;;  %v1291_v63 = vld [vmem:[#allocation5 + $0x23a0] sm:$0xff]  ;;  %v1358_v28 = vld [vmem:[#allocation5 + $0x25b8] sm:$0xff] }
 0x2b9   :  { %4597 = vmatpush1.bf16.msra.mxu1 %v4596_v0  ;;  %3991 = vmatprep.subr.bf16.mxu0 %v3990_v1  ;;  %v1289_v0 = vld [vmem:[#allocation5 + $0x2390] sm:$0xff]  ;;  %v4618_v1 = vpack.c.bf16 %v1294_v58, %v1290_v57  ;;  %v4012_v7 = vpack.c.bf16 %v1291_v63, %v1287_v62  ;;  %v4638_v63 = vpack.c.bf16 %v1334_v56, %v1330_v55  ;;  %v2813_v56 = vld [vmem:[#allocation8] sm:$0xff] }
 0x2ba   :  { %4599 = vmatprep.subr.bf16.mxu1 %v4598_v5  ;;  %v1298_v5 = vld [vmem:[#allocation5 + $0x23d8] sm:$0xff]  ;;  %v4620_v8 = vpack.c.bf16 %v1293_v2, %v1289_v0  ;;  %v1329_v62 = vld [vmem:[#allocation5 + $0x24d0] sm:$0xff]  ;;  %v1340_v2 = vld [vmem:[#allocation5 + $0x2528] sm:$0xff] }
 0x2bb   :  { %v1333_v0 = vld [vmem:[#allocation5 + $0x24f0] sm:$0xff] }
 0x2bc   :  { %3993 = vmatpush1.bf16.msra.mxu0 %v3992_v11  ;;  %v1299_v11 = vld [vmem:[#allocation5 + $0x23e0] sm:$0xff] }
 0x2bd   :  { %4601 = vmatpush1.bf16.msra.mxu1 %v4600_v12  ;;  %3995 = vmatprep.subr.bf16.mxu0 %v3994_v13  ;;  %v1297_v12 = vld [vmem:[#allocation5 + $0x23d0] sm:$0xff]  ;;  %v4622_v13 = vpack.c.bf16 %v1302_v6, %v1298_v5  ;;  %v4016_v19 = vpack.c.bf16 %v1299_v11, %v1295_v10  ;;  %v4640_v6 = vpack.c.bf16 %v1333_v0, %v1329_v62  ;;  %v2832_v62 = vld [vmem:[#allocation8 + $0x98] sm:$0xff] }
 0x2be   :  { %4603 = vmatprep.subr.bf16.mxu1 %v4602_v17  ;;  %v1306_v17 = vld [vmem:[#allocation5 + $0x2418] sm:$0xff]  ;;  %v4624_v20 = vpack.c.bf16 %v1301_v14, %v1297_v12  ;;  %v1337_v10 = vld [vmem:[#allocation5 + $0x2510] sm:$0xff]  ;;  %v4642_v11 = vpack.c.bf16 %v1342_v4, %v1338_v3  ;;  %v1348_v14 = vld [vmem:[#allocation5 + $0x2568] sm:$0xff] }
 0x2bf   :  { %v1341_v12 = vld [vmem:[#allocation5 + $0x2530] sm:$0xff]  ;;  %v2864_v0 = vld [vmem:[#allocation8 + $0x198] sm:$0xff] }
 0x2c0   :  { %3997 = vmatpush1.bf16.msra.mxu0 %v3996_v23  ;;  %v1307_v23 = vld [vmem:[#allocation5 + $0x2420] sm:$0xff] }
 0x2c1   :  { %4605 = vmatpush1.bf16.msra.mxu1 %v4604_v24  ;;  %3999 = vmatprep.subr.bf16.mxu0 %v3998_v25  ;;  %v1305_v24 = vld [vmem:[#allocation5 + $0x2410] sm:$0xff]  ;;  %v4626_v25 = vpack.c.bf16 %v1310_v18, %v1306_v17  ;;  %v4020_v32 = vpack.c.bf16 %v1307_v23, %v1303_v22  ;;  %v4644_v18 = vpack.c.bf16 %v1341_v12, %v1337_v10  ;;  %v2833_v10 = vld [vmem:[#allocation8 + $0xa0] sm:$0xff] }
 0x2c2   :  { %4607 = vmatprep.subr.bf16.mxu1 %v4606_v29  ;;  %v1314_v29 = vld [vmem:[#allocation5 + $0x2458] sm:$0xff]  ;;  %v4628_v33 = vpack.c.bf16 %v1309_v26, %v1305_v24  ;;  %v1345_v22 = vld [vmem:[#allocation5 + $0x2550] sm:$0xff]  ;;  %v4646_v23 = vpack.c.bf16 %v1350_v16, %v1346_v15  ;;  %v1356_v26 = vld [vmem:[#allocation5 + $0x25a8] sm:$0xff] }
 0x2c3   :  { %v4630_v38 = vpack.c.bf16 %v1318_v30, %v1314_v29  ;;  %v1349_v24 = vld [vmem:[#allocation5 + $0x2570] sm:$0xff]  ;;  %v2865_v12 = vld [vmem:[#allocation8 + $0x1a0] sm:$0xff] }
 0x2c4   :  { %4001 = vmatpush1.bf16.msra.mxu0 %v4000_v35  ;;  %v1311_v35 = vld [vmem:[#allocation5 + $0x2440] sm:$0xff]  ;;  %v4648_v30 = vpack.c.bf16 %v1349_v24, %v1345_v22  ;;  %v2835_v22 = vld [vmem:[#allocation8 + $0xb0] sm:$0xff] }
 0x2c5   :  { %4609 = vmatpush1.bf16.msra.mxu1 %v4608_v36  ;;  %4003 = vmatprep.subr.bf16.mxu0 %v4002_v37  ;;  %v1315_v36 = vld [vmem:[#allocation5 + $0x2460] sm:$0xff]  ;;  %v1313_v37 = vld [vmem:[#allocation5 + $0x2450] sm:$0xff] }
 0x2c6   :  { %4611 = vmatprep.subr.bf16.mxu1 %v4610_v41  ;;  %v1324_v41 = vld [vmem:[#allocation5 + $0x24a8] sm:$0xff]  ;;  %v4024_v44 = vpack.c.bf16 %v1315_v36, %v1311_v35  ;;  %v4632_v45 = vpack.c.bf16 %v1317_v39, %v1313_v37  ;;  %v4650_v35 = vpack.c.bf16 %v1358_v28, %v1354_v27  ;;  %v1357_v36 = vld [vmem:[#allocation5 + $0x25b0] sm:$0xff]  ;;  %v1362_v39 = vld [vmem:[#allocation5 + $0x25d8] sm:$0xff] }
 0x2c7   :  { %v4026_v46 = vpack.c.bf16 %v1324_v41, %v1320_v40  ;;  %v1360_v37 = vld [vmem:[#allocation5 + $0x25c8] sm:$0xff]  ;;  %v1366_v40 = vld [vmem:[#allocation5 + $0x25f8] sm:$0xff] }
 0x2c8   :  { %4005 = vmatpush1.bf16.msra.mxu0 %v4004_v47  ;;  %v1319_v47 = vld [vmem:[#allocation5 + $0x2480] sm:$0xff]  ;;  %v2867_v24 = vld [vmem:[#allocation8 + $0x1b0] sm:$0xff] }
 0x2c9   :  { %4613 = vmatpush1.bf16.msra.mxu1 %v4612_v48  ;;  %4007 = vmatprep.subr.bf16.mxu0 %v4006_v49  ;;  %v1323_v48 = vld [vmem:[#allocation5 + $0x24a0] sm:$0xff]  ;;  %v1321_v49 = vld [vmem:[#allocation5 + $0x2490] sm:$0xff] }
 0x2ca   :  { %4615 = vmatprep.subr.bf16.mxu1 %v4614_v53  ;;  %v1332_v53 = vld [vmem:[#allocation5 + $0x24e8] sm:$0xff]  ;;  %v4028_v57 = vpack.c.bf16 %v1323_v48, %v1319_v47  ;;  %v4636_v58 = vpack.c.bf16 %v1325_v51, %v1321_v49  ;;  %v4654_v47 = vpack.c.bf16 %v1366_v40, %v1362_v39  ;;  %v1365_v48 = vld [vmem:[#allocation5 + $0x25f0] sm:$0xff] }
 0x2cb   :  { %v2829_v49 = vld [vmem:[#allocation8 + $0x80] sm:$0xff] }
 0x2cc   :  { %4009 = vmatpush1.bf16.msra.mxu0 %v4008_v59  ;;  %v4030_v59 = vpack.c.bf16 %v1332_v53, %v1328_v52  ;;  %v2861_v51 = vld [vmem:[#allocation8 + $0x180] sm:$0xff]  ;;  %v2862_v52 = vld [vmem:[#allocation8 + $0x188] sm:$0xff] }
 0x2cd   :  { %4617 = vmatpush1.bf16.msra.mxu1 %v4616_v60  ;;  %4011 = vmatprep.subr.bf16.mxu0 %v4010_v61  ;;  %v1327_v60 = vld [vmem:[#allocation5 + $0x24c0] sm:$0xff] }
 0x2ce   :  { %4619 = vmatprep.subr.bf16.mxu1 %v4618_v1  ;;  %v1331_v61 = vld [vmem:[#allocation5 + $0x24e0] sm:$0xff]  ;;  %v1336_v1 = vld [vmem:[#allocation5 + $0x2508] sm:$0xff] }
 0x2cf   :  { %v4032_v5 = vpack.c.bf16 %v1331_v61, %v1327_v60  ;;  %v2846_v60 = vld [vmem:[#allocation8 + $0x108] sm:$0xff]  ;;  %v2831_v61 = vld [vmem:[#allocation8 + $0x90] sm:$0xff] }
 0x2d0   :  { %4013 = vmatpush1.bf16.msra.mxu0 %v4012_v7  ;;  %v4034_v7 = vpack.c.bf16 %v1340_v2, %v1336_v1  ;;  %v150_v1 = vld [vmem:[#allocation2 + $0x90] sm:$0xff]  ;;  %v4662_v4 = vpack.c.bf16 %v2832_v62, %v2831_v61  ;;  %v2874_v61 = vld [vmem:[#allocation8 + $0x1e8] sm:$0xff] }
 0x2d1   :  { %4621 = vmatpush1.bf16.msra.mxu1 %v4620_v8  ;;  %4015 = vmatprep.subr.bf16.mxu0 %v4014_v9  ;;  %v1335_v8 = vld [vmem:[#allocation5 + $0x2500] sm:$0xff] }
 0x2d2   :  { %4623 = vmatprep.subr.bf16.mxu1 %v4622_v13  ;;  %v1339_v9 = vld [vmem:[#allocation5 + $0x2520] sm:$0xff]  ;;  %v1344_v13 = vld [vmem:[#allocation5 + $0x2548] sm:$0xff] }
 0x2d3   :  { %v4036_v17 = vpack.c.bf16 %v1339_v9, %v1335_v8  ;;  %v2848_v9 = vld [vmem:[#allocation8 + $0x118] sm:$0xff] }
 0x2d4   :  { %4017 = vmatpush1.bf16.msra.mxu0 %v4016_v19  ;;  %v4038_v19 = vpack.c.bf16 %v1348_v14, %v1344_v13  ;;  %v2866_v13 = vld [vmem:[#allocation8 + $0x1a8] sm:$0xff] }
 0x2d5   :  { %4625 = vmatpush1.bf16.msra.mxu1 %v4624_v20  ;;  %4019 = vmatprep.subr.bf16.mxu0 %v4018_v21  ;;  %v1343_v20 = vld [vmem:[#allocation5 + $0x2540] sm:$0xff] }
 0x2d6   :  { %4627 = vmatprep.subr.bf16.mxu1 %v4626_v25  ;;  %v1347_v21 = vld [vmem:[#allocation5 + $0x2560] sm:$0xff]  ;;  %v1352_v25 = vld [vmem:[#allocation5 + $0x2588] sm:$0xff] }
 0x2d7   :  { %2022 = vmatmul.mubr.f32.vlgmr.msra.gmra.mrb[0].mxu0 %v148_v31  ;;  %v4040_v29 = vpack.c.bf16 %v1347_v21, %v1343_v20  ;;  %v4698_v20 = vpack.c.bf16 %v2866_v13, %v2865_v12  ;;  %v2850_v21 = vld [vmem:[#allocation8 + $0x128] sm:$0xff]  ;;  %v2876_v12 = vld [vmem:[#allocation8 + $0x1f8] sm:$0xff]  ;;  %v2827_v13 = vld [vmem:[#allocation8 + $0x70] sm:$0xff] }
 0x2d8   :  { %4021 = vmatpush1.bf16.msra.mxu0 %v4020_v32  ;;  %2732 = vmatmul.mubr.f32.vlgmr.msra.gmra.mrb[0].mxu1 %v148_v31  ;;  %v4042_v31 = vpack.c.bf16 %v1356_v26, %v1352_v25  ;;  %v1351_v32 = vld [vmem:[#allocation5 + $0x2580] sm:$0xff] }
 0x2d9   :  { %4629 = vmatpush1.bf16.msra.mxu1 %v4628_v33  ;;  %4023 = vmatprep.subr.bf16.mxu0 %v4022_v34  ;;  %v1355_v33 = vld [vmem:[#allocation5 + $0x25a0] sm:$0xff]  ;;  %v1353_v34 = vld [vmem:[#allocation5 + $0x2590] sm:$0xff] }
 0x2da   :  { %4631 = vmatprep.subr.bf16.mxu1 %v4630_v38  ;;  %2092 = vmatprep.mubr.f32.mxu0 %v5093_v54  ;;  %v1364_v38 = vld [vmem:[#allocation5 + $0x25e8] sm:$0xff]  ;;  %v4044_v41 = vpack.c.bf16 %v1355_v33, %v1351_v32  ;;  %v4652_v42 = vpack.c.bf16 %v1357_v36, %v1353_v34  ;;  %v2868_v25 = vld [vmem:[#allocation8 + $0x1b8] sm:$0xff] }
 0x2db   :  { %2802 = vmatprep.mubr.f32.mxu1 %v5093_v54  ;;  %v4046_v43 = vpack.c.bf16 %v1364_v38, %v1360_v37  ;;  %v4702_v32 = vpack.c.bf16 %v2868_v25, %v2867_v24  ;;  %v2852_v33 = vld [vmem:[#allocation8 + $0x138] sm:$0xff]  ;;  %v2837_v34 = vld [vmem:[#allocation8 + $0xc0] sm:$0xff]  ;;  %v2870_v37 = vld [vmem:[#allocation8 + $0x1c8] sm:$0xff] }
 0x2dc   :  { %4025 = vmatpush1.bf16.msra.mxu0 %v4024_v44  ;;  %v1359_v44 = vld [vmem:[#allocation5 + $0x25c0] sm:$0xff]  ;;  %v3073_v24 = vld [vmem:[#allocation10 + $0x188] sm:$0xff] }
 0x2dd   :  { %4633 = vmatpush1.bf16.msra.mxu1 %v4632_v45  ;;  %4027 = vmatprep.subr.bf16.mxu0 %v4026_v46  ;;  %v1363_v45 = vld [vmem:[#allocation5 + $0x25e0] sm:$0xff]  ;;  %v1361_v46 = vld [vmem:[#allocation5 + $0x25d0] sm:$0xff] }
 0x2de   :  { %4635 = vmatprep.subr.bf16.mxu1 %v4634_v50  ;;  %v2830_v50 = vld [vmem:[#allocation8 + $0x88] sm:$0xff]  ;;  %v4048_v53 = vpack.c.bf16 %v1363_v45, %v1359_v44  ;;  %v4656_v54 = vpack.c.bf16 %v1365_v48, %v1361_v46  ;;  %v2869_v36 = vld [vmem:[#allocation8 + $0x1c0] sm:$0xff]  ;;  %v2839_v46 = vld [vmem:[#allocation8 + $0xd0] sm:$0xff] }
 0x2df   :  { %v4658_v55 = vpack.c.bf16 %v2830_v50, %v2829_v49  ;;  %v4706_v44 = vpack.c.bf16 %v2870_v37, %v2869_v36  ;;  %v2854_v45 = vld [vmem:[#allocation8 + $0x148] sm:$0xff]  ;;  %v2871_v48 = vld [vmem:[#allocation8 + $0x1d0] sm:$0xff]  ;;  %v2872_v49 = vld [vmem:[#allocation8 + $0x1d8] sm:$0xff] }
 0x2e0   :  { %4029 = vmatpush1.bf16.msra.mxu0 %v4028_v57  ;;  %v2814_v57 = vld [vmem:[#allocation8 + $0x8] sm:$0xff] }
 0x2e1   :  { %4637 = vmatpush1.bf16.msra.mxu1 %v4636_v58  ;;  %4031 = vmatprep.subr.bf16.mxu0 %v4030_v59  ;;  %v2845_v58 = vld [vmem:[#allocation8 + $0x100] sm:$0xff]  ;;  %v4690_v59 = vpack.c.bf16 %v2862_v52, %v2861_v51  ;;  %v4660_v2 = vpack.c.bf16 %v2814_v57, %v2813_v56  ;;  %v4710_v56 = vpack.c.bf16 %v2872_v49, %v2871_v48  ;;  %v2856_v57 = vld [vmem:[#allocation8 + $0x158] sm:$0xff]  ;;  %v3042_v49 = vld [vmem:[#allocation10 + $0x90] sm:$0xff] }
 0x2e2   :  { %4639 = vmatprep.subr.bf16.mxu1 %v4638_v63  ;;  %v2863_v63 = vld [vmem:[#allocation8 + $0x190] sm:$0xff]  ;;  %v4692_v3 = vpack.c.bf16 %v2846_v60, %v2845_v58  ;;  %v2841_v58 = vld [vmem:[#allocation8 + $0xe0] sm:$0xff] }
 0x2e3   :  { %v4694_v8 = vpack.c.bf16 %v2864_v0, %v2863_v63  ;;  %v2873_v60 = vld [vmem:[#allocation8 + $0x1e0] sm:$0xff] }
 0x2e4   :  { %4033 = vmatpush1.bf16.msra.mxu0 %v4032_v5  ;;  %v2815_v5 = vld [vmem:[#allocation8 + $0x10] sm:$0xff] }
 0x2e5   :  { %4641 = vmatpush1.bf16.msra.mxu1 %v4640_v6  ;;  %4035 = vmatprep.subr.bf16.mxu0 %v4034_v7  ;;  %v2816_v6 = vld [vmem:[#allocation8 + $0x18] sm:$0xff]  ;;  %v2847_v7 = vld [vmem:[#allocation8 + $0x110] sm:$0xff] }
 0x2e6   :  { %4643 = vmatprep.subr.bf16.mxu1 %v4642_v11  ;;  %v2834_v11 = vld [vmem:[#allocation8 + $0xa8] sm:$0xff]  ;;  %v4664_v14 = vpack.c.bf16 %v2816_v6, %v2815_v5  ;;  %v4696_v15 = vpack.c.bf16 %v2848_v9, %v2847_v7  ;;  %v2844_v9 = vld [vmem:[#allocation8 + $0xf8] sm:$0xff] }
 0x2e7   :  { %v4666_v16 = vpack.c.bf16 %v2834_v11, %v2833_v10  ;;  %v2858_v5 = vld [vmem:[#allocation8 + $0x168] sm:$0xff]  ;;  %v2875_v10 = vld [vmem:[#allocation8 + $0x1f0] sm:$0xff] }
 0x2e8   :  { %4037 = vmatpush1.bf16.msra.mxu0 %v4036_v17  ;;  %v2817_v17 = vld [vmem:[#allocation8 + $0x20] sm:$0xff] }
 0x2e9   :  { %4645 = vmatpush1.bf16.msra.mxu1 %v4644_v18  ;;  %4039 = vmatprep.subr.bf16.mxu0 %v4038_v19  ;;  %v2818_v18 = vld [vmem:[#allocation8 + $0x28] sm:$0xff]  ;;  %v2849_v19 = vld [vmem:[#allocation8 + $0x120] sm:$0xff] }
 0x2ea   :  { %4647 = vmatprep.subr.bf16.mxu1 %v4646_v23  ;;  %v2836_v23 = vld [vmem:[#allocation8 + $0xb8] sm:$0xff]  ;;  %v4668_v26 = vpack.c.bf16 %v2818_v18, %v2817_v17  ;;  %v4700_v27 = vpack.c.bf16 %v2850_v21, %v2849_v19  ;;  %v2859_v17 = vld [vmem:[#allocation8 + $0x170] sm:$0xff]  ;;  %v3041_v21 = vld [vmem:[#allocation10 + $0x88] sm:$0xff] }
 0x2eb   :  { %v4670_v28 = vpack.c.bf16 %v2836_v23, %v2835_v22  ;;  %v2860_v18 = vld [vmem:[#allocation8 + $0x178] sm:$0xff]  ;;  %v3072_v22 = vld [vmem:[#allocation10 + $0x180] sm:$0xff] }
 0x2ec   :  { %4041 = vmatpush1.bf16.msra.mxu0 %v4040_v29  ;;  %v2819_v29 = vld [vmem:[#allocation8 + $0x30] sm:$0xff]  ;;  %v4720_v19 = vpack.c.bf16 %v2860_v18, %v2859_v17  ;;  %v4754_v25 = vpack.c.bf16 %v3073_v24, %v3072_v22  ;;  %v3063_v24 = vld [vmem:[#allocation10 + $0x138] sm:$0xff] }
 0x2ed   :  { %4649 = vmatpush1.bf16.msra.mxu1 %v4648_v30  ;;  %4043 = vmatprep.subr.bf16.mxu0 %v4042_v31  ;;  %v2820_v30 = vld [vmem:[#allocation8 + $0x38] sm:$0xff]  ;;  %v2851_v31 = vld [vmem:[#allocation8 + $0x130] sm:$0xff] }
 0x2ee   :  { %4651 = vmatprep.subr.bf16.mxu1 %v4650_v35  ;;  %v2838_v35 = vld [vmem:[#allocation8 + $0xc8] sm:$0xff]  ;;  %v4672_v38 = vpack.c.bf16 %v2820_v30, %v2819_v29  ;;  %v4704_v39 = vpack.c.bf16 %v2852_v33, %v2851_v31  ;;  %v1367_v29 = vld [vmem:[#allocation7] sm:$0xf]  ;;  %v3062_v22 = vld [vmem:[#allocation10 + $0x130] sm:$0xff] }
 0x2ef   :  { %v4674_v40 = vpack.c.bf16 %v2838_v35, %v2837_v34 }
 0x2f0   :  { %4045 = vmatpush1.bf16.msra.mxu0 %v4044_v41  ;;  %v2821_v41 = vld [vmem:[#allocation8 + $0x40] sm:$0xff] }
 0x2f1   :  { %4653 = vmatpush1.bf16.msra.mxu1 %v4652_v42  ;;  %4047 = vmatprep.subr.bf16.mxu0 %v4046_v43  ;;  %v2822_v42 = vld [vmem:[#allocation8 + $0x48] sm:$0xff]  ;;  %v2853_v43 = vld [vmem:[#allocation8 + $0x140] sm:$0xff] }
 0x2f2   :  { %4655 = vmatprep.subr.bf16.mxu1 %v4654_v47  ;;  %v2840_v47 = vld [vmem:[#allocation8 + $0xd8] sm:$0xff]  ;;  %v4676_v50 = vpack.c.bf16 %v2822_v42, %v2821_v41  ;;  %v4708_v51 = vpack.c.bf16 %v2854_v45, %v2853_v43  ;;  %v3024_v41 = vld [vmem:[#allocation10] sm:$0xff]  ;;  %v3025_v42 = vld [vmem:[#allocation10 + $0x8] sm:$0xff] }
 0x2f3   :  { %v4678_v52 = vpack.c.bf16 %v2840_v47, %v2839_v46  ;;  %v3056_v46 = vld [vmem:[#allocation10 + $0x100] sm:$0xff]  ;;  %v3057_v47 = vld [vmem:[#allocation10 + $0x108] sm:$0xff] }
 0x2f4   :  { %4049 = vmatpush1.bf16.msra.mxu0 %v4048_v53  ;;  %v2823_v53 = vld [vmem:[#allocation8 + $0x50] sm:$0xff] }
 0x2f5   :  { %4657 = vmatpush1.bf16.msra.mxu1 %v4656_v54  ;;  %4659 = vmatprep.subr.bf16.mxu0 %v4658_v55  ;;  %v2824_v54 = vld [vmem:[#allocation8 + $0x58] sm:$0xff]  ;;  %v2855_v55 = vld [vmem:[#allocation8 + $0x150] sm:$0xff] }
 0x2f6   :  { %4691 = vmatprep.subr.bf16.mxu1 %v4690_v59  ;;  %v2842_v59 = vld [vmem:[#allocation8 + $0xe8] sm:$0xff]  ;;  %v4680_v62 = vpack.c.bf16 %v2824_v54, %v2823_v53  ;;  %v4712_v63 = vpack.c.bf16 %v2856_v57, %v2855_v55  ;;  %v3074_v53 = vld [vmem:[#allocation10 + $0x190] sm:$0xff]  ;;  %v3075_v54 = vld [vmem:[#allocation10 + $0x198] sm:$0xff]  ;;  %v4756_v57 = vpack.c.bf16 %v3057_v47, %v3056_v46 }
 0x2f7   :  { %2093 = vmatmul.mubr.f32.vlgmr.msra.gmra.mrb[0].mxu0 %v150_v1  ;;  %v4682_v0 = vpack.c.bf16 %v2842_v59, %v2841_v58  ;;  %v3026_v58 = vld [vmem:[#allocation10 + $0x10] sm:$0xff]  ;;  %v3027_v59 = vld [vmem:[#allocation10 + $0x18] sm:$0xff] }
 0x2f8   :  { %2803 = vmatmul.mubr.f32.vlgmr.msra.gmra.mrb[0].mxu1 %v150_v1  ;;  %4661 = vmatpush3.bf16.msra.mxu0 %v4660_v2  ;;  %v2825_v1 = vld [vmem:[#allocation8 + $0x60] sm:$0xff]  ;;  %v2826_v2 = vld [vmem:[#allocation8 + $0x68] sm:$0xff]  ;;  %v3034_v47 = vld [vmem:[#allocation10 + $0x50] sm:$0xff] }
 0x2f9   :  { %4693 = vmatpush3.bf16.msra.mxu1 %v4692_v3  ;;  %4663 = vmatprep.subr.bf16.mxu0 %v4662_v4  ;;  %v4714_v3 = vpack.c.bf16 %v2874_v61, %v2873_v60  ;;  %v2857_v4 = vld [vmem:[#allocation8 + $0x160] sm:$0xff]  ;;  %v4684_v6 = vpack.c.bf16 %v2826_v2, %v2825_v1  ;;  %v3058_v60 = vld [vmem:[#allocation10 + $0x110] sm:$0xff]  ;;  %v3045_v1 = vld [vmem:[#allocation10 + $0xa8] sm:$0xff]  ;;  %v4758_v2 = vpack.c.bf16 %v3075_v54, %v3074_v53 }
 0x2fa   :  { %4695 = vmatprep.subr.bf16.mxu1 %v4694_v8  ;;  %v4716_v7 = vpack.c.bf16 %v2858_v5, %v2857_v4  ;;  %v2843_v8 = vld [vmem:[#allocation8 + $0xf0] sm:$0xff]  ;;  %v3077_v4 = vld [vmem:[#allocation10 + $0x1a8] sm:$0xff]  ;;  %v4728_v5 = vpack.c.bf16 %v3027_v59, %v3026_v58  ;;  %v3084_v54 = vld [vmem:[#allocation10 + $0x1e0] sm:$0xff] }
 0x2fb   :  { %v4686_v11 = vpack.c.bf16 %v2844_v9, %v2843_v8  ;;  %v3028_v8 = vld [vmem:[#allocation10 + $0x20] sm:$0xff]  ;;  %v3029_v9 = vld [vmem:[#allocation10 + $0x28] sm:$0xff] }
 0x2fc   :  { %4665 = vmatpush3.bf16.msra.mxu0 %v4664_v14  ;;  %v2828_v14 = vld [vmem:[#allocation8 + $0x78] sm:$0xff]  ;;  %v4732_v17 = vpack.c.bf16 %v3029_v9, %v3028_v8  ;;  %v3053_v53 = vld [vmem:[#allocation10 + $0xe8] sm:$0xff]  ;;  %v3038_v9 = vld [vmem:[#allocation10 + $0x70] sm:$0xff] }
 0x2fd   :  { %4697 = vmatpush3.bf16.msra.mxu1 %v4696_v15  ;;  %4667 = vmatprep.subr.bf16.mxu0 %v4666_v16  ;;  %v4718_v15 = vpack.c.bf16 %v2876_v12, %v2875_v10  ;;  %v4688_v16 = vpack.c.bf16 %v2828_v14, %v2827_v13  ;;  %v3060_v10 = vld [vmem:[#allocation10 + $0x120] sm:$0xff]  ;;  %v3061_v12 = vld [vmem:[#allocation10 + $0x128] sm:$0xff]  ;;  %v3046_v13 = vld [vmem:[#allocation10 + $0xb0] sm:$0xff] }
 0x2fe   :  { %4699 = vmatprep.subr.bf16.mxu1 %v4698_v20  ;;  %v3040_v20 = vld [vmem:[#allocation10 + $0x80] sm:$0xff]  ;;  %v3047_v14 = vld [vmem:[#allocation10 + $0xb8] sm:$0xff]  ;;  %v4764_v18 = vpack.c.bf16 %v3061_v12, %v3060_v10  ;;  %v3070_v12 = vld [vmem:[#allocation10 + $0x170] sm:$0xff] }
 0x2ff   :  { %v4722_v23 = vpack.c.bf16 %v3041_v21, %v3040_v20  ;;  %v3030_v20 = vld [vmem:[#allocation10 + $0x30] sm:$0xff]  ;;  %v3031_v21 = vld [vmem:[#allocation10 + $0x38] sm:$0xff] }
 0x300   :  { %4669 = vmatpush3.bf16.msra.mxu0 %v4668_v26  ;;  %v1369_v26 = vlaneseq  ;;  %v3039_v10 = vld [vmem:[#allocation10 + $0x78] sm:$0xff] }
 0x301   :  { %4701 = vmatpush3.bf16.msra.mxu1 %v4700_v27  ;;  %4671 = vmatprep.subr.bf16.mxu0 %v4670_v28 }
 0x302   :  { %4703 = vmatprep.subr.bf16.mxu1 %v4702_v32  ;;  %v5255_v27 = vshrl.u32 %v1369_v26, 7  ;;  %v3049_v26 = vld [vmem:[#allocation10 + $0xc8] sm:$0xff] }
 0x304   :  { %4673 = vmatpush3.bf16.msra.mxu0 %v4672_v38  ;;  %v1371_v28 = vsub.s32 0, %v5255_v27  ;;  %v1379_v30 = vsub.s32 2, %v5255_v27  ;;  %v1375_v31 = vsub.s32 1, %v5255_v27  ;;  %v1383_v32 = vsub.s32 3, %v5255_v27 }
 0x305   :  { %4705 = vmatpush3.bf16.msra.mxu1 %v4704_v39  ;;  %4675 = vmatprep.subr.bf16.mxu0 %v4674_v40  ;;  %vm3240_vm0 = vcmp.lt.s32.totalorder %v5255_v27, 2 }
 0x306   :  { %4707 = vmatprep.subr.bf16.mxu1 %v4706_v44  ;;  %v1372_v33 = vrot.slane %v1367_v29, %v1371_v28  ;;  %v1380_v34 = vrot.slane %v1367_v29, %v1379_v30  ;;  %v1376_v35 = vrot.slane %v1367_v29, %v1375_v31  ;;  %v1384_v36 = vrot.slane %v1367_v29, %v1383_v32  ;;  %v3080_v28 = vld [vmem:[#allocation10 + $0x1c0] sm:$0xff]  ;;  %v3081_v29 = vld [vmem:[#allocation10 + $0x1c8] sm:$0xff] }
 0x307   :  { %v4736_v30 = vpack.c.bf16 %v3031_v21, %v3030_v20  ;;  %v4768_v31 = vpack.c.bf16 %v3063_v24, %v3062_v22 }
 0x308   :  { %4677 = vmatpush3.bf16.msra.mxu0 %v4676_v50  ;;  %v3043_v50 = vld [vmem:[#allocation10 + $0x98] sm:$0xff] }
 0x309   :  { %4709 = vmatpush3.bf16.msra.mxu1 %v4708_v51  ;;  %4679 = vmatprep.subr.bf16.mxu0 %v4678_v52  ;;  %v4724_v52 = vpack.c.bf16 %v3025_v42, %v3024_v41  ;;  %v3082_v41 = vld [vmem:[#allocation10 + $0x1d0] sm:$0xff]  ;;  %v3083_v42 = vld [vmem:[#allocation10 + $0x1d8] sm:$0xff] }
 0x30a   :  { %4711 = vmatprep.subr.bf16.mxu1 %v4710_v56 }
 0x30c   :  { %4681 = vmatpush3.bf16.msra.mxu0 %v4680_v62  ;;  %v4726_v62 = vpack.c.bf16 %v3043_v50, %v3042_v49  ;;  %v3066_v49 = vld [vmem:[#allocation10 + $0x150] sm:$0xff]  ;;  %v4774_v50 = vpack.c.bf16 %v3083_v42, %v3082_v41 }
 0x30d   :  { %4713 = vmatpush3.bf16.msra.mxu1 %v4712_v63  ;;  %4683 = vmatprep.subr.bf16.mxu0 %v4682_v0  ;;  %v3059_v63 = vld [vmem:[#allocation10 + $0x118] sm:$0xff]  ;;  %v3044_v0 = vld [vmem:[#allocation10 + $0xa0] sm:$0xff] }
 0x30e   :  { %4715 = vmatprep.subr.bf16.mxu1 %v4714_v3  ;;  %v3076_v3 = vld [vmem:[#allocation10 + $0x1a0] sm:$0xff] }
 0x310   :  { %4685 = vmatpush3.bf16.msra.mxu0 %v4684_v6  ;;  %v4760_v6 = vpack.c.bf16 %v3059_v63, %v3058_v60  ;;  %v3036_v60 = vld [vmem:[#allocation10 + $0x60] sm:$0xff] }
 0x311   :  { %4717 = vmatpush3.bf16.msra.mxu1 %v4716_v7  ;;  %4687 = vmatprep.subr.bf16.mxu0 %v4686_v11  ;;  %v4730_v7 = vpack.c.bf16 %v3045_v1, %v3044_v0  ;;  %v4762_v11 = vpack.c.bf16 %v3077_v4, %v3076_v3  ;;  %v3068_v63 = vld [vmem:[#allocation10 + $0x160] sm:$0xff]  ;;  %v3069_v1 = vld [vmem:[#allocation10 + $0x168] sm:$0xff]  ;;  %v3055_v3 = vld [vmem:[#allocation10 + $0xf8] sm:$0xff] }
 0x312   :  { %4719 = vmatprep.subr.bf16.mxu1 %v4718_v15  ;;  %v3078_v15 = vld [vmem:[#allocation10 + $0x1b0] sm:$0xff] }
 0x313   :  { %v3086_v4 = vld [vmem:[#allocation10 + $0x1f0] sm:$0xff] }
 0x314   :  { %4689 = vmatpush3.bf16.msra.mxu0 %v4688_v16  ;;  %v3079_v16 = vld [vmem:[#allocation10 + $0x1b8] sm:$0xff] }
 0x315   :  { %4721 = vmatpush3.bf16.msra.mxu1 %v4720_v19  ;;  %4723 = vmatprep.subr.bf16.mxu0 %v4722_v23  ;;  %v4734_v19 = vpack.c.bf16 %v3047_v14, %v3046_v13  ;;  %v4766_v23 = vpack.c.bf16 %v3079_v16, %v3078_v15  ;;  %v3071_v13 = vld [vmem:[#allocation10 + $0x178] sm:$0xff]  ;;  %v4752_v14 = vpack.c.bf16 %v3039_v10, %v3038_v9 }
 0x316   :  { %4755 = vmatprep.subr.bf16.mxu1 %v4754_v25  ;;  %v3048_v25 = vld [vmem:[#allocation10 + $0xc0] sm:$0xff]  ;;  %v4784_v15 = vpack.c.bf16 %v3071_v13, %v3070_v12 }
 0x317   :  { %v4738_v32 = vpack.c.bf16 %v3049_v26, %v3048_v25 }
 0x3ca   :  { %v2094_v37 = vpop.f32.mrb[0].mxu0 }
 0x3cb   :  { %v5261_v38 = vadd.f32 %v2094_v37, %v1372_v33  ;;  %v2804_v39 = vpop.f32.mrb[0].mxu1  ;;  %v2096_v40 = vpop.f32.mrb[1].mxu0  ;;  %v3032_v33 = vld [vmem:[#allocation10 + $0x40] sm:$0xff]  ;;  %v3065_v37 = vld [vmem:[#allocation10 + $0x148] sm:$0xff] }
 0x3cc   :  { %v5263_v43 = vadd.f32 %v2804_v39, %v1380_v34  ;;  %v4787_v44 = vadd.f32 %v2096_v40, %v1376_v35  ;;  %v2806_v45 = vpop.f32.mrb[1].mxu1  ;;  %v3033_v34 = vld [vmem:[#allocation10 + $0x48] sm:$0xff]  ;;  %v3064_v35 = vld [vmem:[#allocation10 + $0x140] sm:$0xff]  ;;  %v3050_v39 = vld [vmem:[#allocation10 + $0xd0] sm:$0xff] }
 0x3cd   :  { %v4789_v48 = vadd.f32 %v2806_v45, %v1384_v36  ;;  %v2809_v55 = vmax.f32 %v5261_v38, 0.0  ;;  %v4770_v36 = vpack.c.bf16 %v3081_v29, %v3080_v28  ;;  %v3051_v40 = vld [vmem:[#allocation10 + $0xd8] sm:$0xff]  ;;  %v4772_v45 = vpack.c.bf16 %v3065_v37, %v3064_v35  ;;  %v3301_v28 = vld [vmem:[#allocation13] ss:$0 sm:$0xff] }
 0x3ce   :  { %v2810_v51 = vmax.f32 %v4787_v44, 0.0  ;;  %v2811_v61 = vmax.f32 %v5263_v43, 0.0  ;;  %v4740_v44 = vpack.c.bf16 %v3033_v34, %v3032_v33  ;;  %v4742_v46 = vpack.c.bf16 %v3051_v40, %v3050_v39  ;;  %v3263_v39 = vld [vmem:[#allocation14] sm:$0xff] }
 0x3cf   :  { %v2812_v56 = vmax.f32 %v4789_v48, 0.0  ;;  %v3035_v48 = vld [vmem:[#allocation10 + $0x58] sm:$0xff] }
 0x3d0   :  { %2948 = vmatprep.mubr.f32.mxu0 %v2810_v51 }
 0x3d1   :  { %3018 = vmatprep.mubr.f32.mxu1 %v2812_v56  ;;  %2949 = vmatmul.mubr.f32.vlgmr.msra.gmra.mrb[2].mxu0 %v2809_v55 }
 0x3d2   :  { %3019 = vmatmul.mubr.f32.vlgmr.msra.gmra.mrb[2].mxu1 %v2811_v61  ;;  %4725 = vmatpush3.bf16.msra.mxu0 %v4724_v52  ;;  %v3052_v52 = vld [vmem:[#allocation10 + $0xe0] sm:$0xff] }
 0x3d3   :  { %4757 = vmatpush3.bf16.msra.mxu1 %v4756_v57  ;;  %3159 = vmatprep.mubr.f32.mxu0 %v2810_v51  ;;  %v3067_v51 = vld [vmem:[#allocation10 + $0x158] sm:$0xff]  ;;  %v4744_v57 = vpack.c.bf16 %v3035_v48, %v3034_v47  ;;  %v4746_v59 = vpack.c.bf16 %v3053_v53, %v3052_v52 }
 0x3d4   :  { %3229 = vmatprep.mubr.f32.mxu1 %v2812_v56  ;;  %4727 = vmatprep.subr.bf16.mxu0 %v4726_v62  ;;  %v3085_v56 = vld [vmem:[#allocation10 + $0x1e8] sm:$0xff]  ;;  %v4776_v58 = vpack.c.bf16 %v3067_v51, %v3066_v49 }
 0x3d5   :  { %4759 = vmatprep.subr.bf16.mxu1 %v4758_v2  ;;  %v3037_v62 = vld [vmem:[#allocation10 + $0x68] sm:$0xff]  ;;  %v4778_v0 = vpack.c.bf16 %v3085_v56, %v3084_v54  ;;  %v3054_v2 = vld [vmem:[#allocation10 + $0xf0] sm:$0xff] }
 0x3d6   :  { %4729 = vmatpush3.bf16.msra.mxu0 %v4728_v5  ;;  %v3087_v5 = vld [vmem:[#allocation10 + $0x1f8] sm:$0xff]  ;;  %v4750_v8 = vpack.c.bf16 %v3055_v3, %v3054_v2 }
 0x3d7   :  { %4761 = vmatpush3.bf16.msra.mxu1 %v4760_v6  ;;  %4731 = vmatprep.subr.bf16.mxu0 %v4730_v7  ;;  %v4748_v6 = vpack.c.bf16 %v3037_v62, %v3036_v60  ;;  %v4780_v7 = vpack.c.bf16 %v3069_v1, %v3068_v63 }
 0x3d8   :  { %4763 = vmatprep.subr.bf16.mxu1 %v4762_v11  ;;  %v4782_v11 = vpack.c.bf16 %v3087_v5, %v3086_v4 }
 0x3da   :  { %4733 = vmatpush3.bf16.msra.mxu0 %v4732_v17 }
 0x3db   :  { %4765 = vmatpush3.bf16.msra.mxu1 %v4764_v18  ;;  %4735 = vmatprep.subr.bf16.mxu0 %v4734_v19  ;;  %v3300_v18 = vld [vmem:[#allocation11] ss:$0 sm:$0xff] }
 0x3dc   :  { %4767 = vmatprep.subr.bf16.mxu1 %v4766_v23 }
 0x3de   :  { %4737 = vmatpush3.bf16.msra.mxu0 %v4736_v30 }
 0x3df   :  { %4769 = vmatpush3.bf16.msra.mxu1 %v4768_v31  ;;  %4739 = vmatprep.subr.bf16.mxu0 %v4738_v32 }
 0x3e0   :  { %4771 = vmatprep.subr.bf16.mxu1 %v4770_v36 }
 0x3e2   :  { %4741 = vmatpush3.bf16.msra.mxu0 %v4740_v44 }
 0x3e3   :  { %4773 = vmatpush3.bf16.msra.mxu1 %v4772_v45  ;;  %4743 = vmatprep.subr.bf16.mxu0 %v4742_v46 }
 0x3e4   :  { %4775 = vmatprep.subr.bf16.mxu1 %v4774_v50 }
 0x3e6   :  { %4745 = vmatpush3.bf16.msra.mxu0 %v4744_v57 }
 0x3e7   :  { %4777 = vmatpush3.bf16.msra.mxu1 %v4776_v58  ;;  %4747 = vmatprep.subr.bf16.mxu0 %v4746_v59 }
 0x3e8   :  { %4779 = vmatprep.subr.bf16.mxu1 %v4778_v0 }
 0x3ea   :  { %4749 = vmatpush3.bf16.msra.mxu0 %v4748_v6 }
 0x3eb   :  { %4781 = vmatpush3.bf16.msra.mxu1 %v4780_v7  ;;  %4751 = vmatprep.subr.bf16.mxu0 %v4750_v8 }
 0x3ec   :  { %4783 = vmatprep.subr.bf16.mxu1 %v4782_v11 }
 0x3ee   :  { %4753 = vmatpush3.bf16.msra.mxu0 %v4752_v14 }
 0x3ef   :  { %4785 = vmatpush3.bf16.msra.mxu1 %v4784_v15 }
 0x3f1   :  { %3160 = vmatmul.mubr.f32.vlgmr.msra.gmra.mrb[4].mxu0 %v2809_v55 }
 0x3f2   :  { %3230 = vmatmul.mubr.f32.vlgmr.msra.gmra.mrb[4].mxu1 %v2811_v61 }
 0x4a4   :  { %v3334_v16 = vpop.f32.mrb[2].mxu0 }
 0x4a5   :  { %v3369_v17 = vpop.f32.mrb[2].mxu1  ;;  %v3335_v19 = vpop.f32.mrb[3].mxu0 }
 0x4a6   :  { %v3336_v20 = vadd.f32 %v3335_v19, %v3334_v16  ;;  %v3370_v21 = vpop.f32.mrb[3].mxu1 }
 0x4a7   :  { %v3371_v22 = vadd.f32 %v3370_v21, %v3369_v17 }
 0x4a8   :  { %v2951_v23 = vadd.f32 %v3336_v20, %v3300_v18 }
 0x4aa   :  { %v3021_v24 = vadd.f32 %v3371_v22, %v2951_v23 }
 0x4ac   :  { %v3242_v43 = vmul.f32 %v3021_v24, %v3021_v24 }
 0x4c4   :  { %v3404_v25 = vpop.f32.mrb[4].mxu0 }
 0x4c5   :  { %v3439_v26 = vpop.f32.mrb[4].mxu1  ;;  %v3405_v29 = vpop.f32.mrb[5].mxu0 }
 0x4c6   :  { %v3406_v30 = vadd.f32 %v3405_v29, %v3404_v25  ;;  %v3440_v31 = vpop.f32.mrb[5].mxu1 }
 0x4c7   :  { %v3441_v38 = vadd.f32 %v3440_v31, %v3439_v26 }
 0x4c8   :  { %v3162_v55 = vadd.f32 %v3406_v30, %v3301_v28 }
 0x4ca   :  { %v3232_v32 = vadd.f32 %v3441_v38, %v3162_v55 }
 0x4cc   :  { %v3244_v61 = vmul.f32 1.442695, %v3232_v32  ;;  %v3260_v33 = vmul.f32 0.5, %v3232_v32  ;;  %v3241_v34 = vadd.f32 1.0, %v3232_v32 }
 0x4ce   :  { %4843 = vpow2.f32 %v3244_v61  ;;  %v3261_v35 = vmul.f32 1.442695, %v3260_v33  ;;  %v3243_v36 = vsub.f32 %v3241_v34, %v3242_v43 }
 0x4d0   :  { %4845 = vpow2.f32 %v3261_v35 }
 0x4d8   :  { %v4844_v37 = vpop.eup %4843 }
 0x4d9   :  { %v3246_v40 = vsub.f32 %v3243_v36, %v4844_v37 }
 0x4da   :  { %v4846_v41 = vpop.eup %4845 }
 0x4db   :  { %v3247_v42 = vsel %vm3240_vm0, %v3246_v40, 0.0  ;;  %v3264_v44 = vmul.f32 %v4846_v41, %v3263_v39 }
 0x4dc   :  { %3248 = vadd.xlane.f32.xlu0 %v3247_v42 }
 0x4dd   :  { %v3265_v45 = vadd.f32 %v3264_v44, %v3021_v24 }
 0x4df   :  { %3266 = vst [vmem:[#allocation16] sm:$0xff] %v3265_v45 }
 0x4e0   :  { %5034 = shalt.err (!%p5031_p12)
}
 0x4e1   :  { %s5035_s20 = scalar_lea.hbm %s5308_s8, 128 }
 0x4e2   :  { %p5036_p13 = scmp.ne.s32.totalorder %s5308_s8, %s5035_s20  ;;  %p5039_p0 = scmp.lt.u32.totalorder %s5035_s20, %s5308_s8 }
 0x4e4   :  { %p5041_p1 = pnand %p5039_p0, %p5036_p13 }
 0x4e6   :  { %5044 = shalt.err (!%p5041_p1)
}
 0x4e7   :  { %3276 = dma.vmem_to_hbm [thread:$0]  %s3274_s5, 128, %s5308_s8, [#allocation4]  }
 0x4e8   :  { %s5095_s27 = smov [#allocation17]  }
 0x4e9   :  { %s3283_s28 = sshll.u32 %s5095_s27, 4  ;;  %s3284_s28 = int_to_ptr.vmem [resolvable:$true] %s3283_s28 }
 0x4ea   :  { %s5045_s1 = scalar_lea.vmem %s3284_s28, 128  ;;  %p5050_p3 = scmp.lt.s32.totalorder %s3284_s28, %s3284_s28 }
 0x4eb   :  { %p5046_p2 = scmp.ne.s32.totalorder %s3284_s28, %s5045_s1  ;;  %p5051_p4 = scmp.lt.s32.totalorder %s5045_s1, %s5045_s1 }
 0x4ed   :  { %p5052_p5 = por %p5051_p4, %p5050_p3 }
 0x4ef   :  { %p5053_p6 = pnand %p5052_p5, %p5046_p2 }
 0x569   :  { %v3249_v27 = vpop.xlane.xlu0 %3248 }
 0x56a   :  { %v3250_v46 = vrot.slane %v3249_v27, 4 }
 0x56c   :  { %v3251_v47 = vadd.f32 %v3250_v46, %v3249_v27 }
 0x56e   :  { %v3252_v48 = vrot.slane %v3251_v47, 2 }
 0x570   :  { %v3253_v49 = vadd.f32 %v3252_v48, %v3251_v47 }
 0x572   :  { %v3254_v50 = vrot.slane %v3253_v49, 1 }
 0x574   :  { %v3255_v51 = vadd.f32 %v3254_v50, %v3253_v49 }
 0x576   :  { %4826 = vpush %v3255_v51 }
 0x5a7   :  { %s4827_s0 = spop %4826 }
 0x5a8   :  { %s3257_s4 = smul.f32 -0.5, %s4827_s0 }
 0x5aa   :  { %v3258_v52 = vstv %s3257_s4 }
 0x5ab   :  { %3259 = vst [vmem:[#allocation17] sm:$0xff] %v3258_v52 }
 0x5ac   :  { %5056 = shalt.err (!%p5053_p6)
}
 0x5ad   :  { %s5057_s22 = scalar_lea.hbm %s5309_s9, 128 }
 0x5ae   :  { %p5058_p7 = scmp.ne.s32.totalorder %s5309_s9, %s5057_s22  ;;  %p5061_p8 = scmp.lt.u32.totalorder %s5057_s22, %s5309_s9 }
 0x5b0   :  { %p5063_p9 = pnand %p5061_p8, %p5058_p7 }
 0x5b2   :  { %5066 = shalt.err (!%p5063_p9)
}
 0x5b3   :  { %3286 = dma.vmem_to_hbm [thread:$0]  %s3284_s28, 128, %s5309_s9, [#allocation18]  }
 0x5b4   :  { %5077 = dma.done.wait [#allocation4], 128  }
 0x5b5   :  { %5078 = vsyncadd [#allocation4], 4294967168 }
 0x5b6   :  { %5079 = dma.done.wait [#allocation18], 128  }
 0x5b7   :  { %5080 = vsyncadd [#allocation18], 4294967168 }
 0x5b8   :  { %3293 = vsyncpa [#allocation3], 1 }
 0x5b9   :  { %3294 = vsyncpa [#allocation6], 1 }
 0x5ba   :  { %3295 = vsyncpa [#allocation9], 1 }
 0x5bb   :  { %3296 = vsyncpa [#allocation12], 1 }
 0x5bc   :  { %3297 = vsyncpa [#allocation15], 1 }
 0x5bd   :  { %3298 = vsyncpa [#allocation4], 1 }
 0x5be   :  { %3299 = vsyncpa [#allocation18], 1 }

</bundles_post_ra>
